<compile_context>
chip_gen: v6e
topology: v6e:2x2x1
jax: 0.10.0
libtpu: 0.0.40
codegen_flags: <defaults>
</compile_context>

<pallas_src>
import functools

import jax
import jax.numpy as jnp
from jax import lax
from jax.experimental import pallas as pl
from jax.experimental.pallas import tpu as pltpu

_EPS = 1e-5
_DIL = 2  # temporal-conv dilation is hard-coded to 2 in the PyTorch module


def _fold_bn(gamma, beta, mean, var):
    scale = gamma / jnp.sqrt(var + _EPS)
    bias = beta - mean * scale
    return scale.astype(jnp.float32), bias.astype(jnp.float32)


# --------------------------------------------------------------------------------------
# Fused kernel: 6x (spatial graph conv -> BN+ReLU -> dilated temporal conv -> BN+ReLU)
#               -> global avg pool -> fc/tanh chain -> sigmoid, and 1x1 cls conv.
# --------------------------------------------------------------------------------------
def _fused_kernel(*refs, cfgs, K, V, tk, pad, head_T):
    n_blk = len(cfgs)
    n_in = 3 + 5 * n_blk + 10
    in_refs = refs[:n_in]
    score_ref, cls_ref = refs[n_in], refs[n_in + 1]
    act_scr, sgc_scr = refs[n_in + 2], refs[n_in + 3]

    x_ref, bnin_s_ref, bnin_b_ref = in_refs[0:3]
    blk_refs = in_refs[3:3 + 5 * n_blk]
    (wfc_ref, bfc_ref, wfc1_ref, bfc1_ref, wfc2_ref, bfc2_ref,
     wfc3_ref, bfc3_ref, wcls_ref, bcls_ref) = in_refs[3 + 5 * n_blk:]

    # Input BatchNorm1d affine (per (v, c)) applied in-kernel on the small (V, C) tile —
    # avoids a separate XLA HBM pass over x.
    s_in = bnin_s_ref[...]
    b_in = bnin_b_ref[...]

    for b, (c_in, c_out, t_in, t_out, stride) in enumerate(cfgs):
        a_ref, wsgc_ref, bsgc_ref, wt_ref, bt_ref = blk_refs[5 * b:5 * b + 5]

        # ---- spatial graph conv (1x1 conv + graph einsum), BN1 folded, ReLU ----------
        a_k = [a_ref[k] for k in range(K)]        # (V, V) bf16, (A*M)^T per hop
        w_k = [wsgc_ref[k] for k in range(K)]     # (c_in, c_out) bf16, BN1 scale folded
        zb = bsgc_ref[...]                        # (V, c_out) f32, conv bias thru A + BN1

        # Zero only the 2*pad pad-row bands of the padded scratch (not the whole buffer).
        zpad = jnp.zeros((pad * V, c_out), jnp.bfloat16)
        sgc_scr[0:pad * V, 0:c_out] = zpad
        sgc_scr[(pad + t_in) * V:(2 * pad + t_in) * V, 0:c_out] = zpad

        def sgc_body(t, carry, _b=b, _cin=c_in, _cout=c_out, _ak=a_k, _wk=w_k, _zb=zb):
            row = pl.multiple_of(t * V, V)
            if _b == 0:
                # TODO(synk): first block (c_in=4) could also pack batch onto sublanes.
                xt = x_ref[pl.ds(row, V), :] * s_in + b_in
                xt = xt.astype(jnp.bfloat16)
            else:
                xt = act_scr[pl.ds(row, V), 0:_cin]
            zt = _zb
            for k in range(K):
                xa = jnp.dot(_ak[k], xt, preferred_element_type=jnp.float32)
                zt = zt + jnp.dot(xa.astype(jnp.bfloat16), _wk[k],
                                  preferred_element_type=jnp.float32)
            out_row = pl.multiple_of((pad + t) * V, V)
            sgc_scr[pl.ds(out_row, V), 0:_cout] = jnp.maximum(zt, 0.0).astype(jnp.bfloat16)
            return carry

        lax.fori_loop(0, t_in, sgc_body, 0)

        # ---- dilated temporal conv (stride applied directly), BN2 folded, ReLU -------
        wt_k = [wt_ref[dt] for dt in range(tk)]   # (c_out, c_out) bf16, BN2 scale folded
        tb = jnp.broadcast_to(bt_ref[...], (V, c_out))   # (V, c_out) f32 (hoisted)

        def tconv_body(t, carry, _cout=c_out, _stride=stride, _wt=wt_k, _tb=tb):
            base = pl.multiple_of(t * _stride * V, V)
            acc = _tb
            for dt in range(tk):
                seg = sgc_scr[pl.ds(base + dt * _DIL * V, V), 0:_cout]
                acc = acc + jnp.dot(seg, _wt[dt], preferred_element_type=jnp.float32)
            out_row = pl.multiple_of(t * V, V)
            act_scr[pl.ds(out_row, V), 0:_cout] = jnp.maximum(acc, 0.0).astype(jnp.bfloat16)
            return carry

        lax.fori_loop(0, t_out, tconv_body, 0)

    # ---- head: global avg pool -> fc/tanh chain -> sigmoid; 1x1 cls conv -------------
    c_last = cfgs[-1][1]
    feat = act_scr[0:head_T * V, 0:c_last].astype(jnp.float32)
    pooled = jnp.mean(feat, axis=0, keepdims=True)            # (1, c_last)

    def _lin(h, w_ref, b_ref):
        return jnp.dot(h.astype(jnp.bfloat16), w_ref[...],
                       preferred_element_type=jnp.float32) + b_ref[...]

    h = jnp.tanh(_lin(pooled, wfc_ref, bfc_ref))
    h = jnp.tanh(_lin(h, wfc1_ref, bfc1_ref))
    h = jnp.tanh(_lin(h, wfc2_ref, bfc2_ref))
    score_ref[0] = jax.nn.sigmoid(_lin(h, wfc3_ref, bfc3_ref))   # (1, 1)
    cls_ref[0] = _lin(pooled, wcls_ref, bcls_ref)                # (1, num_classes)


def _const_spec(shape):
    if len(shape) == 2:
        return pl.BlockSpec(shape, lambda n: (0, 0))
    return pl.BlockSpec(shape, lambda n: (0, 0, 0))


def std_gcn_forward(x, prep):
    """x: (N, C, T, V) float32 -> (score (N, 1), cls (N, num_classes))."""
    N, C, T0, V = x.shape
    K = prep["K"]
    tk = prep["t_kernel_size"]
    pad = (tk - 1) // 2
    nc = prep["head"]["w_cls"].shape[1]

    # Static per-block shape plan (T shrinks because dilation=2 with pad=(tk-1)//2).
    cfgs = []
    t_cur = T0
    for (c_in, c_out, stride) in prep["block_meta"]:
        t_out = (t_cur + 2 * pad - _DIL * (tk - 1) - 1) // stride + 1
        cfgs.append((c_in, c_out, t_cur, t_out, stride))
        t_cur = t_out
    cfgs = tuple(cfgs)

    # NCTV -> per-sample (T*V, C): (t, v) on sublanes, channels on lanes.
    x_tvc = jnp.transpose(x, (0, 2, 3, 1)).reshape(N, T0 * V, C)

    inputs = [x_tvc, prep["bn_in_s"], prep["bn_in_b"]]
    in_specs = [pl.BlockSpec((None, T0 * V, C), lambda n: (n, 0, 0)),
                _const_spec(prep["bn_in_s"].shape),
                _const_spec(prep["bn_in_b"].shape)]
    for bp in prep["blocks"]:
        for name in ("a_t", "w_sgc", "b_sgc", "w_t", "b_t"):
            arr = bp[name]
            inputs.append(arr)
            in_specs.append(_const_spec(arr.shape))
    for name in ("w_fc", "b_fc", "w_fc1", "b_fc1", "w_fc2", "b_fc2",
                 "w_fc3", "b_fc3", "w_cls", "b_cls"):
        arr = prep["head"][name]
        inputs.append(arr)
        in_specs.append(_const_spec(arr.shape))

    max_cout = max(c[1] for c in cfgs)
    act_rows = max(c[3] for c in cfgs) * V
    sgc_rows = max(c[2] + 2 * pad for c in cfgs) * V
    head_T = cfgs[-1][3]

    kern = functools.partial(_fused_kernel, cfgs=cfgs, K=K, V=V, tk=tk,
                             pad=pad, head_T=head_T)
    score, cls = pl.pallas_call(
        kern,
        out_shape=(jax.ShapeDtypeStruct((N, 1, 1), jnp.float32),
                   jax.ShapeDtypeStruct((N, 1, nc), jnp.float32)),
        grid_spec=pltpu.PrefetchScalarGridSpec(
            num_scalar_prefetch=0,
            grid=(N,),
            in_specs=in_specs,
            out_specs=(pl.BlockSpec((1, 1, 1), lambda n: (n, 0, 0)),
                       pl.BlockSpec((1, 1, nc), lambda n: (n, 0, 0))),
            scratch_shapes=[pltpu.VMEM((act_rows, max_cout), jnp.bfloat16),
                            pltpu.VMEM((sgc_rows, max_cout), jnp.bfloat16)]),
        compiler_params=pltpu.CompilerParams(dimension_semantics=("parallel",)),
    )(*inputs)
    return score[:, 0, :], cls[:, 0, :]


# --------------------------------------------------------------------------------------
# Parameter construction (deterministic, torch-like raw params) and kernel-ready prep
# --------------------------------------------------------------------------------------
def make_graph_A(key, K, V):
    # TODO(synk): Graph(hop_size) is not provided; synthesize a deterministic
    # row-normalized adjacency stack with the same (K, V, V) shape/role.
    a = jax.random.uniform(key, (K, V, V), jnp.float32)
    a = (a > 0.7).astype(jnp.float32) + jnp.eye(V, dtype=jnp.float32)[None]
    return a / jnp.sum(a, axis=2, keepdims=True)


def _init_bn(key, n):
    k1, k2, k3, k4 = jax.random.split(key, 4)
    return dict(g=1.0 + 0.1 * jax.random.normal(k1, (n,), jnp.float32),
                b=0.1 * jax.random.normal(k2, (n,), jnp.float32),
                m=0.05 * jax.random.normal(k3, (n,), jnp.float32),
                v=1.0 + 0.1 * jax.random.uniform(k4, (n,), jnp.float32))


def init_block_raw(key, c_in, c_out, K, V, tk, stride):
    ks = jax.random.split(key, 6)
    return dict(
        w_sgc=0.1 * jax.random.normal(ks[0], (K * c_out, c_in), jnp.float32),
        b_sgc=0.1 * jax.random.normal(ks[1], (K * c_out,), jnp.float32),
        M=jnp.ones((K, V, V), jnp.float32),
        bn1=_init_bn(ks[2], c_out),
        w_t=(0.1 / tk) * jax.random.normal(ks[3], (c_out, c_out, tk, 1), jnp.float32),
        b_t=0.1 * jax.random.normal(ks[4], (c_out,), jnp.float32),
        bn2=_init_bn(ks[5], c_out),
        stride=stride,
    )


def init_head_raw(key, num_classes):
    ks = jax.random.split(key, 5)

    def lin(k, i, o):
        kw, kb = jax.random.split(k)
        return (0.1 * jax.random.normal(kw, (o, i), jnp.float32),
                0.1 * jax.random.normal(kb, (o,), jnp.float32))

    fc_w, fc_b = lin(ks[0], 64, 64)
    fc1_w, fc1_b = lin(ks[1], 64, 64)
    fc2_w, fc2_b = lin(ks[2], 64, 64)
    fc3_w, fc3_b = lin(ks[3], 64, 1)
    cls_w, cls_b = lin(ks[4], 64, num_classes)
    return dict(fc_w=fc_w, fc_b=fc_b, fc1_w=fc1_w, fc1_b=fc1_b, fc2_w=fc2_w,
                fc2_b=fc2_b, fc3_w=fc3_w, fc3_b=fc3_b, cls_w=cls_w, cls_b=cls_b)


def init_raw_params(key, num_classes, in_channels, t_kernel_size, hop_size, V):
    K = hop_size + 1
    ks = jax.random.split(key, 9)
    plan = [(in_channels, 32, 1), (32, 64, 1), (64, 64, 1),
            (64, 128, 2), (128, 128, 1), (128, 64, 1)]
    blocks = [init_block_raw(ks[2 + i], ci, co, K, V, t_kernel_size, s)
              for i, (ci, co, s) in enumerate(plan)]
    return dict(A=make_graph_A(ks[0], K, V),
                t_kernel_size=t_kernel_size,
                bn_in=_init_bn(ks[1], V * in_channels),
                blocks=blocks,
                head=init_head_raw(ks[8], num_classes))


def prepare_params(raw):
    """Fold eval-mode BN into conv weights/biases, transpose for the (T*V, C) layout,
    pre-combine the sgc conv bias with the graph column sums, cast matmul operands bf16."""
    A = raw["A"]
    K, V, _ = A.shape
    tk = raw["t_kernel_size"]
    c0 = raw["blocks"][0]["w_sgc"].shape[1]

    s_in, b_in = _fold_bn(raw["bn_in"]["g"], raw["bn_in"]["b"],
                          raw["bn_in"]["m"], raw["bn_in"]["v"])
    prep = dict(K=K, t_kernel_size=tk,
                bn_in_s=s_in.reshape(V, c0), bn_in_b=b_in.reshape(V, c0))

    blocks, meta = [], []
    for rp in raw["blocks"]:
        c_out = rp["b_t"].shape[0]
        c_in = rp["w_sgc"].shape[1]
        AM = A * rp["M"]
        s1, b1 = _fold_bn(rp["bn1"]["g"], rp["bn1"]["b"], rp["bn1"]["m"], rp["bn1"]["v"])
        s2, b2 = _fold_bn(rp["bn2"]["g"], rp["bn2"]["b"], rp["bn2"]["m"], rp["bn2"]["v"])
        w = rp["w_sgc"].reshape(K, c_out, c_in) * s1[None, :, None]
        colsum = jnp.sum(AM, axis=1)                                        # (K, V) over v
        beta = jnp.einsum("ko,kw->wo", rp["b_sgc"].reshape(K, c_out), colsum)
        wt = jnp.transpose(rp["w_t"][:, :, :, 0], (2, 1, 0)) * s2[None, None, :]
        blocks.append(dict(
            a_t=jnp.transpose(AM, (0, 2, 1)).astype(jnp.bfloat16),          # (K, V, V)
            w_sgc=jnp.transpose(w, (0, 2, 1)).astype(jnp.bfloat16),         # (K, c_in, c_out)
            b_sgc=(beta * s1[None, :] + b1[None, :]).astype(jnp.float32),   # (V, c_out)
            w_t=wt.astype(jnp.bfloat16),                                    # (tk, c_out, c_out)
            b_t=(s2 * rp["b_t"] + b2).reshape(1, c_out).astype(jnp.float32)))
        meta.append((c_in, c_out, rp["stride"]))
    prep["blocks"] = blocks
    prep["block_meta"] = tuple(meta)

    hd = raw["head"]

    def _lin_prep(w, b):
        return w.T.astype(jnp.bfloat16), b.reshape(1, -1).astype(jnp.float32)

    w_fc, b_fc = _lin_prep(hd["fc_w"], hd["fc_b"])
    w_fc1, b_fc1 = _lin_prep(hd["fc1_w"], hd["fc1_b"])
    w_fc2, b_fc2 = _lin_prep(hd["fc2_w"], hd["fc2_b"])
    w_fc3, b_fc3 = _lin_prep(hd["fc3_w"], hd["fc3_b"])
    w_cls, b_cls = _lin_prep(hd["cls_w"], hd["cls_b"])
    prep["head"] = dict(w_fc=w_fc, b_fc=b_fc, w_fc1=w_fc1, b_fc1=b_fc1,
                        w_fc2=w_fc2, b_fc2=b_fc2, w_fc3=w_fc3, b_fc3=b_fc3,
                        w_cls=w_cls, b_cls=b_cls)
    return prep


# --------------------------------------------------------------------------------------
# Pure-JAX f32 reference (mirrors the PyTorch forward in NCTV layout) for verification
# --------------------------------------------------------------------------------------
def _ref_model(x, raw):
    N, C, T, V = x.shape
    A = raw["A"]
    K = A.shape[0]
    tk = raw["t_kernel_size"]
    pad = (tk - 1) // 2

    s_in, b_in = _fold_bn(raw["bn_in"]["g"], raw["bn_in"]["b"],
                          raw["bn_in"]["m"], raw["bn_in"]["v"])
    S = s_in.reshape(V, C)
    B = b_in.reshape(V, C)
    h = x * S.T[None, :, None, :] + B.T[None, :, None, :]

    for rp in raw["blocks"]:
        c_out = rp["b_t"].shape[0]
        stride = rp["stride"]
        Tc = h.shape[2]
        AM = A * rp["M"]
        y = jnp.einsum("oc,nctv->notv", rp["w_sgc"], h) + rp["b_sgc"][None, :, None, None]
        y = y.reshape(N, K, c_out, Tc, V)
        z = jnp.einsum("nkctv,kvw->nctw", y, AM)
        s1, b1 = _fold_bn(rp["bn1"]["g"], rp["bn1"]["b"], rp["bn1"]["m"], rp["bn1"]["v"])
        z = jax.nn.relu(z * s1[None, :, None, None] + b1[None, :, None, None])
        zp = jnp.pad(z, ((0, 0), (0, 0), (pad, pad), (0, 0)))
        T_out = (Tc + 2 * pad - _DIL * (tk - 1) - 1) // stride + 1
        acc = jnp.broadcast_to(rp["b_t"][None, :, None, None],
                               (N, c_out, T_out, V)).astype(jnp.float32)
        for dt in range(tk):
            idx = stride * jnp.arange(T_out) + _DIL * dt
            acc = acc + jnp.einsum("oc,nctv->notv", rp["w_t"][:, :, dt, 0], zp[:, :, idx, :])
        s2, b2 = _fold_bn(rp["bn2"]["g"], rp["bn2"]["b"], rp["bn2"]["m"], rp["bn2"]["v"])
        h = jax.nn.relu(acc * s2[None, :, None, None] + b2[None, :, None, None])

    hd = raw["head"]
    pooled = jnp.mean(h, axis=(2, 3))                           # (N, 64)
    z = jnp.tanh(pooled @ hd["fc_w"].T + hd["fc_b"])
    z = jnp.tanh(z @ hd["fc1_w"].T + hd["fc1_b"])
    z = jnp.tanh(z @ hd["fc2_w"].T + hd["fc2_b"])
    score = jax.nn.sigmoid(z @ hd["fc3_w"].T + hd["fc3_b"])     # (N, 1)
    cls = pooled @ hd["cls_w"].T + hd["cls_b"]                  # (N, nc)
    return score, cls


if __name__ == "__main__":
    key = jax.random.PRNGKey(0)
    # T must be >= 17 so all six dilated temporal convs keep a positive time extent.
    N, C, T, V = 2, 4, 32, 16
    num_classes = 6
    t_kernel_size = 3
    hop_size = 2

    k_param, k_x = jax.random.split(key)
    raw = init_raw_params(k_param, num_classes, C, t_kernel_size, hop_size, V)
    prep = prepare_params(raw)

    x = jax.random.normal(k_x, (N, C, T, V), jnp.float32)

    score, cls = std_gcn_forward(x, prep)
    jax.block_until_ready((score, cls))

    ref_score, ref_cls = _ref_model(x, raw)
    assert score.shape == (N, 1) and cls.shape == (N, num_classes)
    # Kernel uses bf16 MXU operands (f32 accumulation); reference is pure f32.
    assert jnp.allclose(score, ref_score, atol=2e-2, rtol=2e-2)
    assert jnp.allclose(cls, ref_cls, atol=2e-2, rtol=2e-2)

    print("KERNEL_OK")
</pallas_src>

<mosaic_0001>
module attributes {stable_mosaic.version = 11 : i64} {
  func.func @_fused_kernel(%arg0: i32, %arg1: memref<1x512x4xf32, #tpu.memory_space<vmem>>, %arg2: memref<16x4xf32, #tpu.memory_space<vmem>>, %arg3: memref<16x4xf32, #tpu.memory_space<vmem>>, %arg4: memref<3x16x16xbf16, #tpu.memory_space<vmem>>, %arg5: memref<3x4x32xbf16, #tpu.memory_space<vmem>>, %arg6: memref<16x32xf32, #tpu.memory_space<vmem>>, %arg7: memref<3x32x32xbf16, #tpu.memory_space<vmem>>, %arg8: memref<1x32xf32, #tpu.memory_space<vmem>>, %arg9: memref<3x16x16xbf16, #tpu.memory_space<vmem>>, %arg10: memref<3x32x64xbf16, #tpu.memory_space<vmem>>, %arg11: memref<16x64xf32, #tpu.memory_space<vmem>>, %arg12: memref<3x64x64xbf16, #tpu.memory_space<vmem>>, %arg13: memref<1x64xf32, #tpu.memory_space<vmem>>, %arg14: memref<3x16x16xbf16, #tpu.memory_space<vmem>>, %arg15: memref<3x64x64xbf16, #tpu.memory_space<vmem>>, %arg16: memref<16x64xf32, #tpu.memory_space<vmem>>, %arg17: memref<3x64x64xbf16, #tpu.memory_space<vmem>>, %arg18: memref<1x64xf32, #tpu.memory_space<vmem>>, %arg19: memref<3x16x16xbf16, #tpu.memory_space<vmem>>, %arg20: memref<3x64x128xbf16, #tpu.memory_space<vmem>>, %arg21: memref<16x128xf32, #tpu.memory_space<vmem>>, %arg22: memref<3x128x128xbf16, #tpu.memory_space<vmem>>, %arg23: memref<1x128xf32, #tpu.memory_space<vmem>>, %arg24: memref<3x16x16xbf16, #tpu.memory_space<vmem>>, %arg25: memref<3x128x128xbf16, #tpu.memory_space<vmem>>, %arg26: memref<16x128xf32, #tpu.memory_space<vmem>>, %arg27: memref<3x128x128xbf16, #tpu.memory_space<vmem>>, %arg28: memref<1x128xf32, #tpu.memory_space<vmem>>, %arg29: memref<3x16x16xbf16, #tpu.memory_space<vmem>>, %arg30: memref<3x128x64xbf16, #tpu.memory_space<vmem>>, %arg31: memref<16x64xf32, #tpu.memory_space<vmem>>, %arg32: memref<3x64x64xbf16, #tpu.memory_space<vmem>>, %arg33: memref<1x64xf32, #tpu.memory_space<vmem>>, %arg34: memref<64x64xbf16, #tpu.memory_space<vmem>>, %arg35: memref<1x64xf32, #tpu.memory_space<vmem>>, %arg36: memref<64x64xbf16, #tpu.memory_space<vmem>>, %arg37: memref<1x64xf32, #tpu.memory_space<vmem>>, %arg38: memref<64x64xbf16, #tpu.memory_space<vmem>>, %arg39: memref<1x64xf32, #tpu.memory_space<vmem>>, %arg40: memref<64x1xbf16, #tpu.memory_space<vmem>>, %arg41: memref<1x1xf32, #tpu.memory_space<vmem>>, %arg42: memref<64x6xbf16, #tpu.memory_space<vmem>>, %arg43: memref<1x6xf32, #tpu.memory_space<vmem>>, %arg44: memref<1x1x1xf32, #tpu.memory_space<vmem>>, %arg45: memref<1x1x6xf32, #tpu.memory_space<vmem>>, %arg46: memref<480x128xbf16, #tpu.memory_space<vmem>>, %arg47: memref<544x128xbf16, #tpu.memory_space<vmem>>) attributes {dimension_semantics = [#tpu.dimension_semantics<parallel>], iteration_bounds = array<i64: 2>, scalar_prefetch = 0 : i64, scratch_operands = 2 : i64, tpu.core_type = #tpu.core_type<tc>, window_params = [{transform_indices = @transform_0, window_bounds = array<i64: 1, 512, 4>}, {pipeline_mode = #tpu.pipeline_mode<synchronous>, transform_indices = @transform_1, window_bounds = array<i64: 16, 4>}, {pipeline_mode = #tpu.pipeline_mode<synchronous>, transform_indices = @transform_2, window_bounds = array<i64: 16, 4>}, {pipeline_mode = #tpu.pipeline_mode<synchronous>, transform_indices = @transform_3, window_bounds = array<i64: 3, 16, 16>}, {pipeline_mode = #tpu.pipeline_mode<synchronous>, transform_indices = @transform_4, window_bounds = array<i64: 3, 4, 32>}, {pipeline_mode = #tpu.pipeline_mode<synchronous>, transform_indices = @transform_5, window_bounds = array<i64: 16, 32>}, {pipeline_mode = #tpu.pipeline_mode<synchronous>, transform_indices = @transform_6, window_bounds = array<i64: 3, 32, 32>}, {pipeline_mode = #tpu.pipeline_mode<synchronous>, transform_indices = @transform_7, window_bounds = array<i64: 1, 32>}, {pipeline_mode = #tpu.pipeline_mode<synchronous>, transform_indices = @transform_8, window_bounds = array<i64: 3, 16, 16>}, {pipeline_mode = #tpu.pipeline_mode<synchronous>, transform_indices = @transform_9, window_bounds = array<i64: 3, 32, 64>}, {pipeline_mode = #tpu.pipeline_mode<synchronous>, transform_indices = @transform_10, window_bounds = array<i64: 16, 64>}, {pipeline_mode = #tpu.pipeline_mode<synchronous>, transform_indices = @transform_11, window_bounds = array<i64: 3, 64, 64>}, {pipeline_mode = #tpu.pipeline_mode<synchronous>, transform_indices = @transform_12, window_bounds = array<i64: 1, 64>}, {pipeline_mode = #tpu.pipeline_mode<synchronous>, transform_indices = @transform_13, window_bounds = array<i64: 3, 16, 16>}, {pipeline_mode = #tpu.pipeline_mode<synchronous>, transform_indices = @transform_14, window_bounds = array<i64: 3, 64, 64>}, {pipeline_mode = #tpu.pipeline_mode<synchronous>, transform_indices = @transform_15, window_bounds = array<i64: 16, 64>}, {pipeline_mode = #tpu.pipeline_mode<synchronous>, transform_indices = @transform_16, window_bounds = array<i64: 3, 64, 64>}, {pipeline_mode = #tpu.pipeline_mode<synchronous>, transform_indices = @transform_17, window_bounds = array<i64: 1, 64>}, {pipeline_mode = #tpu.pipeline_mode<synchronous>, transform_indices = @transform_18, window_bounds = array<i64: 3, 16, 16>}, {pipeline_mode = #tpu.pipeline_mode<synchronous>, transform_indices = @transform_19, window_bounds = array<i64: 3, 64, 128>}, {pipeline_mode = #tpu.pipeline_mode<synchronous>, transform_indices = @transform_20, window_bounds = array<i64: 16, 128>}, {pipeline_mode = #tpu.pipeline_mode<synchronous>, transform_indices = @transform_21, window_bounds = array<i64: 3, 128, 128>}, {pipeline_mode = #tpu.pipeline_mode<synchronous>, transform_indices = @transform_22, window_bounds = array<i64: 1, 128>}, {pipeline_mode = #tpu.pipeline_mode<synchronous>, transform_indices = @transform_23, window_bounds = array<i64: 3, 16, 16>}, {pipeline_mode = #tpu.pipeline_mode<synchronous>, transform_indices = @transform_24, window_bounds = array<i64: 3, 128, 128>}, {pipeline_mode = #tpu.pipeline_mode<synchronous>, transform_indices = @transform_25, window_bounds = array<i64: 16, 128>}, {pipeline_mode = #tpu.pipeline_mode<synchronous>, transform_indices = @transform_26, window_bounds = array<i64: 3, 128, 128>}, {pipeline_mode = #tpu.pipeline_mode<synchronous>, transform_indices = @transform_27, window_bounds = array<i64: 1, 128>}, {pipeline_mode = #tpu.pipeline_mode<synchronous>, transform_indices = @transform_28, window_bounds = array<i64: 3, 16, 16>}, {pipeline_mode = #tpu.pipeline_mode<synchronous>, transform_indices = @transform_29, window_bounds = array<i64: 3, 128, 64>}, {pipeline_mode = #tpu.pipeline_mode<synchronous>, transform_indices = @transform_30, window_bounds = array<i64: 16, 64>}, {pipeline_mode = #tpu.pipeline_mode<synchronous>, transform_indices = @transform_31, window_bounds = array<i64: 3, 64, 64>}, {pipeline_mode = #tpu.pipeline_mode<synchronous>, transform_indices = @transform_32, window_bounds = array<i64: 1, 64>}, {pipeline_mode = #tpu.pipeline_mode<synchronous>, transform_indices = @transform_33, window_bounds = array<i64: 64, 64>}, {pipeline_mode = #tpu.pipeline_mode<synchronous>, transform_indices = @transform_34, window_bounds = array<i64: 1, 64>}, {pipeline_mode = #tpu.pipeline_mode<synchronous>, transform_indices = @transform_35, window_bounds = array<i64: 64, 64>}, {pipeline_mode = #tpu.pipeline_mode<synchronous>, transform_indices = @transform_36, window_bounds = array<i64: 1, 64>}, {pipeline_mode = #tpu.pipeline_mode<synchronous>, transform_indices = @transform_37, window_bounds = array<i64: 64, 64>}, {pipeline_mode = #tpu.pipeline_mode<synchronous>, transform_indices = @transform_38, window_bounds = array<i64: 1, 64>}, {pipeline_mode = #tpu.pipeline_mode<synchronous>, transform_indices = @transform_39, window_bounds = array<i64: 64, 1>}, {pipeline_mode = #tpu.pipeline_mode<synchronous>, transform_indices = @transform_40, window_bounds = array<i64: 1, 1>}, {pipeline_mode = #tpu.pipeline_mode<synchronous>, transform_indices = @transform_41, window_bounds = array<i64: 64, 6>}, {pipeline_mode = #tpu.pipeline_mode<synchronous>, transform_indices = @transform_42, window_bounds = array<i64: 1, 6>}, {transform_indices = @transform_43, window_bounds = array<i64: 1, 1, 1>}, {transform_indices = @transform_44, window_bounds = array<i64: 1, 1, 6>}]} {
    %c0 = arith.constant 0 : index
    %c0_0 = arith.constant 0 : index
    %0 = vector.load %arg2[%c0, %c0_0] : memref<16x4xf32, #tpu.memory_space<vmem>>, vector<16x4xf32>
    %c0_1 = arith.constant 0 : index
    %c0_2 = arith.constant 0 : index
    %1 = vector.load %arg3[%c0_1, %c0_2] : memref<16x4xf32, #tpu.memory_space<vmem>>, vector<16x4xf32>
    %c0_3 = arith.constant 0 : index
    %c0_4 = arith.constant 0 : index
    %c0_5 = arith.constant 0 : index
    %2 = vector.load %arg4[%c0_3, %c0_4, %c0_5] : memref<3x16x16xbf16, #tpu.memory_space<vmem>>, vector<1x16x16xbf16>
    %3 = vector.shape_cast %2 : vector<1x16x16xbf16> to vector<16x16xbf16>
    %c1 = arith.constant 1 : index
    %c0_6 = arith.constant 0 : index
    %c0_7 = arith.constant 0 : index
    %4 = vector.load %arg4[%c1, %c0_6, %c0_7] : memref<3x16x16xbf16, #tpu.memory_space<vmem>>, vector<1x16x16xbf16>
    %5 = vector.shape_cast %4 : vector<1x16x16xbf16> to vector<16x16xbf16>
    %c2 = arith.constant 2 : index
    %c0_8 = arith.constant 0 : index
    %c0_9 = arith.constant 0 : index
    %6 = vector.load %arg4[%c2, %c0_8, %c0_9] : memref<3x16x16xbf16, #tpu.memory_space<vmem>>, vector<1x16x16xbf16>
    %7 = vector.shape_cast %6 : vector<1x16x16xbf16> to vector<16x16xbf16>
    %c0_10 = arith.constant 0 : index
    %c0_11 = arith.constant 0 : index
    %c0_12 = arith.constant 0 : index
    %8 = vector.load %arg5[%c0_10, %c0_11, %c0_12] : memref<3x4x32xbf16, #tpu.memory_space<vmem>>, vector<1x4x32xbf16>
    %9 = vector.shape_cast %8 : vector<1x4x32xbf16> to vector<4x32xbf16>
    %c1_13 = arith.constant 1 : index
    %c0_14 = arith.constant 0 : index
    %c0_15 = arith.constant 0 : index
    %10 = vector.load %arg5[%c1_13, %c0_14, %c0_15] : memref<3x4x32xbf16, #tpu.memory_space<vmem>>, vector<1x4x32xbf16>
    %11 = vector.shape_cast %10 : vector<1x4x32xbf16> to vector<4x32xbf16>
    %c2_16 = arith.constant 2 : index
    %c0_17 = arith.constant 0 : index
    %c0_18 = arith.constant 0 : index
    %12 = vector.load %arg5[%c2_16, %c0_17, %c0_18] : memref<3x4x32xbf16, #tpu.memory_space<vmem>>, vector<1x4x32xbf16>
    %13 = vector.shape_cast %12 : vector<1x4x32xbf16> to vector<4x32xbf16>
    %c0_19 = arith.constant 0 : index
    %c0_20 = arith.constant 0 : index
    %14 = vector.load %arg6[%c0_19, %c0_20] : memref<16x32xf32, #tpu.memory_space<vmem>>, vector<16x32xf32>
    %cst = arith.constant 0.000000e+00 : bf16
    %15 = vector.broadcast %cst : bf16 to vector<16x32xbf16>
    %c0_21 = arith.constant 0 : index
    %c0_22 = arith.constant 0 : index
    %16 = vector.load %arg47[%c0_21, %c0_22] : memref<544x128xbf16, #tpu.memory_space<vmem>>, vector<16x32xbf16>
    tpu.vector_store %arg47[%c0_21, %c0_22], %15 {strides = array<i32>} : memref<544x128xbf16, #tpu.memory_space<vmem>>, vector<16x32xbf16>,
    %c528 = arith.constant 528 : index
    %c0_23 = arith.constant 0 : index
    %17 = vector.load %arg47[%c528, %c0_23] : memref<544x128xbf16, #tpu.memory_space<vmem>>, vector<16x32xbf16>
    tpu.vector_store %arg47[%c528, %c0_23], %15 {strides = array<i32>} : memref<544x128xbf16, #tpu.memory_space<vmem>>, vector<16x32xbf16>,
    %c0_i32 = arith.constant 0 : i32
    %c32_i32 = arith.constant 32 : i32
    %18 = arith.addi %c0_i32, %c32_i32 : i32
    %c1_i32 = arith.constant 1 : i32
    scf.for %arg48 = %c0_i32 to %18 step %c1_i32  : i32 {
      %c16_i32 = arith.constant 16 : i32
      %209 = arith.muli %arg48, %c16_i32 : i32
      %210 = tpu.assume_multiple %209, 16 : i32
      %c0_285 = arith.constant 0 : index
      %211 = arith.index_cast %210 : i32 to index
      %c0_286 = arith.constant 0 : index
      %212 = vector.load %arg1[%c0_285, %211, %c0_286] : memref<1x512x4xf32, #tpu.memory_space<vmem>>, vector<1x16x4xf32>
      %213 = vector.shape_cast %212 : vector<1x16x4xf32> to vector<16x4xf32>
      %214 = arith.mulf %213, %0 : vector<16x4xf32>
      %215 = arith.addf %214, %1 : vector<16x4xf32>
      %216 = arith.truncf %215 : vector<16x4xf32> to vector<16x4xbf16>
      %cst_287 = arith.constant dense<0.000000e+00> : vector<16x4xf32>
      %217 = tpu.matmul %3, %216, %cst_287 {dimension_numbers = #tpu.dot_dimension_numbers<[1], [0], [0], [1], [0, 0, 1, 1], [], []>} : vector<16x16xbf16>, vector<16x4xbf16>, vector<16x4xf32> -> vector<16x4xf32>
      %218 = arith.truncf %217 : vector<16x4xf32> to vector<16x4xbf16>
      %cst_288 = arith.constant dense<0.000000e+00> : vector<16x32xf32>
      %219 = tpu.matmul %218, %9, %cst_288 {dimension_numbers = #tpu.dot_dimension_numbers<[1], [0], [0], [1], [0, 0, 1, 1], [], []>} : vector<16x4xbf16>, vector<4x32xbf16>, vector<16x32xf32> -> vector<16x32xf32>
      %220 = arith.addf %14, %219 : vector<16x32xf32>
      %cst_289 = arith.constant dense<0.000000e+00> : vector<16x4xf32>
      %221 = tpu.matmul %5, %216, %cst_289 {dimension_numbers = #tpu.dot_dimension_numbers<[1], [0], [0], [1], [0, 0, 1, 1], [], []>} : vector<16x16xbf16>, vector<16x4xbf16>, vector<16x4xf32> -> vector<16x4xf32>
      %222 = arith.truncf %221 : vector<16x4xf32> to vector<16x4xbf16>
      %cst_290 = arith.constant dense<0.000000e+00> : vector<16x32xf32>
      %223 = tpu.matmul %222, %11, %cst_290 {dimension_numbers = #tpu.dot_dimension_numbers<[1], [0], [0], [1], [0, 0, 1, 1], [], []>} : vector<16x4xbf16>, vector<4x32xbf16>, vector<16x32xf32> -> vector<16x32xf32>
      %224 = arith.addf %220, %223 : vector<16x32xf32>
      %cst_291 = arith.constant dense<0.000000e+00> : vector<16x4xf32>
      %225 = tpu.matmul %7, %216, %cst_291 {dimension_numbers = #tpu.dot_dimension_numbers<[1], [0], [0], [1], [0, 0, 1, 1], [], []>} : vector<16x16xbf16>, vector<16x4xbf16>, vector<16x4xf32> -> vector<16x4xf32>
      %226 = arith.truncf %225 : vector<16x4xf32> to vector<16x4xbf16>
      %cst_292 = arith.constant dense<0.000000e+00> : vector<16x32xf32>
      %227 = tpu.matmul %226, %13, %cst_292 {dimension_numbers = #tpu.dot_dimension_numbers<[1], [0], [0], [1], [0, 0, 1, 1], [], []>} : vector<16x4xbf16>, vector<4x32xbf16>, vector<16x32xf32> -> vector<16x32xf32>
      %228 = arith.addf %224, %227 : vector<16x32xf32>
      %c1_i32_293 = arith.constant 1 : i32
      %229 = arith.addi %c1_i32_293, %arg48 : i32
      %c16_i32_294 = arith.constant 16 : i32
      %230 = arith.muli %229, %c16_i32_294 : i32
      %231 = tpu.assume_multiple %230, 16 : i32
      %cst_295 = arith.constant 0.000000e+00 : f32
      %232 = vector.broadcast %cst_295 : f32 to vector<16x32xf32>
      %233 = arith.maximumf %228, %232 : vector<16x32xf32>
      %234 = arith.truncf %233 : vector<16x32xf32> to vector<16x32xbf16>
      %235 = arith.index_cast %231 : i32 to index
      %c0_296 = arith.constant 0 : index
      %236 = vector.load %arg47[%235, %c0_296] : memref<544x128xbf16, #tpu.memory_space<vmem>>, vector<16x32xbf16>
      tpu.vector_store %arg47[%235, %c0_296], %234 {strides = array<i32>} : memref<544x128xbf16, #tpu.memory_space<vmem>>, vector<16x32xbf16>,
    }
    %c32_i32_24 = arith.constant 32 : i32
    %c0_25 = arith.constant 0 : index
    %c0_26 = arith.constant 0 : index
    %c0_27 = arith.constant 0 : index
    %19 = vector.load %arg7[%c0_25, %c0_26, %c0_27] : memref<3x32x32xbf16, #tpu.memory_space<vmem>>, vector<1x32x32xbf16>
    %20 = vector.shape_cast %19 : vector<1x32x32xbf16> to vector<32x32xbf16>
    %c1_28 = arith.constant 1 : index
    %c0_29 = arith.constant 0 : index
    %c0_30 = arith.constant 0 : index
    %21 = vector.load %arg7[%c1_28, %c0_29, %c0_30] : memref<3x32x32xbf16, #tpu.memory_space<vmem>>, vector<1x32x32xbf16>
    %22 = vector.shape_cast %21 : vector<1x32x32xbf16> to vector<32x32xbf16>
    %c2_31 = arith.constant 2 : index
    %c0_32 = arith.constant 0 : index
    %c0_33 = arith.constant 0 : index
    %23 = vector.load %arg7[%c2_31, %c0_32, %c0_33] : memref<3x32x32xbf16, #tpu.memory_space<vmem>>, vector<1x32x32xbf16>
    %24 = vector.shape_cast %23 : vector<1x32x32xbf16> to vector<32x32xbf16>
    %c0_34 = arith.constant 0 : index
    %c0_35 = arith.constant 0 : index
    %25 = vector.load %arg8[%c0_34, %c0_35] : memref<1x32xf32, #tpu.memory_space<vmem>>, vector<1x32xf32>
    %26 = vector.shape_cast %25 : vector<1x32xf32> to vector<1x32xf32>
    %27 = vector.broadcast %26 : vector<1x32xf32> to vector<16x32xf32>
    %c0_i32_36 = arith.constant 0 : i32
    %c30_i32 = arith.constant 30 : i32
    %28 = arith.addi %c0_i32_36, %c30_i32 : i32
    %c1_i32_37 = arith.constant 1 : i32
    scf.for %arg48 = %c0_i32_36 to %28 step %c1_i32_37  : i32 {
      %c1_i32_285 = arith.constant 1 : i32
      %209 = arith.muli %arg48, %c1_i32_285 : i32
      %c16_i32 = arith.constant 16 : i32
      %210 = arith.muli %209, %c16_i32 : i32
      %211 = tpu.assume_multiple %210, 16 : i32
      %c0_i32_286 = arith.constant 0 : i32
      %212 = arith.addi %211, %c0_i32_286 : i32
      %213 = arith.index_cast %212 : i32 to index
      %c0_287 = arith.constant 0 : index
      %214 = vector.load %arg47[%213, %c0_287] : memref<544x128xbf16, #tpu.memory_space<vmem>>, vector<16x32xbf16>
      %cst_288 = arith.constant dense<0.000000e+00> : vector<16x32xf32>
      %215 = tpu.matmul %214, %20, %cst_288 {dimension_numbers = #tpu.dot_dimension_numbers<[1], [0], [0], [1], [0, 0, 1, 1], [], []>} : vector<16x32xbf16>, vector<32x32xbf16>, vector<16x32xf32> -> vector<16x32xf32>
      %216 = arith.addf %27, %215 : vector<16x32xf32>
      %c32_i32_289 = arith.constant 32 : i32
      %217 = arith.addi %211, %c32_i32_289 : i32
      %218 = arith.index_cast %217 : i32 to index
      %c0_290 = arith.constant 0 : index
      %219 = vector.load %arg47[%218, %c0_290] : memref<544x128xbf16, #tpu.memory_space<vmem>>, vector<16x32xbf16>
      %cst_291 = arith.constant dense<0.000000e+00> : vector<16x32xf32>
      %220 = tpu.matmul %219, %22, %cst_291 {dimension_numbers = #tpu.dot_dimension_numbers<[1], [0], [0], [1], [0, 0, 1, 1], [], []>} : vector<16x32xbf16>, vector<32x32xbf16>, vector<16x32xf32> -> vector<16x32xf32>
      %221 = arith.addf %216, %220 : vector<16x32xf32>
      %c64_i32 = arith.constant 64 : i32
      %222 = arith.addi %211, %c64_i32 : i32
      %223 = arith.index_cast %222 : i32 to index
      %c0_292 = arith.constant 0 : index
      %224 = vector.load %arg47[%223, %c0_292] : memref<544x128xbf16, #tpu.memory_space<vmem>>, vector<16x32xbf16>
      %cst_293 = arith.constant dense<0.000000e+00> : vector<16x32xf32>
      %225 = tpu.matmul %224, %24, %cst_293 {dimension_numbers = #tpu.dot_dimension_numbers<[1], [0], [0], [1], [0, 0, 1, 1], [], []>} : vector<16x32xbf16>, vector<32x32xbf16>, vector<16x32xf32> -> vector<16x32xf32>
      %226 = arith.addf %221, %225 : vector<16x32xf32>
      %c16_i32_294 = arith.constant 16 : i32
      %227 = arith.muli %arg48, %c16_i32_294 : i32
      %228 = tpu.assume_multiple %227, 16 : i32
      %cst_295 = arith.constant 0.000000e+00 : f32
      %229 = vector.broadcast %cst_295 : f32 to vector<16x32xf32>
      %230 = arith.maximumf %226, %229 : vector<16x32xf32>
      %231 = arith.truncf %230 : vector<16x32xf32> to vector<16x32xbf16>
      %232 = arith.index_cast %228 : i32 to index
      %c0_296 = arith.constant 0 : index
      %233 = vector.load %arg46[%232, %c0_296] : memref<480x128xbf16, #tpu.memory_space<vmem>>, vector<16x32xbf16>
      tpu.vector_store %arg46[%232, %c0_296], %231 {strides = array<i32>} : memref<480x128xbf16, #tpu.memory_space<vmem>>, vector<16x32xbf16>,
    }
    %c30_i32_38 = arith.constant 30 : i32
    %c0_39 = arith.constant 0 : index
    %c0_40 = arith.constant 0 : index
    %c0_41 = arith.constant 0 : index
    %29 = vector.load %arg9[%c0_39, %c0_40, %c0_41] : memref<3x16x16xbf16, #tpu.memory_space<vmem>>, vector<1x16x16xbf16>
    %30 = vector.shape_cast %29 : vector<1x16x16xbf16> to vector<16x16xbf16>
    %c1_42 = arith.constant 1 : index
    %c0_43 = arith.constant 0 : index
    %c0_44 = arith.constant 0 : index
    %31 = vector.load %arg9[%c1_42, %c0_43, %c0_44] : memref<3x16x16xbf16, #tpu.memory_space<vmem>>, vector<1x16x16xbf16>
    %32 = vector.shape_cast %31 : vector<1x16x16xbf16> to vector<16x16xbf16>
    %c2_45 = arith.constant 2 : index
    %c0_46 = arith.constant 0 : index
    %c0_47 = arith.constant 0 : index
    %33 = vector.load %arg9[%c2_45, %c0_46, %c0_47] : memref<3x16x16xbf16, #tpu.memory_space<vmem>>, vector<1x16x16xbf16>
    %34 = vector.shape_cast %33 : vector<1x16x16xbf16> to vector<16x16xbf16>
    %c0_48 = arith.constant 0 : index
    %c0_49 = arith.constant 0 : index
    %c0_50 = arith.constant 0 : index
    %35 = vector.load %arg10[%c0_48, %c0_49, %c0_50] : memref<3x32x64xbf16, #tpu.memory_space<vmem>>, vector<1x32x64xbf16>
    %36 = vector.shape_cast %35 : vector<1x32x64xbf16> to vector<32x64xbf16>
    %c1_51 = arith.constant 1 : index
    %c0_52 = arith.constant 0 : index
    %c0_53 = arith.constant 0 : index
    %37 = vector.load %arg10[%c1_51, %c0_52, %c0_53] : memref<3x32x64xbf16, #tpu.memory_space<vmem>>, vector<1x32x64xbf16>
    %38 = vector.shape_cast %37 : vector<1x32x64xbf16> to vector<32x64xbf16>
    %c2_54 = arith.constant 2 : index
    %c0_55 = arith.constant 0 : index
    %c0_56 = arith.constant 0 : index
    %39 = vector.load %arg10[%c2_54, %c0_55, %c0_56] : memref<3x32x64xbf16, #tpu.memory_space<vmem>>, vector<1x32x64xbf16>
    %40 = vector.shape_cast %39 : vector<1x32x64xbf16> to vector<32x64xbf16>
    %c0_57 = arith.constant 0 : index
    %c0_58 = arith.constant 0 : index
    %41 = vector.load %arg11[%c0_57, %c0_58] : memref<16x64xf32, #tpu.memory_space<vmem>>, vector<16x64xf32>
    %cst_59 = arith.constant 0.000000e+00 : bf16
    %42 = vector.broadcast %cst_59 : bf16 to vector<16x64xbf16>
    %c0_60 = arith.constant 0 : index
    %c0_61 = arith.constant 0 : index
    %43 = vector.load %arg47[%c0_60, %c0_61] : memref<544x128xbf16, #tpu.memory_space<vmem>>, vector<16x64xbf16>
    tpu.vector_store %arg47[%c0_60, %c0_61], %42 {strides = array<i32>} : memref<544x128xbf16, #tpu.memory_space<vmem>>, vector<16x64xbf16>,
    %c496 = arith.constant 496 : index
    %c0_62 = arith.constant 0 : index
    %44 = vector.load %arg47[%c496, %c0_62] : memref<544x128xbf16, #tpu.memory_space<vmem>>, vector<16x64xbf16>
    tpu.vector_store %arg47[%c496, %c0_62], %42 {strides = array<i32>} : memref<544x128xbf16, #tpu.memory_space<vmem>>, vector<16x64xbf16>,
    %c0_i32_63 = arith.constant 0 : i32
    %c30_i32_64 = arith.constant 30 : i32
    %45 = arith.addi %c0_i32_63, %c30_i32_64 : i32
    %c1_i32_65 = arith.constant 1 : i32
    scf.for %arg48 = %c0_i32_63 to %45 step %c1_i32_65  : i32 {
      %c16_i32 = arith.constant 16 : i32
      %209 = arith.muli %arg48, %c16_i32 : i32
      %210 = tpu.assume_multiple %209, 16 : i32
      %211 = arith.index_cast %210 : i32 to index
      %c0_285 = arith.constant 0 : index
      %212 = vector.load %arg46[%211, %c0_285] : memref<480x128xbf16, #tpu.memory_space<vmem>>, vector<16x32xbf16>
      %cst_286 = arith.constant dense<0.000000e+00> : vector<16x32xf32>
      %213 = tpu.matmul %30, %212, %cst_286 {dimension_numbers = #tpu.dot_dimension_numbers<[1], [0], [0], [1], [0, 0, 1, 1], [], []>} : vector<16x16xbf16>, vector<16x32xbf16>, vector<16x32xf32> -> vector<16x32xf32>
      %214 = arith.truncf %213 : vector<16x32xf32> to vector<16x32xbf16>
      %cst_287 = arith.constant dense<0.000000e+00> : vector<16x64xf32>
      %215 = tpu.matmul %214, %36, %cst_287 {dimension_numbers = #tpu.dot_dimension_numbers<[1], [0], [0], [1], [0, 0, 1, 1], [], []>} : vector<16x32xbf16>, vector<32x64xbf16>, vector<16x64xf32> -> vector<16x64xf32>
      %216 = arith.addf %41, %215 : vector<16x64xf32>
      %cst_288 = arith.constant dense<0.000000e+00> : vector<16x32xf32>
      %217 = tpu.matmul %32, %212, %cst_288 {dimension_numbers = #tpu.dot_dimension_numbers<[1], [0], [0], [1], [0, 0, 1, 1], [], []>} : vector<16x16xbf16>, vector<16x32xbf16>, vector<16x32xf32> -> vector<16x32xf32>
      %218 = arith.truncf %217 : vector<16x32xf32> to vector<16x32xbf16>
      %cst_289 = arith.constant dense<0.000000e+00> : vector<16x64xf32>
      %219 = tpu.matmul %218, %38, %cst_289 {dimension_numbers = #tpu.dot_dimension_numbers<[1], [0], [0], [1], [0, 0, 1, 1], [], []>} : vector<16x32xbf16>, vector<32x64xbf16>, vector<16x64xf32> -> vector<16x64xf32>
      %220 = arith.addf %216, %219 : vector<16x64xf32>
      %cst_290 = arith.constant dense<0.000000e+00> : vector<16x32xf32>
      %221 = tpu.matmul %34, %212, %cst_290 {dimension_numbers = #tpu.dot_dimension_numbers<[1], [0], [0], [1], [0, 0, 1, 1], [], []>} : vector<16x16xbf16>, vector<16x32xbf16>, vector<16x32xf32> -> vector<16x32xf32>
      %222 = arith.truncf %221 : vector<16x32xf32> to vector<16x32xbf16>
      %cst_291 = arith.constant dense<0.000000e+00> : vector<16x64xf32>
      %223 = tpu.matmul %222, %40, %cst_291 {dimension_numbers = #tpu.dot_dimension_numbers<[1], [0], [0], [1], [0, 0, 1, 1], [], []>} : vector<16x32xbf16>, vector<32x64xbf16>, vector<16x64xf32> -> vector<16x64xf32>
      %224 = arith.addf %220, %223 : vector<16x64xf32>
      %c1_i32_292 = arith.constant 1 : i32
      %225 = arith.addi %c1_i32_292, %arg48 : i32
      %c16_i32_293 = arith.constant 16 : i32
      %226 = arith.muli %225, %c16_i32_293 : i32
      %227 = tpu.assume_multiple %226, 16 : i32
      %cst_294 = arith.constant 0.000000e+00 : f32
      %228 = vector.broadcast %cst_294 : f32 to vector<16x64xf32>
      %229 = arith.maximumf %224, %228 : vector<16x64xf32>
      %230 = arith.truncf %229 : vector<16x64xf32> to vector<16x64xbf16>
      %231 = arith.index_cast %227 : i32 to index
      %c0_295 = arith.constant 0 : index
      %232 = vector.load %arg47[%231, %c0_295] : memref<544x128xbf16, #tpu.memory_space<vmem>>, vector<16x64xbf16>
      tpu.vector_store %arg47[%231, %c0_295], %230 {strides = array<i32>} : memref<544x128xbf16, #tpu.memory_space<vmem>>, vector<16x64xbf16>,
    }
    %c30_i32_66 = arith.constant 30 : i32
    %c0_67 = arith.constant 0 : index
    %c0_68 = arith.constant 0 : index
    %c0_69 = arith.constant 0 : index
    %46 = vector.load %arg12[%c0_67, %c0_68, %c0_69] : memref<3x64x64xbf16, #tpu.memory_space<vmem>>, vector<1x64x64xbf16>
    %47 = vector.shape_cast %46 : vector<1x64x64xbf16> to vector<64x64xbf16>
    %c1_70 = arith.constant 1 : index
    %c0_71 = arith.constant 0 : index
    %c0_72 = arith.constant 0 : index
    %48 = vector.load %arg12[%c1_70, %c0_71, %c0_72] : memref<3x64x64xbf16, #tpu.memory_space<vmem>>, vector<1x64x64xbf16>
    %49 = vector.shape_cast %48 : vector<1x64x64xbf16> to vector<64x64xbf16>
    %c2_73 = arith.constant 2 : index
    %c0_74 = arith.constant 0 : index
    %c0_75 = arith.constant 0 : index
    %50 = vector.load %arg12[%c2_73, %c0_74, %c0_75] : memref<3x64x64xbf16, #tpu.memory_space<vmem>>, vector<1x64x64xbf16>
    %51 = vector.shape_cast %50 : vector<1x64x64xbf16> to vector<64x64xbf16>
    %c0_76 = arith.constant 0 : index
    %c0_77 = arith.constant 0 : index
    %52 = vector.load %arg13[%c0_76, %c0_77] : memref<1x64xf32, #tpu.memory_space<vmem>>, vector<1x64xf32>
    %53 = vector.shape_cast %52 : vector<1x64xf32> to vector<1x64xf32>
    %54 = vector.broadcast %53 : vector<1x64xf32> to vector<16x64xf32>
    %c0_i32_78 = arith.constant 0 : i32
    %c28_i32 = arith.constant 28 : i32
    %55 = arith.addi %c0_i32_78, %c28_i32 : i32
    %c1_i32_79 = arith.constant 1 : i32
    scf.for %arg48 = %c0_i32_78 to %55 step %c1_i32_79  : i32 {
      %c1_i32_285 = arith.constant 1 : i32
      %209 = arith.muli %arg48, %c1_i32_285 : i32
      %c16_i32 = arith.constant 16 : i32
      %210 = arith.muli %209, %c16_i32 : i32
      %211 = tpu.assume_multiple %210, 16 : i32
      %c0_i32_286 = arith.constant 0 : i32
      %212 = arith.addi %211, %c0_i32_286 : i32
      %213 = arith.index_cast %212 : i32 to index
      %c0_287 = arith.constant 0 : index
      %214 = vector.load %arg47[%213, %c0_287] : memref<544x128xbf16, #tpu.memory_space<vmem>>, vector<16x64xbf16>
      %cst_288 = arith.constant dense<0.000000e+00> : vector<16x64xf32>
      %215 = tpu.matmul %214, %47, %cst_288 {dimension_numbers = #tpu.dot_dimension_numbers<[1], [0], [0], [1], [0, 0, 1, 1], [], []>} : vector<16x64xbf16>, vector<64x64xbf16>, vector<16x64xf32> -> vector<16x64xf32>
      %216 = arith.addf %54, %215 : vector<16x64xf32>
      %c32_i32_289 = arith.constant 32 : i32
      %217 = arith.addi %211, %c32_i32_289 : i32
      %218 = arith.index_cast %217 : i32 to index
      %c0_290 = arith.constant 0 : index
      %219 = vector.load %arg47[%218, %c0_290] : memref<544x128xbf16, #tpu.memory_space<vmem>>, vector<16x64xbf16>
      %cst_291 = arith.constant dense<0.000000e+00> : vector<16x64xf32>
      %220 = tpu.matmul %219, %49, %cst_291 {dimension_numbers = #tpu.dot_dimension_numbers<[1], [0], [0], [1], [0, 0, 1, 1], [], []>} : vector<16x64xbf16>, vector<64x64xbf16>, vector<16x64xf32> -> vector<16x64xf32>
      %221 = arith.addf %216, %220 : vector<16x64xf32>
      %c64_i32 = arith.constant 64 : i32
      %222 = arith.addi %211, %c64_i32 : i32
      %223 = arith.index_cast %222 : i32 to index
      %c0_292 = arith.constant 0 : index
      %224 = vector.load %arg47[%223, %c0_292] : memref<544x128xbf16, #tpu.memory_space<vmem>>, vector<16x64xbf16>
      %cst_293 = arith.constant dense<0.000000e+00> : vector<16x64xf32>
      %225 = tpu.matmul %224, %51, %cst_293 {dimension_numbers = #tpu.dot_dimension_numbers<[1], [0], [0], [1], [0, 0, 1, 1], [], []>} : vector<16x64xbf16>, vector<64x64xbf16>, vector<16x64xf32> -> vector<16x64xf32>
      %226 = arith.addf %221, %225 : vector<16x64xf32>
      %c16_i32_294 = arith.constant 16 : i32
      %227 = arith.muli %arg48, %c16_i32_294 : i32
      %228 = tpu.assume_multiple %227, 16 : i32
      %cst_295 = arith.constant 0.000000e+00 : f32
      %229 = vector.broadcast %cst_295 : f32 to vector<16x64xf32>
      %230 = arith.maximumf %226, %229 : vector<16x64xf32>
      %231 = arith.truncf %230 : vector<16x64xf32> to vector<16x64xbf16>
      %232 = arith.index_cast %228 : i32 to index
      %c0_296 = arith.constant 0 : index
      %233 = vector.load %arg46[%232, %c0_296] : memref<480x128xbf16, #tpu.memory_space<vmem>>, vector<16x64xbf16>
      tpu.vector_store %arg46[%232, %c0_296], %231 {strides = array<i32>} : memref<480x128xbf16, #tpu.memory_space<vmem>>, vector<16x64xbf16>,
    }
    %c28_i32_80 = arith.constant 28 : i32
    %c0_81 = arith.constant 0 : index
    %c0_82 = arith.constant 0 : index
    %c0_83 = arith.constant 0 : index
    %56 = vector.load %arg14[%c0_81, %c0_82, %c0_83] : memref<3x16x16xbf16, #tpu.memory_space<vmem>>, vector<1x16x16xbf16>
    %57 = vector.shape_cast %56 : vector<1x16x16xbf16> to vector<16x16xbf16>
    %c1_84 = arith.constant 1 : index
    %c0_85 = arith.constant 0 : index
    %c0_86 = arith.constant 0 : index
    %58 = vector.load %arg14[%c1_84, %c0_85, %c0_86] : memref<3x16x16xbf16, #tpu.memory_space<vmem>>, vector<1x16x16xbf16>
    %59 = vector.shape_cast %58 : vector<1x16x16xbf16> to vector<16x16xbf16>
    %c2_87 = arith.constant 2 : index
    %c0_88 = arith.constant 0 : index
    %c0_89 = arith.constant 0 : index
    %60 = vector.load %arg14[%c2_87, %c0_88, %c0_89] : memref<3x16x16xbf16, #tpu.memory_space<vmem>>, vector<1x16x16xbf16>
    %61 = vector.shape_cast %60 : vector<1x16x16xbf16> to vector<16x16xbf16>
    %c0_90 = arith.constant 0 : index
    %c0_91 = arith.constant 0 : index
    %c0_92 = arith.constant 0 : index
    %62 = vector.load %arg15[%c0_90, %c0_91, %c0_92] : memref<3x64x64xbf16, #tpu.memory_space<vmem>>, vector<1x64x64xbf16>
    %63 = vector.shape_cast %62 : vector<1x64x64xbf16> to vector<64x64xbf16>
    %c1_93 = arith.constant 1 : index
    %c0_94 = arith.constant 0 : index
    %c0_95 = arith.constant 0 : index
    %64 = vector.load %arg15[%c1_93, %c0_94, %c0_95] : memref<3x64x64xbf16, #tpu.memory_space<vmem>>, vector<1x64x64xbf16>
    %65 = vector.shape_cast %64 : vector<1x64x64xbf16> to vector<64x64xbf16>
    %c2_96 = arith.constant 2 : index
    %c0_97 = arith.constant 0 : index
    %c0_98 = arith.constant 0 : index
    %66 = vector.load %arg15[%c2_96, %c0_97, %c0_98] : memref<3x64x64xbf16, #tpu.memory_space<vmem>>, vector<1x64x64xbf16>
    %67 = vector.shape_cast %66 : vector<1x64x64xbf16> to vector<64x64xbf16>
    %c0_99 = arith.constant 0 : index
    %c0_100 = arith.constant 0 : index
    %68 = vector.load %arg16[%c0_99, %c0_100] : memref<16x64xf32, #tpu.memory_space<vmem>>, vector<16x64xf32>
    %cst_101 = arith.constant 0.000000e+00 : bf16
    %69 = vector.broadcast %cst_101 : bf16 to vector<16x64xbf16>
    %c0_102 = arith.constant 0 : index
    %c0_103 = arith.constant 0 : index
    %70 = vector.load %arg47[%c0_102, %c0_103] : memref<544x128xbf16, #tpu.memory_space<vmem>>, vector<16x64xbf16>
    tpu.vector_store %arg47[%c0_102, %c0_103], %69 {strides = array<i32>} : memref<544x128xbf16, #tpu.memory_space<vmem>>, vector<16x64xbf16>,
    %c464 = arith.constant 464 : index
    %c0_104 = arith.constant 0 : index
    %71 = vector.load %arg47[%c464, %c0_104] : memref<544x128xbf16, #tpu.memory_space<vmem>>, vector<16x64xbf16>
    tpu.vector_store %arg47[%c464, %c0_104], %69 {strides = array<i32>} : memref<544x128xbf16, #tpu.memory_space<vmem>>, vector<16x64xbf16>,
    %c0_i32_105 = arith.constant 0 : i32
    %c28_i32_106 = arith.constant 28 : i32
    %72 = arith.addi %c0_i32_105, %c28_i32_106 : i32
    %c1_i32_107 = arith.constant 1 : i32
    scf.for %arg48 = %c0_i32_105 to %72 step %c1_i32_107  : i32 {
      %c16_i32 = arith.constant 16 : i32
      %209 = arith.muli %arg48, %c16_i32 : i32
      %210 = tpu.assume_multiple %209, 16 : i32
      %211 = arith.index_cast %210 : i32 to index
      %c0_285 = arith.constant 0 : index
      %212 = vector.load %arg46[%211, %c0_285] : memref<480x128xbf16, #tpu.memory_space<vmem>>, vector<16x64xbf16>
      %cst_286 = arith.constant dense<0.000000e+00> : vector<16x64xf32>
      %213 = tpu.matmul %57, %212, %cst_286 {dimension_numbers = #tpu.dot_dimension_numbers<[1], [0], [0], [1], [0, 0, 1, 1], [], []>} : vector<16x16xbf16>, vector<16x64xbf16>, vector<16x64xf32> -> vector<16x64xf32>
      %214 = arith.truncf %213 : vector<16x64xf32> to vector<16x64xbf16>
      %cst_287 = arith.constant dense<0.000000e+00> : vector<16x64xf32>
      %215 = tpu.matmul %214, %63, %cst_287 {dimension_numbers = #tpu.dot_dimension_numbers<[1], [0], [0], [1], [0, 0, 1, 1], [], []>} : vector<16x64xbf16>, vector<64x64xbf16>, vector<16x64xf32> -> vector<16x64xf32>
      %216 = arith.addf %68, %215 : vector<16x64xf32>
      %cst_288 = arith.constant dense<0.000000e+00> : vector<16x64xf32>
      %217 = tpu.matmul %59, %212, %cst_288 {dimension_numbers = #tpu.dot_dimension_numbers<[1], [0], [0], [1], [0, 0, 1, 1], [], []>} : vector<16x16xbf16>, vector<16x64xbf16>, vector<16x64xf32> -> vector<16x64xf32>
      %218 = arith.truncf %217 : vector<16x64xf32> to vector<16x64xbf16>
      %cst_289 = arith.constant dense<0.000000e+00> : vector<16x64xf32>
      %219 = tpu.matmul %218, %65, %cst_289 {dimension_numbers = #tpu.dot_dimension_numbers<[1], [0], [0], [1], [0, 0, 1, 1], [], []>} : vector<16x64xbf16>, vector<64x64xbf16>, vector<16x64xf32> -> vector<16x64xf32>
      %220 = arith.addf %216, %219 : vector<16x64xf32>
      %cst_290 = arith.constant dense<0.000000e+00> : vector<16x64xf32>
      %221 = tpu.matmul %61, %212, %cst_290 {dimension_numbers = #tpu.dot_dimension_numbers<[1], [0], [0], [1], [0, 0, 1, 1], [], []>} : vector<16x16xbf16>, vector<16x64xbf16>, vector<16x64xf32> -> vector<16x64xf32>
      %222 = arith.truncf %221 : vector<16x64xf32> to vector<16x64xbf16>
      %cst_291 = arith.constant dense<0.000000e+00> : vector<16x64xf32>
      %223 = tpu.matmul %222, %67, %cst_291 {dimension_numbers = #tpu.dot_dimension_numbers<[1], [0], [0], [1], [0, 0, 1, 1], [], []>} : vector<16x64xbf16>, vector<64x64xbf16>, vector<16x64xf32> -> vector<16x64xf32>
      %224 = arith.addf %220, %223 : vector<16x64xf32>
      %c1_i32_292 = arith.constant 1 : i32
      %225 = arith.addi %c1_i32_292, %arg48 : i32
      %c16_i32_293 = arith.constant 16 : i32
      %226 = arith.muli %225, %c16_i32_293 : i32
      %227 = tpu.assume_multiple %226, 16 : i32
      %cst_294 = arith.constant 0.000000e+00 : f32
      %228 = vector.broadcast %cst_294 : f32 to vector<16x64xf32>
      %229 = arith.maximumf %224, %228 : vector<16x64xf32>
      %230 = arith.truncf %229 : vector<16x64xf32> to vector<16x64xbf16>
      %231 = arith.index_cast %227 : i32 to index
      %c0_295 = arith.constant 0 : index
      %232 = vector.load %arg47[%231, %c0_295] : memref<544x128xbf16, #tpu.memory_space<vmem>>, vector<16x64xbf16>
      tpu.vector_store %arg47[%231, %c0_295], %230 {strides = array<i32>} : memref<544x128xbf16, #tpu.memory_space<vmem>>, vector<16x64xbf16>,
    }
    %c28_i32_108 = arith.constant 28 : i32
    %c0_109 = arith.constant 0 : index
    %c0_110 = arith.constant 0 : index
    %c0_111 = arith.constant 0 : index
    %73 = vector.load %arg17[%c0_109, %c0_110, %c0_111] : memref<3x64x64xbf16, #tpu.memory_space<vmem>>, vector<1x64x64xbf16>
    %74 = vector.shape_cast %73 : vector<1x64x64xbf16> to vector<64x64xbf16>
    %c1_112 = arith.constant 1 : index
    %c0_113 = arith.constant 0 : index
    %c0_114 = arith.constant 0 : index
    %75 = vector.load %arg17[%c1_112, %c0_113, %c0_114] : memref<3x64x64xbf16, #tpu.memory_space<vmem>>, vector<1x64x64xbf16>
    %76 = vector.shape_cast %75 : vector<1x64x64xbf16> to vector<64x64xbf16>
    %c2_115 = arith.constant 2 : index
    %c0_116 = arith.constant 0 : index
    %c0_117 = arith.constant 0 : index
    %77 = vector.load %arg17[%c2_115, %c0_116, %c0_117] : memref<3x64x64xbf16, #tpu.memory_space<vmem>>, vector<1x64x64xbf16>
    %78 = vector.shape_cast %77 : vector<1x64x64xbf16> to vector<64x64xbf16>
    %c0_118 = arith.constant 0 : index
    %c0_119 = arith.constant 0 : index
    %79 = vector.load %arg18[%c0_118, %c0_119] : memref<1x64xf32, #tpu.memory_space<vmem>>, vector<1x64xf32>
    %80 = vector.shape_cast %79 : vector<1x64xf32> to vector<1x64xf32>
    %81 = vector.broadcast %80 : vector<1x64xf32> to vector<16x64xf32>
    %c0_i32_120 = arith.constant 0 : i32
    %c26_i32 = arith.constant 26 : i32
    %82 = arith.addi %c0_i32_120, %c26_i32 : i32
    %c1_i32_121 = arith.constant 1 : i32
    scf.for %arg48 = %c0_i32_120 to %82 step %c1_i32_121  : i32 {
      %c1_i32_285 = arith.constant 1 : i32
      %209 = arith.muli %arg48, %c1_i32_285 : i32
      %c16_i32 = arith.constant 16 : i32
      %210 = arith.muli %209, %c16_i32 : i32
      %211 = tpu.assume_multiple %210, 16 : i32
      %c0_i32_286 = arith.constant 0 : i32
      %212 = arith.addi %211, %c0_i32_286 : i32
      %213 = arith.index_cast %212 : i32 to index
      %c0_287 = arith.constant 0 : index
      %214 = vector.load %arg47[%213, %c0_287] : memref<544x128xbf16, #tpu.memory_space<vmem>>, vector<16x64xbf16>
      %cst_288 = arith.constant dense<0.000000e+00> : vector<16x64xf32>
      %215 = tpu.matmul %214, %74, %cst_288 {dimension_numbers = #tpu.dot_dimension_numbers<[1], [0], [0], [1], [0, 0, 1, 1], [], []>} : vector<16x64xbf16>, vector<64x64xbf16>, vector<16x64xf32> -> vector<16x64xf32>
      %216 = arith.addf %81, %215 : vector<16x64xf32>
      %c32_i32_289 = arith.constant 32 : i32
      %217 = arith.addi %211, %c32_i32_289 : i32
      %218 = arith.index_cast %217 : i32 to index
      %c0_290 = arith.constant 0 : index
      %219 = vector.load %arg47[%218, %c0_290] : memref<544x128xbf16, #tpu.memory_space<vmem>>, vector<16x64xbf16>
      %cst_291 = arith.constant dense<0.000000e+00> : vector<16x64xf32>
      %220 = tpu.matmul %219, %76, %cst_291 {dimension_numbers = #tpu.dot_dimension_numbers<[1], [0], [0], [1], [0, 0, 1, 1], [], []>} : vector<16x64xbf16>, vector<64x64xbf16>, vector<16x64xf32> -> vector<16x64xf32>
      %221 = arith.addf %216, %220 : vector<16x64xf32>
      %c64_i32 = arith.constant 64 : i32
      %222 = arith.addi %211, %c64_i32 : i32
      %223 = arith.index_cast %222 : i32 to index
      %c0_292 = arith.constant 0 : index
      %224 = vector.load %arg47[%223, %c0_292] : memref<544x128xbf16, #tpu.memory_space<vmem>>, vector<16x64xbf16>
      %cst_293 = arith.constant dense<0.000000e+00> : vector<16x64xf32>
      %225 = tpu.matmul %224, %78, %cst_293 {dimension_numbers = #tpu.dot_dimension_numbers<[1], [0], [0], [1], [0, 0, 1, 1], [], []>} : vector<16x64xbf16>, vector<64x64xbf16>, vector<16x64xf32> -> vector<16x64xf32>
      %226 = arith.addf %221, %225 : vector<16x64xf32>
      %c16_i32_294 = arith.constant 16 : i32
      %227 = arith.muli %arg48, %c16_i32_294 : i32
      %228 = tpu.assume_multiple %227, 16 : i32
      %cst_295 = arith.constant 0.000000e+00 : f32
      %229 = vector.broadcast %cst_295 : f32 to vector<16x64xf32>
      %230 = arith.maximumf %226, %229 : vector<16x64xf32>
      %231 = arith.truncf %230 : vector<16x64xf32> to vector<16x64xbf16>
      %232 = arith.index_cast %228 : i32 to index
      %c0_296 = arith.constant 0 : index
      %233 = vector.load %arg46[%232, %c0_296] : memref<480x128xbf16, #tpu.memory_space<vmem>>, vector<16x64xbf16>
      tpu.vector_store %arg46[%232, %c0_296], %231 {strides = array<i32>} : memref<480x128xbf16, #tpu.memory_space<vmem>>, vector<16x64xbf16>,
    }
    %c26_i32_122 = arith.constant 26 : i32
    %c0_123 = arith.constant 0 : index
    %c0_124 = arith.constant 0 : index
    %c0_125 = arith.constant 0 : index
    %83 = vector.load %arg19[%c0_123, %c0_124, %c0_125] : memref<3x16x16xbf16, #tpu.memory_space<vmem>>, vector<1x16x16xbf16>
    %84 = vector.shape_cast %83 : vector<1x16x16xbf16> to vector<16x16xbf16>
    %c1_126 = arith.constant 1 : index
    %c0_127 = arith.constant 0 : index
    %c0_128 = arith.constant 0 : index
    %85 = vector.load %arg19[%c1_126, %c0_127, %c0_128] : memref<3x16x16xbf16, #tpu.memory_space<vmem>>, vector<1x16x16xbf16>
    %86 = vector.shape_cast %85 : vector<1x16x16xbf16> to vector<16x16xbf16>
    %c2_129 = arith.constant 2 : index
    %c0_130 = arith.constant 0 : index
    %c0_131 = arith.constant 0 : index
    %87 = vector.load %arg19[%c2_129, %c0_130, %c0_131] : memref<3x16x16xbf16, #tpu.memory_space<vmem>>, vector<1x16x16xbf16>
    %88 = vector.shape_cast %87 : vector<1x16x16xbf16> to vector<16x16xbf16>
    %c0_132 = arith.constant 0 : index
    %c0_133 = arith.constant 0 : index
    %c0_134 = arith.constant 0 : index
    %89 = vector.load %arg20[%c0_132, %c0_133, %c0_134] : memref<3x64x128xbf16, #tpu.memory_space<vmem>>, vector<1x64x128xbf16>
    %90 = vector.shape_cast %89 : vector<1x64x128xbf16> to vector<64x128xbf16>
    %c1_135 = arith.constant 1 : index
    %c0_136 = arith.constant 0 : index
    %c0_137 = arith.constant 0 : index
    %91 = vector.load %arg20[%c1_135, %c0_136, %c0_137] : memref<3x64x128xbf16, #tpu.memory_space<vmem>>, vector<1x64x128xbf16>
    %92 = vector.shape_cast %91 : vector<1x64x128xbf16> to vector<64x128xbf16>
    %c2_138 = arith.constant 2 : index
    %c0_139 = arith.constant 0 : index
    %c0_140 = arith.constant 0 : index
    %93 = vector.load %arg20[%c2_138, %c0_139, %c0_140] : memref<3x64x128xbf16, #tpu.memory_space<vmem>>, vector<1x64x128xbf16>
    %94 = vector.shape_cast %93 : vector<1x64x128xbf16> to vector<64x128xbf16>
    %c0_141 = arith.constant 0 : index
    %c0_142 = arith.constant 0 : index
    %95 = vector.load %arg21[%c0_141, %c0_142] : memref<16x128xf32, #tpu.memory_space<vmem>>, vector<16x128xf32>
    %cst_143 = arith.constant 0.000000e+00 : bf16
    %96 = vector.broadcast %cst_143 : bf16 to vector<16x128xbf16>
    %c0_144 = arith.constant 0 : index
    %c0_145 = arith.constant 0 : index
    %97 = vector.load %arg47[%c0_144, %c0_145] : memref<544x128xbf16, #tpu.memory_space<vmem>>, vector<16x128xbf16>
    tpu.vector_store %arg47[%c0_144, %c0_145], %96 {strides = array<i32>} : memref<544x128xbf16, #tpu.memory_space<vmem>>, vector<16x128xbf16>,
    %c432 = arith.constant 432 : index
    %c0_146 = arith.constant 0 : index
    %98 = vector.load %arg47[%c432, %c0_146] : memref<544x128xbf16, #tpu.memory_space<vmem>>, vector<16x128xbf16>
    tpu.vector_store %arg47[%c432, %c0_146], %96 {strides = array<i32>} : memref<544x128xbf16, #tpu.memory_space<vmem>>, vector<16x128xbf16>,
    %c0_i32_147 = arith.constant 0 : i32
    %c26_i32_148 = arith.constant 26 : i32
    %99 = arith.addi %c0_i32_147, %c26_i32_148 : i32
    %c1_i32_149 = arith.constant 1 : i32
    scf.for %arg48 = %c0_i32_147 to %99 step %c1_i32_149  : i32 {
      %c16_i32 = arith.constant 16 : i32
      %209 = arith.muli %arg48, %c16_i32 : i32
      %210 = tpu.assume_multiple %209, 16 : i32
      %211 = arith.index_cast %210 : i32 to index
      %c0_285 = arith.constant 0 : index
      %212 = vector.load %arg46[%211, %c0_285] : memref<480x128xbf16, #tpu.memory_space<vmem>>, vector<16x64xbf16>
      %cst_286 = arith.constant dense<0.000000e+00> : vector<16x64xf32>
      %213 = tpu.matmul %84, %212, %cst_286 {dimension_numbers = #tpu.dot_dimension_numbers<[1], [0], [0], [1], [0, 0, 1, 1], [], []>} : vector<16x16xbf16>, vector<16x64xbf16>, vector<16x64xf32> -> vector<16x64xf32>
      %214 = arith.truncf %213 : vector<16x64xf32> to vector<16x64xbf16>
      %cst_287 = arith.constant dense<0.000000e+00> : vector<16x128xf32>
      %215 = tpu.matmul %214, %90, %cst_287 {dimension_numbers = #tpu.dot_dimension_numbers<[1], [0], [0], [1], [0, 0, 1, 1], [], []>} : vector<16x64xbf16>, vector<64x128xbf16>, vector<16x128xf32> -> vector<16x128xf32>
      %216 = arith.addf %95, %215 : vector<16x128xf32>
      %cst_288 = arith.constant dense<0.000000e+00> : vector<16x64xf32>
      %217 = tpu.matmul %86, %212, %cst_288 {dimension_numbers = #tpu.dot_dimension_numbers<[1], [0], [0], [1], [0, 0, 1, 1], [], []>} : vector<16x16xbf16>, vector<16x64xbf16>, vector<16x64xf32> -> vector<16x64xf32>
      %218 = arith.truncf %217 : vector<16x64xf32> to vector<16x64xbf16>
      %cst_289 = arith.constant dense<0.000000e+00> : vector<16x128xf32>
      %219 = tpu.matmul %218, %92, %cst_289 {dimension_numbers = #tpu.dot_dimension_numbers<[1], [0], [0], [1], [0, 0, 1, 1], [], []>} : vector<16x64xbf16>, vector<64x128xbf16>, vector<16x128xf32> -> vector<16x128xf32>
      %220 = arith.addf %216, %219 : vector<16x128xf32>
      %cst_290 = arith.constant dense<0.000000e+00> : vector<16x64xf32>
      %221 = tpu.matmul %88, %212, %cst_290 {dimension_numbers = #tpu.dot_dimension_numbers<[1], [0], [0], [1], [0, 0, 1, 1], [], []>} : vector<16x16xbf16>, vector<16x64xbf16>, vector<16x64xf32> -> vector<16x64xf32>
      %222 = arith.truncf %221 : vector<16x64xf32> to vector<16x64xbf16>
      %cst_291 = arith.constant dense<0.000000e+00> : vector<16x128xf32>
      %223 = tpu.matmul %222, %94, %cst_291 {dimension_numbers = #tpu.dot_dimension_numbers<[1], [0], [0], [1], [0, 0, 1, 1], [], []>} : vector<16x64xbf16>, vector<64x128xbf16>, vector<16x128xf32> -> vector<16x128xf32>
      %224 = arith.addf %220, %223 : vector<16x128xf32>
      %c1_i32_292 = arith.constant 1 : i32
      %225 = arith.addi %c1_i32_292, %arg48 : i32
      %c16_i32_293 = arith.constant 16 : i32
      %226 = arith.muli %225, %c16_i32_293 : i32
      %227 = tpu.assume_multiple %226, 16 : i32
      %cst_294 = arith.constant 0.000000e+00 : f32
      %228 = vector.broadcast %cst_294 : f32 to vector<16x128xf32>
      %229 = arith.maximumf %224, %228 : vector<16x128xf32>
      %230 = arith.truncf %229 : vector<16x128xf32> to vector<16x128xbf16>
      %231 = arith.index_cast %227 : i32 to index
      %c0_295 = arith.constant 0 : index
      %232 = vector.load %arg47[%231, %c0_295] : memref<544x128xbf16, #tpu.memory_space<vmem>>, vector<16x128xbf16>
      tpu.vector_store %arg47[%231, %c0_295], %230 {strides = array<i32>} : memref<544x128xbf16, #tpu.memory_space<vmem>>, vector<16x128xbf16>,
    }
    %c26_i32_150 = arith.constant 26 : i32
    %c0_151 = arith.constant 0 : index
    %c0_152 = arith.constant 0 : index
    %c0_153 = arith.constant 0 : index
    %100 = vector.load %arg22[%c0_151, %c0_152, %c0_153] : memref<3x128x128xbf16, #tpu.memory_space<vmem>>, vector<1x128x128xbf16>
    %101 = vector.shape_cast %100 : vector<1x128x128xbf16> to vector<128x128xbf16>
    %c1_154 = arith.constant 1 : index
    %c0_155 = arith.constant 0 : index
    %c0_156 = arith.constant 0 : index
    %102 = vector.load %arg22[%c1_154, %c0_155, %c0_156] : memref<3x128x128xbf16, #tpu.memory_space<vmem>>, vector<1x128x128xbf16>
    %103 = vector.shape_cast %102 : vector<1x128x128xbf16> to vector<128x128xbf16>
    %c2_157 = arith.constant 2 : index
    %c0_158 = arith.constant 0 : index
    %c0_159 = arith.constant 0 : index
    %104 = vector.load %arg22[%c2_157, %c0_158, %c0_159] : memref<3x128x128xbf16, #tpu.memory_space<vmem>>, vector<1x128x128xbf16>
    %105 = vector.shape_cast %104 : vector<1x128x128xbf16> to vector<128x128xbf16>
    %c0_160 = arith.constant 0 : index
    %c0_161 = arith.constant 0 : index
    %106 = vector.load %arg23[%c0_160, %c0_161] : memref<1x128xf32, #tpu.memory_space<vmem>>, vector<1x128xf32>
    %107 = vector.shape_cast %106 : vector<1x128xf32> to vector<1x128xf32>
    %108 = vector.broadcast %107 : vector<1x128xf32> to vector<16x128xf32>
    %c0_i32_162 = arith.constant 0 : i32
    %c12_i32 = arith.constant 12 : i32
    %109 = arith.addi %c0_i32_162, %c12_i32 : i32
    %c1_i32_163 = arith.constant 1 : i32
    scf.for %arg48 = %c0_i32_162 to %109 step %c1_i32_163  : i32 {
      %c2_i32 = arith.constant 2 : i32
      %209 = arith.muli %arg48, %c2_i32 : i32
      %c16_i32 = arith.constant 16 : i32
      %210 = arith.muli %209, %c16_i32 : i32
      %211 = tpu.assume_multiple %210, 16 : i32
      %c0_i32_285 = arith.constant 0 : i32
      %212 = arith.addi %211, %c0_i32_285 : i32
      %213 = arith.index_cast %212 : i32 to index
      %c0_286 = arith.constant 0 : index
      %214 = vector.load %arg47[%213, %c0_286] : memref<544x128xbf16, #tpu.memory_space<vmem>>, vector<16x128xbf16>
      %cst_287 = arith.constant dense<0.000000e+00> : vector<16x128xf32>
      %215 = tpu.matmul %214, %101, %cst_287 {dimension_numbers = #tpu.dot_dimension_numbers<[1], [0], [0], [1], [0, 0, 1, 1], [], []>} : vector<16x128xbf16>, vector<128x128xbf16>, vector<16x128xf32> -> vector<16x128xf32>
      %216 = arith.addf %108, %215 : vector<16x128xf32>
      %c32_i32_288 = arith.constant 32 : i32
      %217 = arith.addi %211, %c32_i32_288 : i32
      %218 = arith.index_cast %217 : i32 to index
      %c0_289 = arith.constant 0 : index
      %219 = vector.load %arg47[%218, %c0_289] : memref<544x128xbf16, #tpu.memory_space<vmem>>, vector<16x128xbf16>
      %cst_290 = arith.constant dense<0.000000e+00> : vector<16x128xf32>
      %220 = tpu.matmul %219, %103, %cst_290 {dimension_numbers = #tpu.dot_dimension_numbers<[1], [0], [0], [1], [0, 0, 1, 1], [], []>} : vector<16x128xbf16>, vector<128x128xbf16>, vector<16x128xf32> -> vector<16x128xf32>
      %221 = arith.addf %216, %220 : vector<16x128xf32>
      %c64_i32 = arith.constant 64 : i32
      %222 = arith.addi %211, %c64_i32 : i32
      %223 = arith.index_cast %222 : i32 to index
      %c0_291 = arith.constant 0 : index
      %224 = vector.load %arg47[%223, %c0_291] : memref<544x128xbf16, #tpu.memory_space<vmem>>, vector<16x128xbf16>
      %cst_292 = arith.constant dense<0.000000e+00> : vector<16x128xf32>
      %225 = tpu.matmul %224, %105, %cst_292 {dimension_numbers = #tpu.dot_dimension_numbers<[1], [0], [0], [1], [0, 0, 1, 1], [], []>} : vector<16x128xbf16>, vector<128x128xbf16>, vector<16x128xf32> -> vector<16x128xf32>
      %226 = arith.addf %221, %225 : vector<16x128xf32>
      %c16_i32_293 = arith.constant 16 : i32
      %227 = arith.muli %arg48, %c16_i32_293 : i32
      %228 = tpu.assume_multiple %227, 16 : i32
      %cst_294 = arith.constant 0.000000e+00 : f32
      %229 = vector.broadcast %cst_294 : f32 to vector<16x128xf32>
      %230 = arith.maximumf %226, %229 : vector<16x128xf32>
      %231 = arith.truncf %230 : vector<16x128xf32> to vector<16x128xbf16>
      %232 = arith.index_cast %228 : i32 to index
      %c0_295 = arith.constant 0 : index
      %233 = vector.load %arg46[%232, %c0_295] : memref<480x128xbf16, #tpu.memory_space<vmem>>, vector<16x128xbf16>
      tpu.vector_store %arg46[%232, %c0_295], %231 {strides = array<i32>} : memref<480x128xbf16, #tpu.memory_space<vmem>>, vector<16x128xbf16>,
    }
    %c12_i32_164 = arith.constant 12 : i32
    %c0_165 = arith.constant 0 : index
    %c0_166 = arith.constant 0 : index
    %c0_167 = arith.constant 0 : index
    %110 = vector.load %arg24[%c0_165, %c0_166, %c0_167] : memref<3x16x16xbf16, #tpu.memory_space<vmem>>, vector<1x16x16xbf16>
    %111 = vector.shape_cast %110 : vector<1x16x16xbf16> to vector<16x16xbf16>
    %c1_168 = arith.constant 1 : index
    %c0_169 = arith.constant 0 : index
    %c0_170 = arith.constant 0 : index
    %112 = vector.load %arg24[%c1_168, %c0_169, %c0_170] : memref<3x16x16xbf16, #tpu.memory_space<vmem>>, vector<1x16x16xbf16>
    %113 = vector.shape_cast %112 : vector<1x16x16xbf16> to vector<16x16xbf16>
    %c2_171 = arith.constant 2 : index
    %c0_172 = arith.constant 0 : index
    %c0_173 = arith.constant 0 : index
    %114 = vector.load %arg24[%c2_171, %c0_172, %c0_173] : memref<3x16x16xbf16, #tpu.memory_space<vmem>>, vector<1x16x16xbf16>
    %115 = vector.shape_cast %114 : vector<1x16x16xbf16> to vector<16x16xbf16>
    %c0_174 = arith.constant 0 : index
    %c0_175 = arith.constant 0 : index
    %c0_176 = arith.constant 0 : index
    %116 = vector.load %arg25[%c0_174, %c0_175, %c0_176] : memref<3x128x128xbf16, #tpu.memory_space<vmem>>, vector<1x128x128xbf16>
    %117 = vector.shape_cast %116 : vector<1x128x128xbf16> to vector<128x128xbf16>
    %c1_177 = arith.constant 1 : index
    %c0_178 = arith.constant 0 : index
    %c0_179 = arith.constant 0 : index
    %118 = vector.load %arg25[%c1_177, %c0_178, %c0_179] : memref<3x128x128xbf16, #tpu.memory_space<vmem>>, vector<1x128x128xbf16>
    %119 = vector.shape_cast %118 : vector<1x128x128xbf16> to vector<128x128xbf16>
    %c2_180 = arith.constant 2 : index
    %c0_181 = arith.constant 0 : index
    %c0_182 = arith.constant 0 : index
    %120 = vector.load %arg25[%c2_180, %c0_181, %c0_182] : memref<3x128x128xbf16, #tpu.memory_space<vmem>>, vector<1x128x128xbf16>
    %121 = vector.shape_cast %120 : vector<1x128x128xbf16> to vector<128x128xbf16>
    %c0_183 = arith.constant 0 : index
    %c0_184 = arith.constant 0 : index
    %122 = vector.load %arg26[%c0_183, %c0_184] : memref<16x128xf32, #tpu.memory_space<vmem>>, vector<16x128xf32>
    %cst_185 = arith.constant 0.000000e+00 : bf16
    %123 = vector.broadcast %cst_185 : bf16 to vector<16x128xbf16>
    %c0_186 = arith.constant 0 : index
    %c0_187 = arith.constant 0 : index
    %124 = vector.load %arg47[%c0_186, %c0_187] : memref<544x128xbf16, #tpu.memory_space<vmem>>, vector<16x128xbf16>
    tpu.vector_store %arg47[%c0_186, %c0_187], %123 {strides = array<i32>} : memref<544x128xbf16, #tpu.memory_space<vmem>>, vector<16x128xbf16>,
    %c208 = arith.constant 208 : index
    %c0_188 = arith.constant 0 : index
    %125 = vector.load %arg47[%c208, %c0_188] : memref<544x128xbf16, #tpu.memory_space<vmem>>, vector<16x128xbf16>
    tpu.vector_store %arg47[%c208, %c0_188], %123 {strides = array<i32>} : memref<544x128xbf16, #tpu.memory_space<vmem>>, vector<16x128xbf16>,
    %c0_i32_189 = arith.constant 0 : i32
    %c12_i32_190 = arith.constant 12 : i32
    %126 = arith.addi %c0_i32_189, %c12_i32_190 : i32
    %c1_i32_191 = arith.constant 1 : i32
    scf.for %arg48 = %c0_i32_189 to %126 step %c1_i32_191  : i32 {
      %c16_i32 = arith.constant 16 : i32
      %209 = arith.muli %arg48, %c16_i32 : i32
      %210 = tpu.assume_multiple %209, 16 : i32
      %211 = arith.index_cast %210 : i32 to index
      %c0_285 = arith.constant 0 : index
      %212 = vector.load %arg46[%211, %c0_285] : memref<480x128xbf16, #tpu.memory_space<vmem>>, vector<16x128xbf16>
      %cst_286 = arith.constant dense<0.000000e+00> : vector<16x128xf32>
      %213 = tpu.matmul %111, %212, %cst_286 {dimension_numbers = #tpu.dot_dimension_numbers<[1], [0], [0], [1], [0, 0, 1, 1], [], []>} : vector<16x16xbf16>, vector<16x128xbf16>, vector<16x128xf32> -> vector<16x128xf32>
      %214 = arith.truncf %213 : vector<16x128xf32> to vector<16x128xbf16>
      %cst_287 = arith.constant dense<0.000000e+00> : vector<16x128xf32>
      %215 = tpu.matmul %214, %117, %cst_287 {dimension_numbers = #tpu.dot_dimension_numbers<[1], [0], [0], [1], [0, 0, 1, 1], [], []>} : vector<16x128xbf16>, vector<128x128xbf16>, vector<16x128xf32> -> vector<16x128xf32>
      %216 = arith.addf %122, %215 : vector<16x128xf32>
      %cst_288 = arith.constant dense<0.000000e+00> : vector<16x128xf32>
      %217 = tpu.matmul %113, %212, %cst_288 {dimension_numbers = #tpu.dot_dimension_numbers<[1], [0], [0], [1], [0, 0, 1, 1], [], []>} : vector<16x16xbf16>, vector<16x128xbf16>, vector<16x128xf32> -> vector<16x128xf32>
      %218 = arith.truncf %217 : vector<16x128xf32> to vector<16x128xbf16>
      %cst_289 = arith.constant dense<0.000000e+00> : vector<16x128xf32>
      %219 = tpu.matmul %218, %119, %cst_289 {dimension_numbers = #tpu.dot_dimension_numbers<[1], [0], [0], [1], [0, 0, 1, 1], [], []>} : vector<16x128xbf16>, vector<128x128xbf16>, vector<16x128xf32> -> vector<16x128xf32>
      %220 = arith.addf %216, %219 : vector<16x128xf32>
      %cst_290 = arith.constant dense<0.000000e+00> : vector<16x128xf32>
      %221 = tpu.matmul %115, %212, %cst_290 {dimension_numbers = #tpu.dot_dimension_numbers<[1], [0], [0], [1], [0, 0, 1, 1], [], []>} : vector<16x16xbf16>, vector<16x128xbf16>, vector<16x128xf32> -> vector<16x128xf32>
      %222 = arith.truncf %221 : vector<16x128xf32> to vector<16x128xbf16>
      %cst_291 = arith.constant dense<0.000000e+00> : vector<16x128xf32>
      %223 = tpu.matmul %222, %121, %cst_291 {dimension_numbers = #tpu.dot_dimension_numbers<[1], [0], [0], [1], [0, 0, 1, 1], [], []>} : vector<16x128xbf16>, vector<128x128xbf16>, vector<16x128xf32> -> vector<16x128xf32>
      %224 = arith.addf %220, %223 : vector<16x128xf32>
      %c1_i32_292 = arith.constant 1 : i32
      %225 = arith.addi %c1_i32_292, %arg48 : i32
      %c16_i32_293 = arith.constant 16 : i32
      %226 = arith.muli %225, %c16_i32_293 : i32
      %227 = tpu.assume_multiple %226, 16 : i32
      %cst_294 = arith.constant 0.000000e+00 : f32
      %228 = vector.broadcast %cst_294 : f32 to vector<16x128xf32>
      %229 = arith.maximumf %224, %228 : vector<16x128xf32>
      %230 = arith.truncf %229 : vector<16x128xf32> to vector<16x128xbf16>
      %231 = arith.index_cast %227 : i32 to index
      %c0_295 = arith.constant 0 : index
      %232 = vector.load %arg47[%231, %c0_295] : memref<544x128xbf16, #tpu.memory_space<vmem>>, vector<16x128xbf16>
      tpu.vector_store %arg47[%231, %c0_295], %230 {strides = array<i32>} : memref<544x128xbf16, #tpu.memory_space<vmem>>, vector<16x128xbf16>,
    }
    %c12_i32_192 = arith.constant 12 : i32
    %c0_193 = arith.constant 0 : index
    %c0_194 = arith.constant 0 : index
    %c0_195 = arith.constant 0 : index
    %127 = vector.load %arg27[%c0_193, %c0_194, %c0_195] : memref<3x128x128xbf16, #tpu.memory_space<vmem>>, vector<1x128x128xbf16>
    %128 = vector.shape_cast %127 : vector<1x128x128xbf16> to vector<128x128xbf16>
    %c1_196 = arith.constant 1 : index
    %c0_197 = arith.constant 0 : index
    %c0_198 = arith.constant 0 : index
    %129 = vector.load %arg27[%c1_196, %c0_197, %c0_198] : memref<3x128x128xbf16, #tpu.memory_space<vmem>>, vector<1x128x128xbf16>
    %130 = vector.shape_cast %129 : vector<1x128x128xbf16> to vector<128x128xbf16>
    %c2_199 = arith.constant 2 : index
    %c0_200 = arith.constant 0 : index
    %c0_201 = arith.constant 0 : index
    %131 = vector.load %arg27[%c2_199, %c0_200, %c0_201] : memref<3x128x128xbf16, #tpu.memory_space<vmem>>, vector<1x128x128xbf16>
    %132 = vector.shape_cast %131 : vector<1x128x128xbf16> to vector<128x128xbf16>
    %c0_202 = arith.constant 0 : index
    %c0_203 = arith.constant 0 : index
    %133 = vector.load %arg28[%c0_202, %c0_203] : memref<1x128xf32, #tpu.memory_space<vmem>>, vector<1x128xf32>
    %134 = vector.shape_cast %133 : vector<1x128xf32> to vector<1x128xf32>
    %135 = vector.broadcast %134 : vector<1x128xf32> to vector<16x128xf32>
    %c0_i32_204 = arith.constant 0 : i32
    %c10_i32 = arith.constant 10 : i32
    %136 = arith.addi %c0_i32_204, %c10_i32 : i32
    %c1_i32_205 = arith.constant 1 : i32
    scf.for %arg48 = %c0_i32_204 to %136 step %c1_i32_205  : i32 {
      %c1_i32_285 = arith.constant 1 : i32
      %209 = arith.muli %arg48, %c1_i32_285 : i32
      %c16_i32 = arith.constant 16 : i32
      %210 = arith.muli %209, %c16_i32 : i32
      %211 = tpu.assume_multiple %210, 16 : i32
      %c0_i32_286 = arith.constant 0 : i32
      %212 = arith.addi %211, %c0_i32_286 : i32
      %213 = arith.index_cast %212 : i32 to index
      %c0_287 = arith.constant 0 : index
      %214 = vector.load %arg47[%213, %c0_287] : memref<544x128xbf16, #tpu.memory_space<vmem>>, vector<16x128xbf16>
      %cst_288 = arith.constant dense<0.000000e+00> : vector<16x128xf32>
      %215 = tpu.matmul %214, %128, %cst_288 {dimension_numbers = #tpu.dot_dimension_numbers<[1], [0], [0], [1], [0, 0, 1, 1], [], []>} : vector<16x128xbf16>, vector<128x128xbf16>, vector<16x128xf32> -> vector<16x128xf32>
      %216 = arith.addf %135, %215 : vector<16x128xf32>
      %c32_i32_289 = arith.constant 32 : i32
      %217 = arith.addi %211, %c32_i32_289 : i32
      %218 = arith.index_cast %217 : i32 to index
      %c0_290 = arith.constant 0 : index
      %219 = vector.load %arg47[%218, %c0_290] : memref<544x128xbf16, #tpu.memory_space<vmem>>, vector<16x128xbf16>
      %cst_291 = arith.constant dense<0.000000e+00> : vector<16x128xf32>
      %220 = tpu.matmul %219, %130, %cst_291 {dimension_numbers = #tpu.dot_dimension_numbers<[1], [0], [0], [1], [0, 0, 1, 1], [], []>} : vector<16x128xbf16>, vector<128x128xbf16>, vector<16x128xf32> -> vector<16x128xf32>
      %221 = arith.addf %216, %220 : vector<16x128xf32>
      %c64_i32 = arith.constant 64 : i32
      %222 = arith.addi %211, %c64_i32 : i32
      %223 = arith.index_cast %222 : i32 to index
      %c0_292 = arith.constant 0 : index
      %224 = vector.load %arg47[%223, %c0_292] : memref<544x128xbf16, #tpu.memory_space<vmem>>, vector<16x128xbf16>
      %cst_293 = arith.constant dense<0.000000e+00> : vector<16x128xf32>
      %225 = tpu.matmul %224, %132, %cst_293 {dimension_numbers = #tpu.dot_dimension_numbers<[1], [0], [0], [1], [0, 0, 1, 1], [], []>} : vector<16x128xbf16>, vector<128x128xbf16>, vector<16x128xf32> -> vector<16x128xf32>
      %226 = arith.addf %221, %225 : vector<16x128xf32>
      %c16_i32_294 = arith.constant 16 : i32
      %227 = arith.muli %arg48, %c16_i32_294 : i32
      %228 = tpu.assume_multiple %227, 16 : i32
      %cst_295 = arith.constant 0.000000e+00 : f32
      %229 = vector.broadcast %cst_295 : f32 to vector<16x128xf32>
      %230 = arith.maximumf %226, %229 : vector<16x128xf32>
      %231 = arith.truncf %230 : vector<16x128xf32> to vector<16x128xbf16>
      %232 = arith.index_cast %228 : i32 to index
      %c0_296 = arith.constant 0 : index
      %233 = vector.load %arg46[%232, %c0_296] : memref<480x128xbf16, #tpu.memory_space<vmem>>, vector<16x128xbf16>
      tpu.vector_store %arg46[%232, %c0_296], %231 {strides = array<i32>} : memref<480x128xbf16, #tpu.memory_space<vmem>>, vector<16x128xbf16>,
    }
    %c10_i32_206 = arith.constant 10 : i32
    %c0_207 = arith.constant 0 : index
    %c0_208 = arith.constant 0 : index
    %c0_209 = arith.constant 0 : index
    %137 = vector.load %arg29[%c0_207, %c0_208, %c0_209] : memref<3x16x16xbf16, #tpu.memory_space<vmem>>, vector<1x16x16xbf16>
    %138 = vector.shape_cast %137 : vector<1x16x16xbf16> to vector<16x16xbf16>
    %c1_210 = arith.constant 1 : index
    %c0_211 = arith.constant 0 : index
    %c0_212 = arith.constant 0 : index
    %139 = vector.load %arg29[%c1_210, %c0_211, %c0_212] : memref<3x16x16xbf16, #tpu.memory_space<vmem>>, vector<1x16x16xbf16>
    %140 = vector.shape_cast %139 : vector<1x16x16xbf16> to vector<16x16xbf16>
    %c2_213 = arith.constant 2 : index
    %c0_214 = arith.constant 0 : index
    %c0_215 = arith.constant 0 : index
    %141 = vector.load %arg29[%c2_213, %c0_214, %c0_215] : memref<3x16x16xbf16, #tpu.memory_space<vmem>>, vector<1x16x16xbf16>
    %142 = vector.shape_cast %141 : vector<1x16x16xbf16> to vector<16x16xbf16>
    %c0_216 = arith.constant 0 : index
    %c0_217 = arith.constant 0 : index
    %c0_218 = arith.constant 0 : index
    %143 = vector.load %arg30[%c0_216, %c0_217, %c0_218] : memref<3x128x64xbf16, #tpu.memory_space<vmem>>, vector<1x128x64xbf16>
    %144 = vector.shape_cast %143 : vector<1x128x64xbf16> to vector<128x64xbf16>
    %c1_219 = arith.constant 1 : index
    %c0_220 = arith.constant 0 : index
    %c0_221 = arith.constant 0 : index
    %145 = vector.load %arg30[%c1_219, %c0_220, %c0_221] : memref<3x128x64xbf16, #tpu.memory_space<vmem>>, vector<1x128x64xbf16>
    %146 = vector.shape_cast %145 : vector<1x128x64xbf16> to vector<128x64xbf16>
    %c2_222 = arith.constant 2 : index
    %c0_223 = arith.constant 0 : index
    %c0_224 = arith.constant 0 : index
    %147 = vector.load %arg30[%c2_222, %c0_223, %c0_224] : memref<3x128x64xbf16, #tpu.memory_space<vmem>>, vector<1x128x64xbf16>
    %148 = vector.shape_cast %147 : vector<1x128x64xbf16> to vector<128x64xbf16>
    %c0_225 = arith.constant 0 : index
    %c0_226 = arith.constant 0 : index
    %149 = vector.load %arg31[%c0_225, %c0_226] : memref<16x64xf32, #tpu.memory_space<vmem>>, vector<16x64xf32>
    %cst_227 = arith.constant 0.000000e+00 : bf16
    %150 = vector.broadcast %cst_227 : bf16 to vector<16x64xbf16>
    %c0_228 = arith.constant 0 : index
    %c0_229 = arith.constant 0 : index
    %151 = vector.load %arg47[%c0_228, %c0_229] : memref<544x128xbf16, #tpu.memory_space<vmem>>, vector<16x64xbf16>
    tpu.vector_store %arg47[%c0_228, %c0_229], %150 {strides = array<i32>} : memref<544x128xbf16, #tpu.memory_space<vmem>>, vector<16x64xbf16>,
    %c176 = arith.constant 176 : index
    %c0_230 = arith.constant 0 : index
    %152 = vector.load %arg47[%c176, %c0_230] : memref<544x128xbf16, #tpu.memory_space<vmem>>, vector<16x64xbf16>
    tpu.vector_store %arg47[%c176, %c0_230], %150 {strides = array<i32>} : memref<544x128xbf16, #tpu.memory_space<vmem>>, vector<16x64xbf16>,
    %c0_i32_231 = arith.constant 0 : i32
    %c10_i32_232 = arith.constant 10 : i32
    %153 = arith.addi %c0_i32_231, %c10_i32_232 : i32
    %c1_i32_233 = arith.constant 1 : i32
    scf.for %arg48 = %c0_i32_231 to %153 step %c1_i32_233  : i32 {
      %c16_i32 = arith.constant 16 : i32
      %209 = arith.muli %arg48, %c16_i32 : i32
      %210 = tpu.assume_multiple %209, 16 : i32
      %211 = arith.index_cast %210 : i32 to index
      %c0_285 = arith.constant 0 : index
      %212 = vector.load %arg46[%211, %c0_285] : memref<480x128xbf16, #tpu.memory_space<vmem>>, vector<16x128xbf16>
      %cst_286 = arith.constant dense<0.000000e+00> : vector<16x128xf32>
      %213 = tpu.matmul %138, %212, %cst_286 {dimension_numbers = #tpu.dot_dimension_numbers<[1], [0], [0], [1], [0, 0, 1, 1], [], []>} : vector<16x16xbf16>, vector<16x128xbf16>, vector<16x128xf32> -> vector<16x128xf32>
      %214 = arith.truncf %213 : vector<16x128xf32> to vector<16x128xbf16>
      %cst_287 = arith.constant dense<0.000000e+00> : vector<16x64xf32>
      %215 = tpu.matmul %214, %144, %cst_287 {dimension_numbers = #tpu.dot_dimension_numbers<[1], [0], [0], [1], [0, 0, 1, 1], [], []>} : vector<16x128xbf16>, vector<128x64xbf16>, vector<16x64xf32> -> vector<16x64xf32>
      %216 = arith.addf %149, %215 : vector<16x64xf32>
      %cst_288 = arith.constant dense<0.000000e+00> : vector<16x128xf32>
      %217 = tpu.matmul %140, %212, %cst_288 {dimension_numbers = #tpu.dot_dimension_numbers<[1], [0], [0], [1], [0, 0, 1, 1], [], []>} : vector<16x16xbf16>, vector<16x128xbf16>, vector<16x128xf32> -> vector<16x128xf32>
      %218 = arith.truncf %217 : vector<16x128xf32> to vector<16x128xbf16>
      %cst_289 = arith.constant dense<0.000000e+00> : vector<16x64xf32>
      %219 = tpu.matmul %218, %146, %cst_289 {dimension_numbers = #tpu.dot_dimension_numbers<[1], [0], [0], [1], [0, 0, 1, 1], [], []>} : vector<16x128xbf16>, vector<128x64xbf16>, vector<16x64xf32> -> vector<16x64xf32>
      %220 = arith.addf %216, %219 : vector<16x64xf32>
      %cst_290 = arith.constant dense<0.000000e+00> : vector<16x128xf32>
      %221 = tpu.matmul %142, %212, %cst_290 {dimension_numbers = #tpu.dot_dimension_numbers<[1], [0], [0], [1], [0, 0, 1, 1], [], []>} : vector<16x16xbf16>, vector<16x128xbf16>, vector<16x128xf32> -> vector<16x128xf32>
      %222 = arith.truncf %221 : vector<16x128xf32> to vector<16x128xbf16>
      %cst_291 = arith.constant dense<0.000000e+00> : vector<16x64xf32>
      %223 = tpu.matmul %222, %148, %cst_291 {dimension_numbers = #tpu.dot_dimension_numbers<[1], [0], [0], [1], [0, 0, 1, 1], [], []>} : vector<16x128xbf16>, vector<128x64xbf16>, vector<16x64xf32> -> vector<16x64xf32>
      %224 = arith.addf %220, %223 : vector<16x64xf32>
      %c1_i32_292 = arith.constant 1 : i32
      %225 = arith.addi %c1_i32_292, %arg48 : i32
      %c16_i32_293 = arith.constant 16 : i32
      %226 = arith.muli %225, %c16_i32_293 : i32
      %227 = tpu.assume_multiple %226, 16 : i32
      %cst_294 = arith.constant 0.000000e+00 : f32
      %228 = vector.broadcast %cst_294 : f32 to vector<16x64xf32>
      %229 = arith.maximumf %224, %228 : vector<16x64xf32>
      %230 = arith.truncf %229 : vector<16x64xf32> to vector<16x64xbf16>
      %231 = arith.index_cast %227 : i32 to index
      %c0_295 = arith.constant 0 : index
      %232 = vector.load %arg47[%231, %c0_295] : memref<544x128xbf16, #tpu.memory_space<vmem>>, vector<16x64xbf16>
      tpu.vector_store %arg47[%231, %c0_295], %230 {strides = array<i32>} : memref<544x128xbf16, #tpu.memory_space<vmem>>, vector<16x64xbf16>,
    }
    %c10_i32_234 = arith.constant 10 : i32
    %c0_235 = arith.constant 0 : index
    %c0_236 = arith.constant 0 : index
    %c0_237 = arith.constant 0 : index
    %154 = vector.load %arg32[%c0_235, %c0_236, %c0_237] : memref<3x64x64xbf16, #tpu.memory_space<vmem>>, vector<1x64x64xbf16>
    %155 = vector.shape_cast %154 : vector<1x64x64xbf16> to vector<64x64xbf16>
    %c1_238 = arith.constant 1 : index
    %c0_239 = arith.constant 0 : index
    %c0_240 = arith.constant 0 : index
    %156 = vector.load %arg32[%c1_238, %c0_239, %c0_240] : memref<3x64x64xbf16, #tpu.memory_space<vmem>>, vector<1x64x64xbf16>
    %157 = vector.shape_cast %156 : vector<1x64x64xbf16> to vector<64x64xbf16>
    %c2_241 = arith.constant 2 : index
    %c0_242 = arith.constant 0 : index
    %c0_243 = arith.constant 0 : index
    %158 = vector.load %arg32[%c2_241, %c0_242, %c0_243] : memref<3x64x64xbf16, #tpu.memory_space<vmem>>, vector<1x64x64xbf16>
    %159 = vector.shape_cast %158 : vector<1x64x64xbf16> to vector<64x64xbf16>
    %c0_244 = arith.constant 0 : index
    %c0_245 = arith.constant 0 : index
    %160 = vector.load %arg33[%c0_244, %c0_245] : memref<1x64xf32, #tpu.memory_space<vmem>>, vector<1x64xf32>
    %161 = vector.shape_cast %160 : vector<1x64xf32> to vector<1x64xf32>
    %162 = vector.broadcast %161 : vector<1x64xf32> to vector<16x64xf32>
    %c0_i32_246 = arith.constant 0 : i32
    %c8_i32 = arith.constant 8 : i32
    %163 = arith.addi %c0_i32_246, %c8_i32 : i32
    %c1_i32_247 = arith.constant 1 : i32
    scf.for %arg48 = %c0_i32_246 to %163 step %c1_i32_247  : i32 {
      %c1_i32_285 = arith.constant 1 : i32
      %209 = arith.muli %arg48, %c1_i32_285 : i32
      %c16_i32 = arith.constant 16 : i32
      %210 = arith.muli %209, %c16_i32 : i32
      %211 = tpu.assume_multiple %210, 16 : i32
      %c0_i32_286 = arith.constant 0 : i32
      %212 = arith.addi %211, %c0_i32_286 : i32
      %213 = arith.index_cast %212 : i32 to index
      %c0_287 = arith.constant 0 : index
      %214 = vector.load %arg47[%213, %c0_287] : memref<544x128xbf16, #tpu.memory_space<vmem>>, vector<16x64xbf16>
      %cst_288 = arith.constant dense<0.000000e+00> : vector<16x64xf32>
      %215 = tpu.matmul %214, %155, %cst_288 {dimension_numbers = #tpu.dot_dimension_numbers<[1], [0], [0], [1], [0, 0, 1, 1], [], []>} : vector<16x64xbf16>, vector<64x64xbf16>, vector<16x64xf32> -> vector<16x64xf32>
      %216 = arith.addf %162, %215 : vector<16x64xf32>
      %c32_i32_289 = arith.constant 32 : i32
      %217 = arith.addi %211, %c32_i32_289 : i32
      %218 = arith.index_cast %217 : i32 to index
      %c0_290 = arith.constant 0 : index
      %219 = vector.load %arg47[%218, %c0_290] : memref<544x128xbf16, #tpu.memory_space<vmem>>, vector<16x64xbf16>
      %cst_291 = arith.constant dense<0.000000e+00> : vector<16x64xf32>
      %220 = tpu.matmul %219, %157, %cst_291 {dimension_numbers = #tpu.dot_dimension_numbers<[1], [0], [0], [1], [0, 0, 1, 1], [], []>} : vector<16x64xbf16>, vector<64x64xbf16>, vector<16x64xf32> -> vector<16x64xf32>
      %221 = arith.addf %216, %220 : vector<16x64xf32>
      %c64_i32 = arith.constant 64 : i32
      %222 = arith.addi %211, %c64_i32 : i32
      %223 = arith.index_cast %222 : i32 to index
      %c0_292 = arith.constant 0 : index
      %224 = vector.load %arg47[%223, %c0_292] : memref<544x128xbf16, #tpu.memory_space<vmem>>, vector<16x64xbf16>
      %cst_293 = arith.constant dense<0.000000e+00> : vector<16x64xf32>
      %225 = tpu.matmul %224, %159, %cst_293 {dimension_numbers = #tpu.dot_dimension_numbers<[1], [0], [0], [1], [0, 0, 1, 1], [], []>} : vector<16x64xbf16>, vector<64x64xbf16>, vector<16x64xf32> -> vector<16x64xf32>
      %226 = arith.addf %221, %225 : vector<16x64xf32>
      %c16_i32_294 = arith.constant 16 : i32
      %227 = arith.muli %arg48, %c16_i32_294 : i32
      %228 = tpu.assume_multiple %227, 16 : i32
      %cst_295 = arith.constant 0.000000e+00 : f32
      %229 = vector.broadcast %cst_295 : f32 to vector<16x64xf32>
      %230 = arith.maximumf %226, %229 : vector<16x64xf32>
      %231 = arith.truncf %230 : vector<16x64xf32> to vector<16x64xbf16>
      %232 = arith.index_cast %228 : i32 to index
      %c0_296 = arith.constant 0 : index
      %233 = vector.load %arg46[%232, %c0_296] : memref<480x128xbf16, #tpu.memory_space<vmem>>, vector<16x64xbf16>
      tpu.vector_store %arg46[%232, %c0_296], %231 {strides = array<i32>} : memref<480x128xbf16, #tpu.memory_space<vmem>>, vector<16x64xbf16>,
    }
    %c8_i32_248 = arith.constant 8 : i32
    %c0_249 = arith.constant 0 : index
    %c0_250 = arith.constant 0 : index
    %164 = vector.load %arg46[%c0_249, %c0_250] : memref<480x128xbf16, #tpu.memory_space<vmem>>, vector<128x64xbf16>
    %165 = arith.extf %164 : vector<128x64xbf16> to vector<128x64xf32>
    %cst_251 = arith.constant dense<0.000000e+00> : vector<64xf32>
    %166 = vector.multi_reduction <add>, %165, %cst_251 [0] : vector<128x64xf32> to vector<64xf32>
    %167 = vector.shape_cast %166 : vector<64xf32> to vector<1x64xf32>
    %cst_252 = arith.constant 1.280000e+02 : f32
    %168 = vector.broadcast %cst_252 : f32 to vector<1x64xf32>
    %169 = arith.divf %167, %168 : vector<1x64xf32>
    %170 = arith.truncf %169 : vector<1x64xf32> to vector<1x64xbf16>
    %c0_253 = arith.constant 0 : index
    %c0_254 = arith.constant 0 : index
    %171 = vector.load %arg34[%c0_253, %c0_254] : memref<64x64xbf16, #tpu.memory_space<vmem>>, vector<64x64xbf16>
    %cst_255 = arith.constant dense<0.000000e+00> : vector<1x64xf32>
    %172 = tpu.matmul %170, %171, %cst_255 {dimension_numbers = #tpu.dot_dimension_numbers<[1], [0], [0], [1], [0, 0, 1, 1], [], []>} : vector<1x64xbf16>, vector<64x64xbf16>, vector<1x64xf32> -> vector<1x64xf32>
    %c0_256 = arith.constant 0 : index
    %c0_257 = arith.constant 0 : index
    %173 = vector.load %arg35[%c0_256, %c0_257] : memref<1x64xf32, #tpu.memory_space<vmem>>, vector<1x64xf32>
    %174 = arith.addf %172, %173 : vector<1x64xf32>
    %175 = math.tanh %174 : vector<1x64xf32>
    %176 = arith.truncf %175 : vector<1x64xf32> to vector<1x64xbf16>
    %c0_258 = arith.constant 0 : index
    %c0_259 = arith.constant 0 : index
    %177 = vector.load %arg36[%c0_258, %c0_259] : memref<64x64xbf16, #tpu.memory_space<vmem>>, vector<64x64xbf16>
    %cst_260 = arith.constant dense<0.000000e+00> : vector<1x64xf32>
    %178 = tpu.matmul %176, %177, %cst_260 {dimension_numbers = #tpu.dot_dimension_numbers<[1], [0], [0], [1], [0, 0, 1, 1], [], []>} : vector<1x64xbf16>, vector<64x64xbf16>, vector<1x64xf32> -> vector<1x64xf32>
    %c0_261 = arith.constant 0 : index
    %c0_262 = arith.constant 0 : index
    %179 = vector.load %arg37[%c0_261, %c0_262] : memref<1x64xf32, #tpu.memory_space<vmem>>, vector<1x64xf32>
    %180 = arith.addf %178, %179 : vector<1x64xf32>
    %181 = math.tanh %180 : vector<1x64xf32>
    %182 = arith.truncf %181 : vector<1x64xf32> to vector<1x64xbf16>
    %c0_263 = arith.constant 0 : index
    %c0_264 = arith.constant 0 : index
    %183 = vector.load %arg38[%c0_263, %c0_264] : memref<64x64xbf16, #tpu.memory_space<vmem>>, vector<64x64xbf16>
    %cst_265 = arith.constant dense<0.000000e+00> : vector<1x64xf32>
    %184 = tpu.matmul %182, %183, %cst_265 {dimension_numbers = #tpu.dot_dimension_numbers<[1], [0], [0], [1], [0, 0, 1, 1], [], []>} : vector<1x64xbf16>, vector<64x64xbf16>, vector<1x64xf32> -> vector<1x64xf32>
    %c0_266 = arith.constant 0 : index
    %c0_267 = arith.constant 0 : index
    %185 = vector.load %arg39[%c0_266, %c0_267] : memref<1x64xf32, #tpu.memory_space<vmem>>, vector<1x64xf32>
    %186 = arith.addf %184, %185 : vector<1x64xf32>
    %187 = math.tanh %186 : vector<1x64xf32>
    %188 = arith.truncf %187 : vector<1x64xf32> to vector<1x64xbf16>
    %c0_268 = arith.constant 0 : index
    %c0_269 = arith.constant 0 : index
    %189 = vector.load %arg40[%c0_268, %c0_269] : memref<64x1xbf16, #tpu.memory_space<vmem>>, vector<64x1xbf16>
    %cst_270 = arith.constant dense<0.000000e+00> : vector<1x1xf32>
    %190 = tpu.matmul %188, %189, %cst_270 {dimension_numbers = #tpu.dot_dimension_numbers<[1], [0], [0], [1], [0, 0, 1, 1], [], []>} : vector<1x64xbf16>, vector<64x1xbf16>, vector<1x1xf32> -> vector<1x1xf32>
    %c0_271 = arith.constant 0 : index
    %c0_272 = arith.constant 0 : index
    %191 = vector.load %arg41[%c0_271, %c0_272] : memref<1x1xf32, #tpu.memory_space<vmem>>, vector<1x1xf32>
    %192 = arith.addf %190, %191 : vector<1x1xf32>
    %193 = arith.negf %192 : vector<1x1xf32>
    %194 = math.exp %193 : vector<1x1xf32>
    %cst_273 = arith.constant 1.000000e+00 : f32
    %195 = vector.broadcast %cst_273 : f32 to vector<1x1xf32>
    %196 = arith.addf %195, %194 : vector<1x1xf32>
    %197 = arith.divf %195, %196 : vector<1x1xf32>
    %c0_274 = arith.constant 0 : index
    %c0_275 = arith.constant 0 : index
    %c0_276 = arith.constant 0 : index
    %198 = vector.load %arg44[%c0_274, %c0_275, %c0_276] : memref<1x1x1xf32, #tpu.memory_space<vmem>>, vector<1x1x1xf32>
    %199 = vector.shape_cast %198 : vector<1x1x1xf32> to vector<1x1xf32>
    %200 = vector.shape_cast %197 : vector<1x1xf32> to vector<1x1x1xf32>
    tpu.vector_store %arg44[%c0_274, %c0_275, %c0_276], %200 {strides = array<i32>} : memref<1x1x1xf32, #tpu.memory_space<vmem>>, vector<1x1x1xf32>,
    %201 = arith.truncf %169 : vector<1x64xf32> to vector<1x64xbf16>
    %c0_277 = arith.constant 0 : index
    %c0_278 = arith.constant 0 : index
    %202 = vector.load %arg42[%c0_277, %c0_278] : memref<64x6xbf16, #tpu.memory_space<vmem>>, vector<64x6xbf16>
    %cst_279 = arith.constant dense<0.000000e+00> : vector<1x6xf32>
    %203 = tpu.matmul %201, %202, %cst_279 {dimension_numbers = #tpu.dot_dimension_numbers<[1], [0], [0], [1], [0, 0, 1, 1], [], []>} : vector<1x64xbf16>, vector<64x6xbf16>, vector<1x6xf32> -> vector<1x6xf32>
    %c0_280 = arith.constant 0 : index
    %c0_281 = arith.constant 0 : index
    %204 = vector.load %arg43[%c0_280, %c0_281] : memref<1x6xf32, #tpu.memory_space<vmem>>, vector<1x6xf32>
    %205 = arith.addf %203, %204 : vector<1x6xf32>
    %c0_282 = arith.constant 0 : index
    %c0_283 = arith.constant 0 : index
    %c0_284 = arith.constant 0 : index
    %206 = vector.load %arg45[%c0_282, %c0_283, %c0_284] : memref<1x1x6xf32, #tpu.memory_space<vmem>>, vector<1x1x6xf32>
    %207 = vector.shape_cast %206 : vector<1x1x6xf32> to vector<1x6xf32>
    %208 = vector.shape_cast %205 : vector<1x6xf32> to vector<1x1x6xf32>
    tpu.vector_store %arg45[%c0_282, %c0_283, %c0_284], %208 {strides = array<i32>} : memref<1x1x6xf32, #tpu.memory_space<vmem>>, vector<1x1x6xf32>,
    return
  }
  func.func @transform_0(%arg0: i32) -> (i32, i32, i32) {
    %c0_i32 = arith.constant 0 : i32
    %c0_i32_0 = arith.constant 0 : i32
    %c0_i32_1 = arith.constant 0 : i32
    return %arg0, %c0_i32, %c0_i32_0 : i32, i32, i32
  }
  func.func @transform_1(%arg0: i32) -> (i32, i32) {
    %c0_i32 = arith.constant 0 : i32
    %c0_i32_0 = arith.constant 0 : i32
    %c0_i32_1 = arith.constant 0 : i32
    return %c0_i32, %c0_i32_0 : i32, i32
  }
  func.func @transform_2(%arg0: i32) -> (i32, i32) {
    %c0_i32 = arith.constant 0 : i32
    %c0_i32_0 = arith.constant 0 : i32
    %c0_i32_1 = arith.constant 0 : i32
    return %c0_i32, %c0_i32_0 : i32, i32
  }
  func.func @transform_3(%arg0: i32) -> (i32, i32, i32) {
    %c0_i32 = arith.constant 0 : i32
    %c0_i32_0 = arith.constant 0 : i32
    %c0_i32_1 = arith.constant 0 : i32
    %c0_i32_2 = arith.constant 0 : i32
    return %c0_i32, %c0_i32_0, %c0_i32_1 : i32, i32, i32
  }
  func.func @transform_4(%arg0: i32) -> (i32, i32, i32) {
    %c0_i32 = arith.constant 0 : i32
    %c0_i32_0 = arith.constant 0 : i32
    %c0_i32_1 = arith.constant 0 : i32
    %c0_i32_2 = arith.constant 0 : i32
    return %c0_i32, %c0_i32_0, %c0_i32_1 : i32, i32, i32
  }
  func.func @transform_5(%arg0: i32) -> (i32, i32) {
    %c0_i32 = arith.constant 0 : i32
    %c0_i32_0 = arith.constant 0 : i32
    %c0_i32_1 = arith.constant 0 : i32
    return %c0_i32, %c0_i32_0 : i32, i32
  }
  func.func @transform_6(%arg0: i32) -> (i32, i32, i32) {
    %c0_i32 = arith.constant 0 : i32
    %c0_i32_0 = arith.constant 0 : i32
    %c0_i32_1 = arith.constant 0 : i32
    %c0_i32_2 = arith.constant 0 : i32
    return %c0_i32, %c0_i32_0, %c0_i32_1 : i32, i32, i32
  }
  func.func @transform_7(%arg0: i32) -> (i32, i32) {
    %c0_i32 = arith.constant 0 : i32
    %c0_i32_0 = arith.constant 0 : i32
    %c0_i32_1 = arith.constant 0 : i32
    return %c0_i32, %c0_i32_0 : i32, i32
  }
  func.func @transform_8(%arg0: i32) -> (i32, i32, i32) {
    %c0_i32 = arith.constant 0 : i32
    %c0_i32_0 = arith.constant 0 : i32
    %c0_i32_1 = arith.constant 0 : i32
    %c0_i32_2 = arith.constant 0 : i32
    return %c0_i32, %c0_i32_0, %c0_i32_1 : i32, i32, i32
  }
  func.func @transform_9(%arg0: i32) -> (i32, i32, i32) {
    %c0_i32 = arith.constant 0 : i32
    %c0_i32_0 = arith.constant 0 : i32
    %c0_i32_1 = arith.constant 0 : i32
    %c0_i32_2 = arith.constant 0 : i32
    return %c0_i32, %c0_i32_0, %c0_i32_1 : i32, i32, i32
  }
  func.func @transform_10(%arg0: i32) -> (i32, i32) {
    %c0_i32 = arith.constant 0 : i32
    %c0_i32_0 = arith.constant 0 : i32
    %c0_i32_1 = arith.constant 0 : i32
    return %c0_i32, %c0_i32_0 : i32, i32
  }
  func.func @transform_11(%arg0: i32) -> (i32, i32, i32) {
    %c0_i32 = arith.constant 0 : i32
    %c0_i32_0 = arith.constant 0 : i32
    %c0_i32_1 = arith.constant 0 : i32
    %c0_i32_2 = arith.constant 0 : i32
    return %c0_i32, %c0_i32_0, %c0_i32_1 : i32, i32, i32
  }
  func.func @transform_12(%arg0: i32) -> (i32, i32) {
    %c0_i32 = arith.constant 0 : i32
    %c0_i32_0 = arith.constant 0 : i32
    %c0_i32_1 = arith.constant 0 : i32
    return %c0_i32, %c0_i32_0 : i32, i32
  }
  func.func @transform_13(%arg0: i32) -> (i32, i32, i32) {
    %c0_i32 = arith.constant 0 : i32
    %c0_i32_0 = arith.constant 0 : i32
    %c0_i32_1 = arith.constant 0 : i32
    %c0_i32_2 = arith.constant 0 : i32
    return %c0_i32, %c0_i32_0, %c0_i32_1 : i32, i32, i32
  }
  func.func @transform_14(%arg0: i32) -> (i32, i32, i32) {
    %c0_i32 = arith.constant 0 : i32
    %c0_i32_0 = arith.constant 0 : i32
    %c0_i32_1 = arith.constant 0 : i32
    %c0_i32_2 = arith.constant 0 : i32
    return %c0_i32, %c0_i32_0, %c0_i32_1 : i32, i32, i32
  }
  func.func @transform_15(%arg0: i32) -> (i32, i32) {
    %c0_i32 = arith.constant 0 : i32
    %c0_i32_0 = arith.constant 0 : i32
    %c0_i32_1 = arith.constant 0 : i32
    return %c0_i32, %c0_i32_0 : i32, i32
  }
  func.func @transform_16(%arg0: i32) -> (i32, i32, i32) {
    %c0_i32 = arith.constant 0 : i32
    %c0_i32_0 = arith.constant 0 : i32
    %c0_i32_1 = arith.constant 0 : i32
    %c0_i32_2 = arith.constant 0 : i32
    return %c0_i32, %c0_i32_0, %c0_i32_1 : i32, i32, i32
  }
  func.func @transform_17(%arg0: i32) -> (i32, i32) {
    %c0_i32 = arith.constant 0 : i32
    %c0_i32_0 = arith.constant 0 : i32
    %c0_i32_1 = arith.constant 0 : i32
    return %c0_i32, %c0_i32_0 : i32, i32
  }
  func.func @transform_18(%arg0: i32) -> (i32, i32, i32) {
    %c0_i32 = arith.constant 0 : i32
    %c0_i32_0 = arith.constant 0 : i32
    %c0_i32_1 = arith.constant 0 : i32
    %c0_i32_2 = arith.constant 0 : i32
    return %c0_i32, %c0_i32_0, %c0_i32_1 : i32, i32, i32
  }
  func.func @transform_19(%arg0: i32) -> (i32, i32, i32) {
    %c0_i32 = arith.constant 0 : i32
    %c0_i32_0 = arith.constant 0 : i32
    %c0_i32_1 = arith.constant 0 : i32
    %c0_i32_2 = arith.constant 0 : i32
    return %c0_i32, %c0_i32_0, %c0_i32_1 : i32, i32, i32
  }
  func.func @transform_20(%arg0: i32) -> (i32, i32) {
    %c0_i32 = arith.constant 0 : i32
    %c0_i32_0 = arith.constant 0 : i32
    %c0_i32_1 = arith.constant 0 : i32
    return %c0_i32, %c0_i32_0 : i32, i32
  }
  func.func @transform_21(%arg0: i32) -> (i32, i32, i32) {
    %c0_i32 = arith.constant 0 : i32
    %c0_i32_0 = arith.constant 0 : i32
    %c0_i32_1 = arith.constant 0 : i32
    %c0_i32_2 = arith.constant 0 : i32
    return %c0_i32, %c0_i32_0, %c0_i32_1 : i32, i32, i32
  }
  func.func @transform_22(%arg0: i32) -> (i32, i32) {
    %c0_i32 = arith.constant 0 : i32
    %c0_i32_0 = arith.constant 0 : i32
    %c0_i32_1 = arith.constant 0 : i32
    return %c0_i32, %c0_i32_0 : i32, i32
  }
  func.func @transform_23(%arg0: i32) -> (i32, i32, i32) {
    %c0_i32 = arith.constant 0 : i32
    %c0_i32_0 = arith.constant 0 : i32
    %c0_i32_1 = arith.constant 0 : i32
    %c0_i32_2 = arith.constant 0 : i32
    return %c0_i32, %c0_i32_0, %c0_i32_1 : i32, i32, i32
  }
  func.func @transform_24(%arg0: i32) -> (i32, i32, i32) {
    %c0_i32 = arith.constant 0 : i32
    %c0_i32_0 = arith.constant 0 : i32
    %c0_i32_1 = arith.constant 0 : i32
    %c0_i32_2 = arith.constant 0 : i32
    return %c0_i32, %c0_i32_0, %c0_i32_1 : i32, i32, i32
  }
  func.func @transform_25(%arg0: i32) -> (i32, i32) {
    %c0_i32 = arith.constant 0 : i32
    %c0_i32_0 = arith.constant 0 : i32
    %c0_i32_1 = arith.constant 0 : i32
    return %c0_i32, %c0_i32_0 : i32, i32
  }
  func.func @transform_26(%arg0: i32) -> (i32, i32, i32) {
    %c0_i32 = arith.constant 0 : i32
    %c0_i32_0 = arith.constant 0 : i32
    %c0_i32_1 = arith.constant 0 : i32
    %c0_i32_2 = arith.constant 0 : i32
    return %c0_i32, %c0_i32_0, %c0_i32_1 : i32, i32, i32
  }
  func.func @transform_27(%arg0: i32) -> (i32, i32) {
    %c0_i32 = arith.constant 0 : i32
    %c0_i32_0 = arith.constant 0 : i32
    %c0_i32_1 = arith.constant 0 : i32
    return %c0_i32, %c0_i32_0 : i32, i32
  }
  func.func @transform_28(%arg0: i32) -> (i32, i32, i32) {
    %c0_i32 = arith.constant 0 : i32
    %c0_i32_0 = arith.constant 0 : i32
    %c0_i32_1 = arith.constant 0 : i32
    %c0_i32_2 = arith.constant 0 : i32
    return %c0_i32, %c0_i32_0, %c0_i32_1 : i32, i32, i32
  }
  func.func @transform_29(%arg0: i32) -> (i32, i32, i32) {
    %c0_i32 = arith.constant 0 : i32
    %c0_i32_0 = arith.constant 0 : i32
    %c0_i32_1 = arith.constant 0 : i32
    %c0_i32_2 = arith.constant 0 : i32
    return %c0_i32, %c0_i32_0, %c0_i32_1 : i32, i32, i32
  }
  func.func @transform_30(%arg0: i32) -> (i32, i32) {
    %c0_i32 = arith.constant 0 : i32
    %c0_i32_0 = arith.constant 0 : i32
    %c0_i32_1 = arith.constant 0 : i32
    return %c0_i32, %c0_i32_0 : i32, i32
  }
  func.func @transform_31(%arg0: i32) -> (i32, i32, i32) {
    %c0_i32 = arith.constant 0 : i32
    %c0_i32_0 = arith.constant 0 : i32
    %c0_i32_1 = arith.constant 0 : i32
    %c0_i32_2 = arith.constant 0 : i32
    return %c0_i32, %c0_i32_0, %c0_i32_1 : i32, i32, i32
  }
  func.func @transform_32(%arg0: i32) -> (i32, i32) {
    %c0_i32 = arith.constant 0 : i32
    %c0_i32_0 = arith.constant 0 : i32
    %c0_i32_1 = arith.constant 0 : i32
    return %c0_i32, %c0_i32_0 : i32, i32
  }
  func.func @transform_33(%arg0: i32) -> (i32, i32) {
    %c0_i32 = arith.constant 0 : i32
    %c0_i32_0 = arith.constant 0 : i32
    %c0_i32_1 = arith.constant 0 : i32
    return %c0_i32, %c0_i32_0 : i32, i32
  }
  func.func @transform_34(%arg0: i32) -> (i32, i32) {
    %c0_i32 = arith.constant 0 : i32
    %c0_i32_0 = arith.constant 0 : i32
    %c0_i32_1 = arith.constant 0 : i32
    return %c0_i32, %c0_i32_0 : i32, i32
  }
  func.func @transform_35(%arg0: i32) -> (i32, i32) {
    %c0_i32 = arith.constant 0 : i32
    %c0_i32_0 = arith.constant 0 : i32
    %c0_i32_1 = arith.constant 0 : i32
    return %c0_i32, %c0_i32_0 : i32, i32
  }
  func.func @transform_36(%arg0: i32) -> (i32, i32) {
    %c0_i32 = arith.constant 0 : i32
    %c0_i32_0 = arith.constant 0 : i32
    %c0_i32_1 = arith.constant 0 : i32
    return %c0_i32, %c0_i32_0 : i32, i32
  }
  func.func @transform_37(%arg0: i32) -> (i32, i32) {
    %c0_i32 = arith.constant 0 : i32
    %c0_i32_0 = arith.constant 0 : i32
    %c0_i32_1 = arith.constant 0 : i32
    return %c0_i32, %c0_i32_0 : i32, i32
  }
  func.func @transform_38(%arg0: i32) -> (i32, i32) {
    %c0_i32 = arith.constant 0 : i32
    %c0_i32_0 = arith.constant 0 : i32
    %c0_i32_1 = arith.constant 0 : i32
    return %c0_i32, %c0_i32_0 : i32, i32
  }
  func.func @transform_39(%arg0: i32) -> (i32, i32) {
    %c0_i32 = arith.constant 0 : i32
    %c0_i32_0 = arith.constant 0 : i32
    %c0_i32_1 = arith.constant 0 : i32
    return %c0_i32, %c0_i32_0 : i32, i32
  }
  func.func @transform_40(%arg0: i32) -> (i32, i32) {
    %c0_i32 = arith.constant 0 : i32
    %c0_i32_0 = arith.constant 0 : i32
    %c0_i32_1 = arith.constant 0 : i32
    return %c0_i32, %c0_i32_0 : i32, i32
  }
  func.func @transform_41(%arg0: i32) -> (i32, i32) {
    %c0_i32 = arith.constant 0 : i32
    %c0_i32_0 = arith.constant 0 : i32
    %c0_i32_1 = arith.constant 0 : i32
    return %c0_i32, %c0_i32_0 : i32, i32
  }
  func.func @transform_42(%arg0: i32) -> (i32, i32) {
    %c0_i32 = arith.constant 0 : i32
    %c0_i32_0 = arith.constant 0 : i32
    %c0_i32_1 = arith.constant 0 : i32
    return %c0_i32, %c0_i32_0 : i32, i32
  }
  func.func @transform_43(%arg0: i32) -> (i32, i32, i32) {
    %c0_i32 = arith.constant 0 : i32
    %c0_i32_0 = arith.constant 0 : i32
    %c0_i32_1 = arith.constant 0 : i32
    return %arg0, %c0_i32, %c0_i32_0 : i32, i32, i32
  }
  func.func @transform_44(%arg0: i32) -> (i32, i32, i32) {
    %c0_i32 = arith.constant 0 : i32
    %c0_i32_0 = arith.constant 0 : i32
    %c0_i32_1 = arith.constant 0 : i32
    return %arg0, %c0_i32, %c0_i32_0 : i32, i32, i32
  }
}

</mosaic_0001>

<bundles_post_ra>
// kernel: tpu_custom_call.1
= control target key start
LH: loop header
LB: loop body
LE: loop exit
PB: predicated region body
PF: predicated region fallthrough
CT: control target
= control target key end

     0   :  { %s9499_s6 = smov 1   ;;  %s9500_s10 = smov 2   ;;  %s12189_s0 = inlined_call_operand.smem [shape: u32[45], index: -1, kind: input, shape index: {}] }
   0x1   :  { %s9595_s5 = sld [smem:[%s12189_s0]]   ;;  %s9501_s14 = smov 3  }
   0x2   :  { %s9600_s9 = sld [smem:[%s12189_s0 + %s9499_s6]]   ;;  %s9502_s18 = smov 4  }
   0x3   :  { %s9605_s13 = sld [smem:[%s12189_s0 + %s9500_s10]]   ;;  %s9503_s22 = smov 5  }
   0x4   :  { %s9610_s17 = sld [smem:[%s12189_s0 + %s9501_s14]]   ;;  %s9504_s26 = smov 6  }
   0x5   :  { %s9615_s21 = sld [smem:[%s12189_s0 + %s9502_s18]]   ;;  %s9505_s30 = smov 7  }
   0x6   :  { %s9620_s25 = sld [smem:[%s12189_s0 + %s9503_s22]]   ;;  %s9506_s4 = smov 8  }
   0x7   :  { %12248 = sst [smem:[#allocation34_spill]] %s9595_s5  ;;  %s9507_s10 = smov 9  }
   0x8   :  { %12249 = sst [smem:[#allocation35_spill]] %s9600_s9  ;;  %s9508_s15 = smov 10  }
   0x9   :  { %12250 = sst [smem:[#allocation36_spill]] %s9605_s13  ;;  %s9509_s20 = smov 11  }
   0xa   :  { %12251 = sst [smem:[#allocation37_spill]] %s9610_s17  ;;  %s9511_s1 = smov 13  }
   0xb   :  { %12252 = sst [smem:[#allocation38_spill]] %s9615_s21  ;;  %s9512_s7 = smov 14  }
   0xc   :  { %s9625_s29 = sld [smem:[%s12189_s0 + %s9504_s26]]   ;;  %s9510_s26 = smov 12  }
   0xd   :  { %s9630_s3 = sld [smem:[%s12189_s0 + %s9505_s30]]   ;;  %s9514_s22 = smov 16  }
   0xe   :  { %s9635_s8 = sld [smem:[%s12189_s0 + %s9506_s4]]   ;;  %s9515_s28 = smov 17  }
   0xf   :  { %s9640_s14 = sld [smem:[%s12189_s0 + %s9507_s10]]   ;;  %s9540_s10 = smov 42  }
  0x10   :  { %s9645_s19 = sld [smem:[%s12189_s0 + %s9508_s15]]   ;;  %s9513_s15 = smov 15  }
  0x11   :  { %s9650_s24 = sld [smem:[%s12189_s0 + %s9509_s20]]   ;;  %s9541_s16 = smov 43  }
  0x12   :  { %12253 = sst [smem:[#allocation39_spill]] %s9625_s29  ;;  %s9542_s23 = smov 44  }
  0x13   :  { %12254 = sst [smem:[#allocation40_spill]] %s9630_s3 }
  0x14   :  { %12255 = sst [smem:[#allocation41_spill]] %s9635_s8 }
  0x15   :  { %12256 = sst [smem:[#allocation42_spill]] %s9640_s14 }
  0x16   :  { %s9655_s30 = sld [smem:[%s12189_s0 + %s9510_s26]]  }
  0x17   :  { %12257 = sst [smem:[#allocation43_spill]] %s9650_s24 }
  0x18   :  { %s9660_s6 = sld [smem:[%s12189_s0 + %s9511_s1]]   ;;  %s9539_s1 = smov 41  }
  0x19   :  { %s9665_s12 = sld [smem:[%s12189_s0 + %s9512_s7]]   ;;  %s9516_s7 = smov 18  }
  0x1a   :  { %s9670_s20 = sld [smem:[%s12189_s0 + %s9513_s15]]   ;;  %s9517_s15 = smov 19  }
  0x1b   :  { %s9675_s27 = sld [smem:[%s12189_s0 + %s9514_s22]]   ;;  %s9518_s22 = smov 20  }
  0x1c   :  { %12258 = sst [smem:[#allocation44_spill]] %s9655_s30 }
  0x1d   :  { %s9680_s4 = sld [smem:[%s12189_s0 + %s9515_s28]]   ;;  %s9519_s28 = smov 21  }
  0x1e   :  { %12259 = sst [smem:[#allocation45_spill]] %s9660_s6 }
  0x1f   :  { %12260 = sst [smem:[#allocation46_spill]] %s9665_s12 }
  0x20   :  { %s9685_s12 = sld [smem:[%s12189_s0 + %s9516_s7]]   ;;  %s9520_s7 = smov 22  }
  0x21   :  { %12261 = sst [smem:[#allocation47_spill]] %s9675_s27 }
  0x22   :  { %s9690_s6 = sld [smem:[%s12189_s0 + %s9517_s15]]   ;;  %s9521_s15 = smov 23  }
  0x23   :  { %12262 = sst [smem:[#allocation48_spill]] %s9680_s4 }
  0x24   :  { %s9695_s27 = sld [smem:[%s12189_s0 + %s9518_s22]]   ;;  %s9522_s22 = smov 24  }
  0x25   :  { %s9700_s30 = sld [smem:[%s12189_s0 + %s9519_s28]]   ;;  %s9523_s28 = smov 25  }
  0x26   :  { %12263 = sst [smem:[#allocation49_spill]] %s9685_s12 }
  0x27   :  { %s9705_s12 = sld [smem:[%s12189_s0 + %s9520_s7]]   ;;  %s9524_s7 = smov 26  }
  0x28   :  { %12264 = sst [smem:[#allocation50_spill]] %s9690_s6 }
  0x29   :  { %s9710_s6 = sld [smem:[%s12189_s0 + %s9521_s15]]   ;;  %s9525_s15 = smov 27  }
  0x2a   :  { %s9715_s24 = sld [smem:[%s12189_s0 + %s9522_s22]]   ;;  %s9526_s22 = smov 28  }
  0x2b   :  { %12265 = sst [smem:[#allocation51_spill]] %s9700_s30 }
  0x2c   :  { %s9720_s30 = sld [smem:[%s12189_s0 + %s9523_s28]]   ;;  %s9527_s28 = smov 29  }
  0x2d   :  { %12266 = sst [smem:[#allocation52_spill]] %s9705_s12 }
  0x2e   :  { %s9725_s14 = sld [smem:[%s12189_s0 + %s9524_s7]]   ;;  %s9528_s7 = smov 30  }
  0x2f   :  { %12267 = sst [smem:[#allocation53_spill]] %s9710_s6 }
  0x30   :  { %12268 = sst [smem:[#allocation54_spill]] %s9715_s24 }
  0x31   :  { %s9730_s6 = sld [smem:[%s12189_s0 + %s9525_s15]]   ;;  %s9529_s15 = smov 31  }
  0x32   :  { %s9735_s24 = sld [smem:[%s12189_s0 + %s9526_s22]]   ;;  %s9530_s22 = smov 32  }
  0x33   :  { %s9740_s8 = sld [smem:[%s12189_s0 + %s9527_s28]]   ;;  %s9531_s28 = smov 33  }
  0x34   :  { %12269 = sst [smem:[#allocation55_spill]] %s9725_s14 }
  0x35   :  { %s9745_s14 = sld [smem:[%s12189_s0 + %s9528_s7]]   ;;  %s9532_s7 = smov 34  }
  0x36   :  { %s9750_s3 = sld [smem:[%s12189_s0 + %s9529_s15]]   ;;  %s9533_s15 = smov 35  }
  0x37   :  { %12270 = sst [smem:[#allocation56_spill]] %s9730_s6 }
  0x38   :  { %s9755_s29 = sld [smem:[%s12189_s0 + %s9530_s22]]   ;;  %s9534_s22 = smov 36  }
  0x39   :  { %12271 = sst [smem:[#allocation57_spill]] %s9740_s8 }
  0x3a   :  { %s9760_s8 = sld [smem:[%s12189_s0 + %s9531_s28]]   ;;  %s9535_s28 = smov 37  }
  0x3b   :  { %12272 = sst [smem:[#allocation58_spill]] %s9745_s14 }
  0x3c   :  { %12273 = sst [smem:[#allocation59_spill]] %s9750_s3 }
  0x3d   :  { %s9765_s21 = sld [smem:[%s12189_s0 + %s9532_s7]]   ;;  %s9536_s7 = smov 38  }
  0x3e   :  { %s9770_s3 = sld [smem:[%s12189_s0 + %s9533_s15]]   ;;  %s9537_s15 = smov 39  }
  0x3f   :  { %s9775_s17 = sld [smem:[%s12189_s0 + %s9534_s22]]   ;;  %s9538_s22 = smov 40  }
  0x40   :  { %12274 = sst [smem:[#allocation60_spill]] %s9760_s8 }
  0x41   :  { %s9780_s8 = sld [smem:[%s12189_s0 + %s9535_s28]]  }
  0x42   :  { %s9785_s13 = sld [smem:[%s12189_s0 + %s9536_s7]]  }
  0x43   :  { %s9813_s9 = sld [smem:[%s12189_s0 + %s9542_s23]]  }
  0x44   :  { %12275 = sst [smem:[#allocation61_spill]] %s9770_s3 }
  0x45   :  { %12276 = sst [smem:[#allocation62_spill]] %s9775_s17 }
  0x46   :  { %s9790_s3 = sld [smem:[%s12189_s0 + %s9537_s15]]  }
  0x47   :  { %12277 = sst [smem:[#allocation63_spill]] %s9780_s8 }
  0x48   :  { %12278 = sst [smem:[#allocation64_spill]] %s9785_s13 }
  0x49   :  { %s6953_s17 = sld [smem:[%s12189_s0 + %s9538_s22]]  }
  0x4a   :  { %s9798_s8 = sld [smem:[%s12189_s0 + %s9539_s1]]  }
  0x4b   :  { %s9803_s13 = sld [smem:[%s12189_s0 + %s9540_s10]]  }
  0x4c   :  { %12279 = sst [smem:[#allocation65_spill]] %s9790_s3 }
  0x4d   :  { %s9808_s3 = sld [smem:[%s12189_s0 + %s9541_s16]]  }
  0x4f   :  { %v95_v0 = vstv %s6953_s17 }
  0x50   :  { %96 = vst [vmem:[#allocation4] sm:$0x1] %v95_v0 }
  0x51   :  { %97 = vsyncpa [#allocation6], 0 }
  0x52   :  { %98 = vsyncpa [#allocation9], 0 }
  0x53   :  { %99 = vsyncpa [#allocation12], 0 }
  0x54   :  { %100 = vsyncpa [#allocation15], 0 }
  0x55   :  { %101 = vsyncpa [#allocation18], 0 }
  0x56   :  { %102 = vsyncpa [#allocation21], 0 }
  0x57   :  { %103 = vsyncpa [#allocation24], 0 }
  0x58   :  { %104 = vsyncpa [#allocation7], 0 }
  0x59   :  { %106 = vsyncpa [#allocation7 + $0x1], 0  ;;  %s9815_s1 = smov 0   ;;  %s9817_s28 = smov 0  }
  0x5a   :  { %s9819_s2 = smov 0   ;;  %s9821_s10 = smov 0  }
  0x5b LB: > { %12280 = sst [smem:[#allocation66_spill]] %s9437_s1  ;;  %s9836_s0 = sadd.s32 4294967295, %s9449_s10   ;;  %s9449_s10 = sphi %s9821_s10, %s12406_s10   ;;  %s9445_s2 = sphi %s9819_s2, %s12408_s2   ;;  %s9441_s28 = sphi %s9817_s28, %s12410_s28   ;;  %s9437_s1 = sphi %s9815_s1, %s12409_s1  }
  0x5c   : > { %12281 = sst [smem:[#allocation67_spill]] %s9445_s2  ;;  %s6959_s17 = sadd.s32 4294967294, %s9449_s10  }
  0x5d   : > { %12282 = sst [smem:[#allocation68_spill]] %s9449_s10  ;;  %s9840_s7 = sadd.s32 1, %s9449_s10  }
  0x5e   : > { %12283 = sst [smem:[#allocation69_spill]] %s9840_s7  ;;  %s1053_s11 = sadd.s32 1, %s9445_s2 }
  0x5f   : > { %s1050_s16 = ssub.s32 %s9449_s10, %s9840_s7  ;;  %p1063_p0 = scmp.ne.s32.totalorder %s9445_s2, %s9441_s28 }
  0x60   : > { %p1051_p1 = scmp.eq.s32.totalorder %s1050_s16, 0  ;;  %p1064_p2 = scmp.eq.s32.totalorder %s9836_s0, 1 }
  0x61   : > { %p1069_p3 = scmp.ne.s32.totalorder %s9441_s28, %s9437_s1  ;;  %p1070_p4 = scmp.eq.s32.totalorder %s6959_s17, 1 }
  0x62   : > { %s9851_s15 = scalar_select %p1051_p1, %s9445_s2, %s1053_s11  }
  0x63   : > { %p9853_p5 = por %p1064_p2, %p1063_p0  ;;  %p9857_p6 = por %p1070_p4, %p1069_p3 }
  0x64   : > { %12284 = sst [smem:[#allocation70_spill]] %s9851_s15  ;;  %p6960_p7 = scmp.ge.s32.totalorder %s9449_s10, 1 }
  0x65   : > { %s12285_s18 = scalar_select %p9853_p5, 1, 0 }
  0x66   : > { %s12286_s23 = scalar_select %p9857_p6, 1, 0 }
  0x67   : > { %p1077_p8 = scmp.lt.s32.totalorder %s9449_s10, 3  ;;  %p12219_p9 = scmp.eq.s32.totalorder %s9836_s0, 0 }
  0x68   : > { %12287 = sst [smem:[#allocation71_spill]] %s12286_s23  ;;  %s9543_s26 = smov [#allocation8]  }
  0x69   : > { %p9864_p10 = pnand %p6960_p7, %p1077_p8  ;;  %s1126_s17 = sshll.u32 %s9543_s26, 4  ;;  %s1127_s17 = int_to_ptr.vmem [resolvable:$true] %s1126_s17 }
  0x6a   : > { %s9544_s16 = smov [#allocation11]   ;;  %s9545_s2 = smov [#allocation14]  }
  0x6b   : > { %s12288_s22 = scalar_select %p9864_p10, 1, 0 }
  0x6c   : > { %p8667_p11 = pneg %p9864_p10  ;;  %s1168_s15 = sshll.u32 %s9544_s16, 4  ;;  %s1169_s15 = int_to_ptr.vmem [resolvable:$true] %s1168_s15 }
  0x6d   : > { %s1201_s7 = sshll.u32 %s9545_s2, 4  ;;  %s9012_s1 = scalar_lea.vmem %s1127_s17, 256  ;;  %s1202_s7 = int_to_ptr.vmem [resolvable:$true] %s1201_s7 }
  0x6e   : > { %p9872_p12 = pnand %p12219_p9, %p8667_p11  ;;  %p9013_p0 = scmp.ne.s32.totalorder %s1127_s17, %s9012_s1 }
  0x6f   : > { %p9020_p3 = scmp.lt.s32.totalorder %s1127_s17, %s1127_s17  ;;  %p9021_p4 = scmp.lt.s32.totalorder %s9012_s1, %s9012_s1 }
  0x70   : > { %p9878_p13 = pneg %p9872_p12 }
  0x71   : > { %p9022_p7 = por %p9021_p4, %p9020_p3 }
  0x72   : > { %p9015_p1 = pnand %p9013_p0, %p9878_p13 }
  0x74   : > { %p9016_p2 = pneg %p9015_p1 }
  0x76   : > { %p9023_p8 = pnand %p9022_p7, %p9016_p2 }
  0x78   : > { %9026 = shalt.err (!%p9023_p8)
}
  0x79   : > { %s12222_s26 = smov 128   ;;  %s12224_s2 = smov 8  }
  0x7a   : > { %8673 = dma.hbm_to_vmem [thread:$0]  (!%p9872_p12), %s9645_s19, 256, %s1127_s17, [#allocation9], %s12222_s26, %s12222_s26, %s12224_s2  }
  0x7b   : > { %s9038_s16 = scalar_lea.vmem %s1169_s15, 16  ;;  %s9045_s10 = scalar_lea.vmem %s1169_s15, 32 }
  0x7c   : > { %p9039_p11 = scmp.ne.s32.totalorder %s1169_s15, %s9038_s16  ;;  %p9046_p9 = scmp.lt.s32.totalorder %s1169_s15, %s1169_s15 }
  0x7d   : > { %p9047_p3 = scmp.lt.s32.totalorder %s9045_s10, %s9038_s16 }
  0x7e   : > { %p9041_p0 = pnand %p9039_p11, %p9878_p13 }
  0x7f   : > { %p9048_p2 = por %p9047_p3, %p9046_p9 }
  0x80   : > { %p9042_p1 = pneg %p9041_p0 }
  0x82   : > { %p9049_p4 = pnand %p9048_p2, %p9042_p1 }
  0x84   : > { %9052 = shalt.err (!%p9049_p4)
}
  0x85   : > { %s12291_s4 = sld [smem:[#allocation48_spill]]  ;;  %s9064_s1 = scalar_lea.vmem %s1202_s7, 16 }
  0x86   : > { %p9065_p7 = scmp.ne.s32.totalorder %s1202_s7, %s9064_s1  ;;  %s9071_s17 = scalar_lea.vmem %s1202_s7, 32 }
  0x87   : > { %p9072_p11 = scmp.lt.s32.totalorder %s1202_s7, %s1202_s7  ;;  %p9073_p0 = scmp.lt.s32.totalorder %s9071_s17, %s9064_s1 }
  0x88   : > { %p9067_p8 = pnand %p9065_p7, %p9878_p13 }
  0x89   : > { %p9074_p5 = por %p9073_p0, %p9072_p11 }
  0x8a   : > { %p9068_p6 = pneg %p9067_p8 }
  0x8b   : > { %8679 = dma.hbm_to_vmem [thread:$0]  (!%p9872_p12), %s12291_s4, 16, %s1169_s15, [#allocation12]  }
  0x8c   : > { %p9075_p10 = pnand %p9074_p5, %p9068_p6 }
  0x8e   : > { %9078 = shalt.err (!%p9075_p10)
}
  0x8f   : > { %s12292_s12 = sld [smem:[#allocation52_spill]]  ;;  %s9548_s10 = smov [#allocation17]  }
  0x90   : > { %s1234_s16 = sshll.u32 %s9548_s10, 4  ;;  %s9549_s15 = smov [#allocation20]   ;;  %s1235_s16 = int_to_ptr.vmem [resolvable:$true] %s1234_s16 }
  0x91   : > { %s1260_s26 = sshll.u32 %s9549_s15, 4  ;;  %s9090_s2 = scalar_lea.vmem %s1235_s16, 16  ;;  %s1261_s26 = int_to_ptr.vmem [resolvable:$true] %s1260_s26 }
  0x92   : > { %p9091_p9 = scmp.ne.s32.totalorder %s1235_s16, %s9090_s2  ;;  %s9097_s4 = scalar_lea.vmem %s1235_s16, 32 }
  0x93   : > { %p9098_p2 = scmp.lt.s32.totalorder %s1235_s16, %s1235_s16  ;;  %p9099_p4 = scmp.lt.s32.totalorder %s9097_s4, %s9090_s2 }
  0x94   : > { %p9093_p1 = pnand %p9091_p9, %p9878_p13 }
  0x95   : > { %8685 = dma.hbm_to_vmem [thread:$0]  (!%p9872_p12), %s12292_s12, 16, %s1202_s7, [#allocation15]  }
  0x96   : > { %p9094_p3 = pneg %p9093_p1  ;;  %p9100_p5 = por %p9099_p4, %p9098_p2 }
  0x98   : > { %p9101_p6 = pnand %p9100_p5, %p9094_p3 }
  0x9a   : > { %9104 = shalt.err (!%p9101_p6)
}
  0x9b   : > { %s12293_s6 = sld [smem:[#allocation56_spill]]  ;;  %s9116_s7 = scalar_lea.vmem %s1261_s26, 256 }
  0x9c   : > { %p9117_p10 = scmp.ne.s32.totalorder %s1261_s26, %s9116_s7  ;;  %p9124_p11 = scmp.lt.s32.totalorder %s1261_s26, %s1261_s26 }
  0x9d   : > { %p9125_p0 = scmp.lt.s32.totalorder %s9116_s7, %s9116_s7 }
  0x9e   : > { %p9119_p7 = pnand %p9117_p10, %p9878_p13 }
  0x9f   : > { %p9126_p9 = por %p9125_p0, %p9124_p11 }
  0xa0   : > { %p9120_p8 = pneg %p9119_p7 }
  0xa1   : > { %8691 = dma.hbm_to_vmem [thread:$0]  (!%p9872_p12), %s12293_s6, 16, %s1235_s16, [#allocation18]  }
  0xa2   : > { %p9127_p1 = pnand %p9126_p9, %p9120_p8 }
  0xa4   : > { %9130 = shalt.err (!%p9127_p1)
}
  0xa5   : > { %s12294_s4 = smov 8   ;;  %s12295_s2 = smov 128  }
  0xa6   : > { %s12296_s14 = sld [smem:[#allocation58_spill]]  ;;  %s9550_s1 = smov [#allocation5]  }
  0xa7   : > { %s1101_s17 = sshll.u32 %s9550_s1, 4  ;;  %s9551_s10 = smov [#allocation10]   ;;  %s1102_s17 = int_to_ptr.vmem [resolvable:$true] %s1101_s17 }
  0xa8   : > { %s1151_s16 = sshll.u32 %s9551_s10, 4  ;;  %s9142_s15 = scalar_lea.vmem %s1102_s17, 256  ;;  %s1152_s16 = int_to_ptr.vmem [resolvable:$true] %s1151_s16 }
  0xa9   : > { %p9143_p3 = scmp.ne.s32.totalorder %s1102_s17, %s9142_s15  ;;  %p9150_p5 = scmp.lt.s32.totalorder %s1102_s17, %s1102_s17 }
  0xaa   : > { %p9151_p6 = scmp.lt.s32.totalorder %s9142_s15, %s9142_s15 }
  0xab   : > { %p9145_p2 = pnand %p9143_p3, %p9878_p13 }
  0xac   : > { %8697 = dma.hbm_to_vmem [thread:$0]  (!%p9872_p12), %s12296_s14, 256, %s1261_s26, [#allocation21], %s12295_s2, %s12295_s2, %s12294_s4  }
  0xad   : > { %p9146_p4 = pneg %p9145_p2  ;;  %p9152_p10 = por %p9151_p6, %p9150_p5 }
  0xaf   : > { %p9153_p7 = pnand %p9152_p10, %p9146_p4 }
  0xb1   : > { %9156 = shalt.err (!%p9153_p7)
}
  0xb2   : > { %8670 = dma.hbm_to_vmem [thread:$0]  (!%p9872_p12), %s9620_s25, 256, %s1102_s17, [#allocation6], %s12295_s2, %s12295_s2, %s12294_s4  }
  0xb3   : > { %s9168_s26 = scalar_lea.vmem %s1152_s16, 256  ;;  %p9176_p9 = scmp.lt.s32.totalorder %s1152_s16, %s1152_s16 }
  0xb4   : > { %p9169_p8 = scmp.ne.s32.totalorder %s1152_s16, %s9168_s26  ;;  %p9177_p1 = scmp.lt.s32.totalorder %s9168_s26, %s9168_s26 }
  0xb6   : > { %p9171_p11 = pnand %p9169_p8, %p9878_p13  ;;  %p9178_p3 = por %p9177_p1, %p9176_p9 }
  0xb8   : > { %p9172_p0 = pneg %p9171_p11 }
  0xba   : > { %p9179_p2 = pnand %p9178_p3, %p9172_p0 }
  0xbc   : > { %9182 = shalt.err (!%p9179_p2)
}
  0xbd   : > { %8676 = dma.hbm_to_vmem [thread:$0]  (!%p9872_p12), %s9670_s20, 256, %s1152_s16, [#allocation9], %s12295_s2, %s12295_s2, %s12294_s4  }
  0xbe   : > { %s9552_s7 = smov [#allocation13]   ;;  %s9553_s17 = smov [#allocation16]  }
  0xbf   : > { %s1184_s1 = sshll.u32 %s9552_s7, 4  ;;  %s1217_s10 = sshll.u32 %s9553_s17, 4  ;;  %s1185_s1 = int_to_ptr.vmem [resolvable:$true] %s1184_s1  ;;  %s1218_s10 = int_to_ptr.vmem [resolvable:$true] %s1217_s10 }
  0xc0   : > { %s9194_s15 = scalar_lea.vmem %s1185_s1, 256  ;;  %p9202_p10 = scmp.lt.s32.totalorder %s1185_s1, %s1185_s1 }
  0xc1   : > { %p9195_p4 = scmp.ne.s32.totalorder %s1185_s1, %s9194_s15  ;;  %p9203_p7 = scmp.lt.s32.totalorder %s9194_s15, %s9194_s15 }
  0xc3   : > { %p9197_p5 = pnand %p9195_p4, %p9878_p13  ;;  %p9204_p8 = por %p9203_p7, %p9202_p10 }
  0xc5   : > { %p9198_p6 = pneg %p9197_p5 }
  0xc7   : > { %p9205_p11 = pnand %p9204_p8, %p9198_p6 }
  0xc9   : > { %9208 = shalt.err (!%p9205_p11)
}
  0xca   : > { %8682 = dma.hbm_to_vmem [thread:$0]  (!%p9872_p12), %s9695_s27, 256, %s1185_s1, [#allocation12], %s12295_s2, %s12295_s2, %s12294_s4  }
  0xcb   : > { %s9220_s16 = scalar_lea.vmem %s1218_s10, 256  ;;  %p9228_p3 = scmp.lt.s32.totalorder %s1218_s10, %s1218_s10 }
  0xcc   : > { %p9221_p0 = scmp.ne.s32.totalorder %s1218_s10, %s9220_s16  ;;  %p9229_p2 = scmp.lt.s32.totalorder %s9220_s16, %s9220_s16 }
  0xce   : > { %p9223_p9 = pnand %p9221_p0, %p9878_p13  ;;  %p9230_p4 = por %p9229_p2, %p9228_p3 }
  0xd0   : > { %p9224_p1 = pneg %p9223_p9 }
  0xd2   : > { %p9231_p5 = pnand %p9230_p4, %p9224_p1 }
  0xd4   : > { %9234 = shalt.err (!%p9231_p5)
}
  0xd5   : > { %8688 = dma.hbm_to_vmem [thread:$0]  (!%p9872_p12), %s9720_s30, 256, %s1218_s10, [#allocation15], %s12295_s2, %s12295_s2, %s12294_s4  }
  0xd6   : > { %s9554_s26 = smov [#allocation19]  }
  0xd7   : > { %s1244_s7 = sshll.u32 %s9554_s26, 4  ;;  %s1245_s7 = int_to_ptr.vmem [resolvable:$true] %s1244_s7 }
  0xd8   : > { %s9246_s1 = scalar_lea.vmem %s1245_s7, 384  ;;  %p9254_p8 = scmp.lt.s32.totalorder %s1245_s7, %s1245_s7 }
  0xd9   : > { %p9247_p6 = scmp.ne.s32.totalorder %s1245_s7, %s9246_s1  ;;  %p9255_p11 = scmp.lt.s32.totalorder %s9246_s1, %s9246_s1 }
  0xdb   : > { %p9249_p10 = pnand %p9247_p6, %p9878_p13  ;;  %p9256_p0 = por %p9255_p11, %p9254_p8 }
  0xdd   : > { %p9250_p7 = pneg %p9249_p10 }
  0xdf   : > { %p9257_p9 = pnand %p9256_p0, %p9250_p7 }
  0xe1   : > { %9260 = shalt.err (!%p9257_p9)
}
  0xe2   : > { %s9555_s17 = smov 64   ;;  %s9556_s15 = smov 4  }
  0xe3   : > { %8694 = dma.hbm_to_vmem [thread:$0]  (!%p9872_p12), %s9735_s24, 384, %s1245_s7, [#allocation18], %s9555_s17, %s9555_s17, %s9556_s15  }
  0xe4   : > { %s9557_s4 = smov [#allocation22]   ;;  %s9558_s10 = smov [#allocation23]  }
  0xe5   : > { %s1277_s2 = sshll.u32 %s9557_s4, 4  ;;  %s1291_s16 = sshll.u32 %s9558_s10, 4  ;;  %s1278_s2 = int_to_ptr.vmem [resolvable:$true] %s1277_s2  ;;  %s1292_s16 = int_to_ptr.vmem [resolvable:$true] %s1291_s16 }
  0xe6   : > { %s9272_s26 = scalar_lea.vmem %s1278_s2, 16  ;;  %s9279_s1 = scalar_lea.vmem %s1278_s2, 32 }
  0xe7   : > { %p9273_p1 = scmp.ne.s32.totalorder %s1278_s2, %s9272_s26  ;;  %p9280_p4 = scmp.lt.s32.totalorder %s1278_s2, %s1278_s2 }
  0xe8   : > { %p9281_p5 = scmp.lt.s32.totalorder %s9279_s1, %s9272_s26 }
  0xe9   : > { %p9275_p3 = pnand %p9273_p1, %p9878_p13 }
  0xea   : > { %p9282_p6 = por %p9281_p5, %p9280_p4 }
  0xeb   : > { %p9276_p2 = pneg %p9275_p3 }
  0xed   : > { %p9283_p10 = pnand %p9282_p6, %p9276_p2 }
  0xef   : > { %9286 = shalt.err (!%p9283_p10)
}
  0xf0   : > { %8700 = dma.hbm_to_vmem [thread:$0]  (!%p9872_p12), %s9755_s29, 16, %s1278_s2, [#allocation21]  }
  0xf1   : > { %s9298_s7 = scalar_lea.vmem %s1292_s16, 16  ;;  %s9305_s17 = scalar_lea.vmem %s1292_s16, 32 }
  0xf2   : > { %p9299_p7 = scmp.ne.s32.totalorder %s1292_s16, %s9298_s7  ;;  %p9306_p0 = scmp.lt.s32.totalorder %s1292_s16, %s1292_s16 }
  0xf3   : > { %p9307_p9 = scmp.lt.s32.totalorder %s9305_s17, %s9298_s7 }
  0xf4   : > { %p9301_p8 = pnand %p9299_p7, %p9878_p13 }
  0xf5   : > { %p9308_p1 = por %p9307_p9, %p9306_p0 }
  0xf6   : > { %p9302_p11 = pneg %p9301_p8 }
  0xf8   : > { %p9309_p3 = pnand %p9308_p1, %p9302_p11 }
  0xfa   : > { %9312 = shalt.err (!%p9309_p3)
}
  0xfb   : > { %8703 = dma.hbm_to_vmem [thread:$0]  (!%p9872_p12), %s9765_s21, 16, %s1292_s16, [#allocation24]  }
  0xfc   : > { %p12297_p2 = scmp.ne.s32.totalorder %s12288_s22, 0 }
  0xfe   : > { %1336 = sbr.rel (%p12297_p2) target bundleno = 6052 (0x17a4), region = 192 }
 0x103   : > { %p12298_p4 = scmp.eq.s32.totalorder %s9836_s0, 0 }
 0x105   : > { %9404 = dma.done.wait (%p12298_p4), [#allocation6], 256   ;;  %p12299_p5 = pmov %p12298_p4 }
 0x106   : > { %p12300_p13 = pmov %p12298_p4 }
 0x107   : > { %9406 = vsyncadd (%p12299_p5), [#allocation6], 4294967040 }
 0x108   : > { %9408 = dma.done.wait (%p12300_p13), [#allocation9], 512   ;;  %p12301_p6 = pmov %p12298_p4 }
 0x109   : > { %p12302_p10 = pmov %p12298_p4 }
 0x10a   : > { %9410 = vsyncadd (%p12301_p6), [#allocation9], 4294966784 }
 0x10b   : > { %9412 = dma.done.wait (%p12302_p10), [#allocation12], 272   ;;  %p12303_p12 = pmov %p12298_p4 }
 0x10c   : > { %p12304_p7 = pmov %p12298_p4 }
 0x10d   : > { %9414 = vsyncadd (%p12303_p12), [#allocation12], 4294967024 }
 0x10e   : > { %9416 = dma.done.wait (%p12304_p7), [#allocation15], 272   ;;  %p12305_p8 = pmov %p12298_p4 }
 0x10f   : > { %p12306_p11 = pmov %p12298_p4 }
 0x110   : > { %9418 = vsyncadd (%p12305_p8), [#allocation15], 4294967024 }
 0x111   : > { %9420 = dma.done.wait (%p12306_p11), [#allocation18], 400   ;;  %p12307_p0 = pmov %p12298_p4 }
 0x113   : > { %9422 = vsyncadd (%p12307_p0), [#allocation18], 4294966896  ;;  %p12308_p9 = pmov %p12307_p0 }
 0x114   : > { %p12309_p1 = pmov %p12307_p0 }
 0x115   : > { %9424 = dma.done.wait (%p12308_p9), [#allocation21], 272  }
 0x116   : > { %9426 = vsyncadd (%p12309_p1), [#allocation21], 4294967024  ;;  %p12310_p3 = pmov %p12307_p0 }
 0x117   : > { %p12311_p2 = pmov %p12307_p0 }
 0x118   : > { %9428 = dma.done.wait (%p12310_p3), [#allocation24], 16  }
 0x119   : > { %9430 = vsyncadd (%p12311_p2), [#allocation24], 4294967280  ;;  %s12312_s5 = sld [smem:[#allocation34_spill]]  ;;  %s12226_s11 = sand.u32 1, %s9441_s28   ;;  %vm1516_vm0 = vcmask 257024   ;;  %v12237_v1 = vmov 0  }
 0x11a   : > { %s12313_s23 = sld [smem:[#allocation35_spill]]  ;;  %p1488_p4 = scmp.lt.s32.totalorder %s9836_s0, 1  ;;  %1517 = vst.msk [vmem:[#allocation3] sm:$0xf] %vm1516_vm0, %v12237_v1  ;;  %1518 = vst.msk [vmem:[#allocation3 + $0x4] sm:$0xf] %vm1516_vm0, %v12237_v1 }
 0x11b   : > { %s12314_s22 = sld [smem:[#allocation36_spill]]  ;;  %1519 = vst.msk [vmem:[#allocation3 + $0x108] sm:$0xf] %vm1516_vm0, %v12237_v1  ;;  %1520 = vst.msk [vmem:[#allocation3 + $0x10c] sm:$0xf] %vm1516_vm0, %v12237_v1  ;;  %v10048_v15 = vld [vmem:[#allocation5] sm:$0xff] }
 0x11c   : > { %s12315_s15 = sld [smem:[#allocation37_spill]]  ;;  %v10050_v16 = vld [vmem:[#allocation5 + $0x8] sm:$0xff]  ;;  %s10054_s1 = scalar_lea.vmem [#allocation25], %s12226_s11 }
 0x11d   : > { %s12316_s4 = sld [smem:[#allocation38_spill]]  ;;  %s10056_s7 = smov 0  }
 0x11e   : > { %s10001_s2 = scalar_select %p1488_p4, %s9836_s0, 1 }
 0x120   : > { %s7599_s10 = sshll.u32 %s10001_s2, 9  ;;  %v10010_v2 = vld [vmem:[%s12313_s23] sm:$0xff]  ;;  %v10013_v3 = vld [vmem:[%s12313_s23 + $0x8] sm:$0xff] }
 0x121   : > { %s10007_s26 = scalar_lea.vmem %s12312_s5, %s7599_s10  ;;  %v10016_v4 = vld [vmem:[%s12314_s22] sm:$0xff]  ;;  %v10019_v5 = vld [vmem:[%s12314_s22 + $0x8] sm:$0xff] }
 0x122   : > { %v10022_v6 = vld [vmem:[%s12315_s15] sm:$0xf]  ;;  %v10025_v7 = vld [vmem:[%s12315_s15 + $0x4] sm:$0xf]  ;;  %v10028_v8 = vld [vmem:[%s12315_s15 + $0x8] sm:$0xf] }
 0x123   : > { %v10031_v9 = vld [vmem:[%s12315_s15 + $0xc] sm:$0xf]  ;;  %v10034_v10 = vld [vmem:[%s12315_s15 + $0x10] sm:$0xf]  ;;  %v10037_v11 = vld [vmem:[%s12315_s15 + $0x14] sm:$0xf] }
 0x124   : > { %v10040_v12 = vld [vmem:[%s12316_s4] sm:$0x3]  ;;  %v10043_v13 = vld [vmem:[%s12316_s4 + $0x2] sm:$0x3]  ;;  %v10046_v14 = vld [vmem:[%s12316_s4 + $0x4] sm:$0x3] }
 0x125 LB: >> { %v9560_v17 = vmov 0.0   ;;  %vm9561_vm1 = vmmov 0   ;;  %s6995_s17 = sshll.u32 %s9453_s7, 4  ;;  %v6996_v25 = vcombine.low %v10022_v6, %v10025_v7  ;;  %vm1541_vm2 = vcmask 130048   ;;  %s1526_s7 = sadd.s32 1, %s9453_s7   ;;  %s9453_s7 = sphi %s10056_s7, %s1526_s7  }
 0x126   : >> { %7963 = vmatprep.subr.bf16.mxu0 %v9560_v17  ;;  %7965 = vmatprep.mubr.msk.bf16.mxu0 %vm9561_vm1, %v9560_v17  ;;  %s1528_s10 = scalar_lea.vmem %s10007_s26, %s6995_s17  ;;  %v6999_v26 = vcombine.low %v10028_v8, %v10031_v9  ;;  %v7002_v27 = vcombine.low %v10034_v10, %v10037_v11  ;;  %vm1591_vm3 = vcmask 1041408   ;;  %vm1587_vm4 = vcmask 31744   ;;  %p1523_p5 = scmp.ge.s32.totalorder %s1526_s7, 32  }
 0x127   : >> { %7969 = vmatprep.subr.bf16.mxu1 %v9560_v17  ;;  %7971 = vmatprep.mubr.msk.bf16.mxu1 %vm9561_vm1, %v9560_v17  ;;  %v1529_v18 = vld [vmem:[%s1528_s10] sm:$0xff]  ;;  %v1530_v19 = vld [vmem:[%s1528_s10 + $0x8] sm:$0xff]  ;;  %v1593_v28 = vsel %vm1591_vm3, %v10040_v12, 0  ;;  %v1692_v33 = vsel %vm1591_vm3, %v10043_v13, 0  ;;  %v1791_v39 = vsel %vm1591_vm3, %v10046_v14, 0  ;;  %s7601_s10 = sadd.s32 16, %s6995_s17 }
 0x128   : >> { %v1531_v20 = vmul.f32 %v1529_v18, %v10010_v2  ;;  %v1532_v21 = vmul.f32 %v1530_v19, %v10013_v3  ;;  %7970 = vmatpush3.bf16.msra.mxu1 %v1593_v28  ;;  %s1848_s16 = sshra.s32 %s7601_s10, 3 }
 0x129   : >> { %7981 = vmatprep.subr.bf16.mxu1 %v9560_v17  ;;  %s7008_s11 = sshll.u32 %s1848_s16, 2  ;;  %s12317_s16 = sld [smem:[#allocation39_spill]] (%p1523_p5) }
 0x12a   : >> { %v1533_v22 = vadd.f32 %v1531_v20, %v10016_v4  ;;  %v1534_v23 = vadd.f32 %v1532_v21, %v10019_v5  ;;  %s1851_s4 = scalar_lea.vmem [#allocation3], %s7008_s11  ;;  %s12318_s11 = sld [smem:[#allocation40_spill]] (%p1523_p5) }
 0x12c   : >> { %v1535_v24 = vpack.c.bf16 %v1534_v23, %v1533_v22 }
 0x12e   : >> { %7964 = vmatpush3.bf16.msra.mxu0 %v1535_v24 }
 0x12f   : >> { %7975 = vmatprep.subr.bf16.mxu0 %v9560_v17  ;;  %v10103_v20 = vld [vmem:[%s12317_s16] sm:$0xf] (%p1523_p5)  ;;  %v10106_v21 = vld [vmem:[%s12317_s16 + $0x4] sm:$0xf] (%p1523_p5)  ;;  %v10109_v22 = vld [vmem:[%s12317_s16 + $0x8] sm:$0xf] (%p1523_p5) }
 0x130   : > { %v10112_v23 = vld [vmem:[%s12317_s16 + $0xc] sm:$0xf] (%p1523_p5)  ;;  %v10115_v2 = vld [vmem:[%s12317_s16 + $0x10] sm:$0xf] (%p1523_p5)  ;;  %v10118_v3 = vld [vmem:[%s12317_s16 + $0x14] sm:$0xf] (%p1523_p5) }
 0x131   : >> { %7966 = vmatmul.mubr.msk.bf16.vlgmr.msra.gmra.mxu0 %vm1541_vm2, %v6996_v25  ;;  %v10121_v4 = vld [vmem:[%s12317_s16 + $0x18] sm:$0xf] (%p1523_p5)  ;;  %v10124_v5 = vld [vmem:[%s12317_s16 + $0x1c] sm:$0xf] (%p1523_p5)  ;;  %v10127_v6 = vld [vmem:[%s12317_s16 + $0x20] sm:$0xf] (%p1523_p5) }
 0x132   : >> { %7976 = vmatpush3.bf16.msra.mxu0 %v1535_v24  ;;  %7977 = vmatprep.mubr.msk.bf16.mxu0 %vm9561_vm1, %v9560_v17  ;;  %v10130_v7 = vld [vmem:[%s12317_s16 + $0x24] sm:$0xf] (%p1523_p5)  ;;  %v10133_v8 = vld [vmem:[%s12317_s16 + $0x28] sm:$0xf] (%p1523_p5)  ;;  %v10136_v9 = vld [vmem:[%s12317_s16 + $0x2c] sm:$0xf] (%p1523_p5) }
 0x133   : >> { %7987 = vmatprep.subr.bf16.mxu0 %v9560_v17  ;;  %v10139_v10 = vld [vmem:[%s12318_s11] ss:$0 sm:$0xff] (%p1523_p5) }
 0x139   : >> { %7978 = vmatmul.mubr.msk.bf16.vlgmr.msra.gmra.mxu0 %vm1541_vm2, %v6999_v26 }
 0x13a   : >> { %7988 = vmatpush3.bf16.msra.mxu0 %v1535_v24  ;;  %7989 = vmatprep.mubr.msk.bf16.mxu0 %vm9561_vm1, %v9560_v17 }
 0x141   : >> { %7990 = vmatmul.mubr.msk.bf16.vlgmr.msra.gmra.mxu0 %vm1541_vm2, %v7002_v27 }
 0x1f1   : >> { %v1579_v29 = vpop.f32.mrf.mxu0 }
 0x1f3   : >> { %v7967_v30 = vpop.f32.mrf.mxu0 }
 0x1f5   : >> { %v1582_v31 = vpop.f32.mrf.mxu0 }
 0x1f6   : >> { %v1586_v32 = vpack.c.bf16 %v1582_v31, %v1579_v29 }
 0x1f7   : >> { %v7968_v34 = vpop.f32.mrf.mxu0 }
 0x1f8   : >> { %7972 = vmatmul.mubr.msk.bf16.vlgmr.msra.gmra.mxu1 %vm1587_vm4, %v1586_v32 }
 0x1f9   : >> { %v1680_v35 = vpop.f32.mrf.mxu0  ;;  %7982 = vmatpush3.bf16.msra.mxu1 %v1692_v33  ;;  %7983 = vmatprep.mubr.msk.bf16.mxu1 %vm9561_vm1, %v9560_v17 }
 0x1fa   : >> { %7993 = vmatprep.subr.bf16.mxu1 %v9560_v17 }
 0x1fb   : >> { %v7979_v36 = vpop.f32.mrf.mxu0 }
 0x1fd   : >> { %v1683_v37 = vpop.f32.mrf.mxu0 }
 0x1fe   : >> { %v1687_v38 = vpack.c.bf16 %v1683_v37, %v1680_v35 }
 0x1ff   : >> { %v7980_v40 = vpop.f32.mrf.mxu0 }
 0x200   : >> { %7984 = vmatmul.mubr.msk.bf16.vlgmr.msra.gmra.mxu1 %vm1587_vm4, %v1687_v38 }
 0x201   : >> { %v1779_v41 = vpop.f32.mrf.mxu0  ;;  %7994 = vmatpush3.bf16.msra.mxu1 %v1791_v39  ;;  %7995 = vmatprep.mubr.msk.bf16.mxu1 %vm9561_vm1, %v9560_v17 }
 0x203   : >> { %v7991_v42 = vpop.f32.mrf.mxu0 }
 0x205   : >> { %v1782_v43 = vpop.f32.mrf.mxu0 }
 0x206   : >> { %v1786_v44 = vpack.c.bf16 %v1782_v43, %v1779_v41 }
 0x207   : >> { %v7992_v45 = vpop.f32.mrf.mxu0 }
 0x208   : >> { %7996 = vmatmul.mubr.msk.bf16.vlgmr.msra.gmra.mxu1 %vm1587_vm4, %v1786_v44 }
 0x2b8   : >> { %v1629_v46 = vpop.f32.mrf.mxu1 }
 0x2b9   : >> { %v1636_v53 = vadd.f32 %v1629_v46, %v10048_v15 }
 0x2ba   : >> { %v7973_v47 = vpop.f32.mrf.mxu1 }
 0x2bc   : >> { %v1632_v48 = vpop.f32.mrf.mxu1 }
 0x2bd   : >> { %v1637_v57 = vadd.f32 %v1632_v48, %v10050_v16 }
 0x2be   : >> { %v7974_v49 = vpop.f32.mrf.mxu1 }
 0x2c0   : >> { %v1728_v50 = vpop.f32.mrf.mxu1 }
 0x2c1   : >> { %v1735_v55 = vadd.f32 %v1728_v50, %v1636_v53 }
 0x2c2   : >> { %v7985_v51 = vpop.f32.mrf.mxu1 }
 0x2c4   : >> { %v1731_v52 = vpop.f32.mrf.mxu1 }
 0x2c5   : >> { %v1736_v60 = vadd.f32 %v1731_v52, %v1637_v57 }
 0x2c6   : >> { %v7986_v54 = vpop.f32.mrf.mxu1 }
 0x2c8   : >> { %v1827_v56 = vpop.f32.mrf.mxu1 }
 0x2c9   : >> { %v1834_v58 = vadd.f32 %v1827_v56, %v1735_v55 }
 0x2ca   : >> { %v7997_v59 = vpop.f32.mrf.mxu1 }
 0x2cb   : >> { %v1838_v61 = vmax.f32 %v1834_v58, 0.0 }
 0x2cc   : >> { %v1830_v62 = vpop.f32.mrf.mxu1 }
 0x2cd   : >> { %v7602_v63 = vpack.c.bf16 %v1838_v61, %v1838_v61  ;;  %v1835_v0 = vadd.f32 %v1830_v62, %v1736_v60 }
 0x2ce   : >> { %v7998_v17 = vpop.f32.mrf.mxu1 }
 0x2cf   : >> { %1852 = vst.msk [vmem:[%s1851_s4] sm:$0xf] %vm1516_vm0, %v7602_v63  ;;  %v1839_v18 = vmax.f32 %v1835_v0, 0.0  ;;  %1525 = sbr.rel (!%p1523_p5) target bundleno = 293 (0x125), region = 488 }
 0x2d1   : >> { %v7603_v19 = vpack.c.bf16 %v1839_v18, %v1839_v18 }
 0x2d3   : >> { %1853 = vst.msk [vmem:[%s1851_s4 + $0x4] sm:$0xf] %vm1516_vm0, %v7603_v19  ;;  %s10141_s4 = smov (%p1523_p5), 0  }
 0x2d4 LB: >> { %v7022_v11 = vcombine.low %v10109_v22, %v10112_v23  ;;  %v7027_v12 = vcombine.low %v10121_v4, %v10124_v5  ;;  %v9562_v13 = vmov 0.0   ;;  %v7021_v14 = vcombine.low %v10103_v20, %v10106_v21  ;;  %s7018_s26 = sshll.u32 %s9457_s4, 4  ;;  %s1880_s4 = sadd.s32 1, %s9457_s4   ;;  %s9457_s4 = sphi %s10141_s4, %s1880_s4  }
 0x2d5   : >> { %7999 = vmatprep.subr.bf16.mxu0 %v9562_v13  ;;  %8007 = vmatprep.subr.bf16.mxu1 %v9562_v13  ;;  %v7026_v15 = vcombine.low %v10115_v2, %v10118_v3  ;;  %s1882_s7 = sshra.s32 %s7018_s26, 3  ;;  %s1952_s17 = sadd.s32 32, %s7018_s26  ;;  %vm9563_vm5 = vmmov 0   ;;  %vm1905_vm6 = vcmask 261120   ;;  %v7032_v24 = vcombine.low %v10133_v8, %v10136_v9 }
 0x2d6   : >> { %8000 = vmatpush3.bf16.msra.mxu0 %v7022_v11  ;;  %8008 = vmatpush3.bf16.msra.mxu1 %v7027_v12  ;;  %s10156_s10 = sshll.u32 %s1882_s7, 2  ;;  %s1953_s11 = sshra.s32 %s1952_s17, 3  ;;  %v7031_v26 = vcombine.low %v10127_v6, %v10130_v7 }
 0x2d7   : >> { %8001 = vmatprep.subr.bf16.mxu0 %v9562_v13  ;;  %8009 = vmatprep.subr.bf16.mxu1 %v9562_v13  ;;  %s7024_s5 = sshll.u32 %s1953_s11, 2  ;;  %s1885_s6 = scalar_lea.vmem [#allocation3], %s10156_s10 }
 0x2d8   : >> { %8003 = vmatprep.mubr.msk.bf16.mxu0 %vm9563_vm5, %v9562_v13  ;;  %8011 = vmatprep.mubr.msk.bf16.mxu1 %vm9563_vm5, %v9562_v13  ;;  %s1956_s12 = scalar_lea.vmem [#allocation3], %s7024_s5  ;;  %s2022_s14 = sadd.s32 64, %s7018_s26 }
 0x2d9   : >> { %s2023_s15 = sshra.s32 %s2022_s14, 3  ;;  %s2103_s5 = scalar_lea.vmem [#allocation2], %s10156_s10 }
 0x2da   : >> { %8002 = vmatpush3.bf16.msra.mxu0 %v7021_v14  ;;  %8010 = vmatpush3.bf16.msra.mxu1 %v7026_v15  ;;  %v8948_v16 = vld [vmem:[%s1885_s6] sm:$0xff]   ;;  %s7029_s7 = sshll.u32 %s2023_s15, 2  ;;  %p1877_p13 = scmp.ge.s32.totalorder %s1880_s4, 30  }
 0x2db   : >> { %8015 = vmatprep.subr.bf16.mxu0 %v9562_v13  ;;  %v8949_v25 = vld [vmem:[%s1956_s12] sm:$0xff]   ;;  %s2026_s6 = scalar_lea.vmem [#allocation3], %s7029_s7  ;;  %s12319_s14 = sld [smem:[#allocation41_spill]] (%p1877_p13)  ;;  %v10230_v20 = vld [vmem:[#allocation8] sm:$0xff] (%p1877_p13)  ;;  %vm2130_vm7 = vcmask (%p1877_p13), 519168  }
 0x2dc   : >> { %v8950_v27 = vld [vmem:[%s2026_s6] sm:$0xff]   ;;  %s12320_s12 = sld [smem:[#allocation42_spill]] (%p1877_p13)  ;;  %s10242_s15 = smov (%p1877_p13), 0  }
 0x2dd   : >> { %8004 = vmatmul.mubr.msk.bf16.vlgmr.msra.gmra.mxu0 %vm1905_vm6, %v8948_v16  ;;  %8012 = vmatmul.mubr.msk.bf16.vlgmr.msra.gmra.mxu1 %vm1905_vm6, %v8949_v25  ;;  %v10232_v21 = vld [vmem:[#allocation8 + $0x8] sm:$0xff] (%p1877_p13)  ;;  %2131 = vst.msk [vmem:[#allocation3] sm:$0xf] (%p1877_p13), %vm2130_vm7, %v12237_v1  ;;  %2132 = vst.msk [vmem:[#allocation3 + $0x4] sm:$0xf] (%p1877_p13), %vm2130_vm7, %v12237_v1 }
 0x2de   : >> { %8016 = vmatpush3.bf16.msra.mxu0 %v7032_v24  ;;  %8019 = vmatprep.mubr.msk.bf16.mxu0 %vm9563_vm5, %v9562_v13  ;;  %2133 = vst.msk [vmem:[#allocation3 + $0xf8] sm:$0xf] (%p1877_p13), %vm2130_vm7, %v12237_v1  ;;  %2134 = vst.msk [vmem:[#allocation3 + $0xfc] sm:$0xf] (%p1877_p13), %vm2130_vm7, %v12237_v1 }
 0x2df   : >> { %8017 = vmatprep.subr.bf16.mxu0 %v9562_v13 }
 0x2e1   : > { %v10177_v50 = vld [vmem:[%s12319_s14] sm:$0xf] (%p1877_p13)  ;;  %v10180_v51 = vld [vmem:[%s12319_s14 + $0x4] sm:$0xf] (%p1877_p13)  ;;  %v10183_v52 = vld [vmem:[%s12319_s14 + $0x8] sm:$0xf] (%p1877_p13) }
 0x2e2   : >> { %8018 = vmatpush3.bf16.msra.mxu0 %v7031_v26  ;;  %v10186_v53 = vld [vmem:[%s12319_s14 + $0xc] sm:$0xf] (%p1877_p13)  ;;  %v10189_v54 = vld [vmem:[%s12319_s14 + $0x10] sm:$0xf] (%p1877_p13)  ;;  %v10192_v55 = vld [vmem:[%s12319_s14 + $0x14] sm:$0xf] (%p1877_p13) }
 0x2e3   : > { %v10195_v56 = vld [vmem:[%s12320_s12] sm:$0xf] (%p1877_p13)  ;;  %v10198_v57 = vld [vmem:[%s12320_s12 + $0x4] sm:$0xf] (%p1877_p13)  ;;  %v10201_v58 = vld [vmem:[%s12320_s12 + $0x8] sm:$0xf] (%p1877_p13) }
 0x2e4   : > { %v10204_v59 = vld [vmem:[%s12320_s12 + $0xc] sm:$0xf] (%p1877_p13)  ;;  %v10207_v60 = vld [vmem:[%s12320_s12 + $0x10] sm:$0xf] (%p1877_p13)  ;;  %v10210_v61 = vld [vmem:[%s12320_s12 + $0x14] sm:$0xf] (%p1877_p13) }
 0x2e5   : >> { %8020 = vmatmul.mubr.msk.bf16.vlgmr.msra.gmra.mxu0 %vm1905_vm6, %v8950_v27  ;;  %v10213_v62 = vld [vmem:[%s12320_s12 + $0x18] sm:$0xf] (%p1877_p13)  ;;  %v10216_v63 = vld [vmem:[%s12320_s12 + $0x1c] sm:$0xf] (%p1877_p13)  ;;  %v10219_v0 = vld [vmem:[%s12320_s12 + $0x20] sm:$0xf] (%p1877_p13) }
 0x2e6   : > { %v10222_v17 = vld [vmem:[%s12320_s12 + $0x24] sm:$0xf] (%p1877_p13)  ;;  %v10225_v18 = vld [vmem:[%s12320_s12 + $0x28] sm:$0xf] (%p1877_p13)  ;;  %v10228_v19 = vld [vmem:[%s12320_s12 + $0x2c] sm:$0xf] (%p1877_p13) }
 0x39d   : >> { %v1943_v28 = vpop.f32.mrf.mxu0  ;;  %v2013_v29 = vpop.f32.mrf.mxu1 }
 0x39e   : >> { %v1950_v32 = vadd.f32 %v10139_v10, %v1943_v28 }
 0x39f   : >> { %v8005_v30 = vpop.f32.mrf.mxu0  ;;  %v8013_v31 = vpop.f32.mrf.mxu1 }
 0x3a0   : >> { %v2020_v37 = vadd.f32 %v2013_v29, %v1950_v32 }
 0x3a1   : >> { %v1946_v33 = vpop.f32.mrf.mxu0  ;;  %v2016_v34 = vpop.f32.mrf.mxu1 }
 0x3a2   : >> { %v1951_v38 = vadd.f32 %v10139_v10, %v1946_v33 }
 0x3a3   : >> { %v8006_v35 = vpop.f32.mrf.mxu0  ;;  %v8014_v36 = vpop.f32.mrf.mxu1 }
 0x3a4   : >> { %v2021_v42 = vadd.f32 %v2016_v34, %v1951_v38 }
 0x3a5   : >> { %v2083_v39 = vpop.f32.mrf.mxu0 }
 0x3a6   : >> { %v2090_v40 = vadd.f32 %v2083_v39, %v2020_v37 }
 0x3a7   : >> { %v8021_v41 = vpop.f32.mrf.mxu0 }
 0x3a8   : >> { %v2092_v43 = vmax.f32 %v2090_v40, 0.0 }
 0x3a9   : >> { %v2086_v44 = vpop.f32.mrf.mxu0 }
 0x3aa   : >> { %v7604_v45 = vpack.c.bf16 %v2092_v43, %v2092_v43  ;;  %v2091_v46 = vadd.f32 %v2086_v44, %v2021_v42 }
 0x3ab   : >> { %v8022_v47 = vpop.f32.mrf.mxu0 }
 0x3ac   : >> { %2104 = vst.msk [vmem:[%s2103_s5] sm:$0xf] %vm1516_vm0, %v7604_v45  ;;  %v2093_v48 = vmax.f32 %v2091_v46, 0.0  ;;  %1879 = sbr.rel (!%p1877_p13) target bundleno = 724 (0x2d4), region = 499 }
 0x3ae   : >> { %v7605_v49 = vpack.c.bf16 %v2093_v48, %v2093_v48 }
 0x3b0   : >> { %2105 = vst.msk [vmem:[%s2103_s5 + $0x4] sm:$0xf] %vm1516_vm0, %v7605_v49 }
 0x3b1 LB: >> { %v9564_v22 = vmov 0.0   ;;  %vm9565_vm8 = vmmov 0   ;;  %s7049_s4 = sshll.u32 %s9461_s15, 4  ;;  %v7051_v2 = vcombine.low %v10177_v50, %v10180_v51  ;;  %v7057_v3 = vcombine.low %v10183_v52, %v10186_v53  ;;  %s2140_s15 = sadd.s32 1, %s9461_s15   ;;  %s9461_s15 = sphi %s10242_s15, %s2140_s15  }
 0x3b2   : >> { %8023 = vmatprep.subr.bf16.mxu0 %v9564_v22  ;;  %8025 = vmatprep.mubr.msk.bf16.mxu0 %vm9565_vm8, %v9564_v22  ;;  %s2142_s26 = sshra.s32 %s7049_s4, 3  ;;  %v7062_v4 = vcombine.low %v10189_v54, %v10192_v55  ;;  %v7055_v5 = vcombine.low %v10201_v58, %v10204_v59  ;;  %v7054_v6 = vcombine.low %v10195_v56, %v10198_v57  ;;  %s7607_s11 = sadd.s32 16, %s7049_s4 }
 0x3b3   : >> { %8029 = vmatprep.subr.bf16.mxu1 %v9564_v22  ;;  %8033 = vmatprep.mubr.msk.bf16.mxu1 %vm9565_vm8, %v9564_v22  ;;  %s7050_s17 = sshll.u32 %s2142_s26, 2  ;;  %v7060_v10 = vcombine.low %v10213_v62, %v10216_v63  ;;  %v7059_v14 = vcombine.low %v10207_v60, %v10210_v61  ;;  %v7065_v24 = vcombine.low %v10225_v18, %v10228_v19  ;;  %s2492_s7 = sshra.s32 %s7607_s11, 3 }
 0x3b4   : >> { %s2145_s10 = scalar_lea.vmem [#allocation2], %s7050_s17  ;;  %8030 = vmatpush3.bf16.msra.mxu1 %v7055_v5  ;;  %v7064_v28 = vcombine.low %v10219_v0, %v10222_v17  ;;  %s7070_s6 = sshll.u32 %s2492_s7, 2 }
 0x3b5   : >> { %8031 = vmatprep.subr.bf16.mxu1 %v9564_v22  ;;  %s2495_s5 = scalar_lea.vmem [#allocation3], %s7070_s6  ;;  %p2137_p6 = scmp.ge.s32.totalorder %s2140_s15, 30  }
 0x3b6   : > { %s12321_s4 = sld [smem:[#allocation43_spill]] (%p2137_p6)  ;;  %s10364_s26 = smov (%p2137_p6), 0  }
 0x3b7   : >> { %v8951_v23 = vld [vmem:[%s2145_s10] sm:$0xff]   ;;  %s12322_s15 = sld [smem:[#allocation44_spill]] (%p2137_p6) }
 0x3b8   : >> { %8024 = vmatpush3.bf16.msra.mxu0 %v8951_v23  ;;  %8032 = vmatpush3.bf16.msra.mxu1 %v7054_v6 }
 0x3b9   : >> { %8037 = vmatprep.subr.bf16.mxu0 %v9564_v22  ;;  %8043 = vmatprep.subr.bf16.mxu1 %v9564_v22 }
 0x3bb   : >> { %8026 = vmatmul.mubr.msk.bf16.vlgmr.msra.gmra.mxu0 %vm1541_vm2, %v7051_v2 }
 0x3bc   : >> { %8038 = vmatpush3.bf16.msra.mxu0 %v8951_v23  ;;  %8039 = vmatprep.mubr.msk.bf16.mxu0 %vm9565_vm8, %v9564_v22  ;;  %v10290_v5 = vld [vmem:[%s12321_s4] sm:$0xf] (%p2137_p6)  ;;  %v10293_v6 = vld [vmem:[%s12321_s4 + $0x4] sm:$0xf] (%p2137_p6)  ;;  %v10296_v50 = vld [vmem:[%s12321_s4 + $0x8] sm:$0xf] (%p2137_p6) }
 0x3bd   : >> { %8051 = vmatprep.subr.bf16.mxu0 %v9564_v22  ;;  %v10299_v51 = vld [vmem:[%s12321_s4 + $0xc] sm:$0xf] (%p2137_p6)  ;;  %v10302_v52 = vld [vmem:[%s12321_s4 + $0x10] sm:$0xf] (%p2137_p6)  ;;  %v10305_v53 = vld [vmem:[%s12321_s4 + $0x14] sm:$0xf] (%p2137_p6) }
 0x3be   : > { %v10308_v54 = vld [vmem:[%s12321_s4 + $0x18] sm:$0xf] (%p2137_p6)  ;;  %v10311_v55 = vld [vmem:[%s12321_s4 + $0x1c] sm:$0xf] (%p2137_p6)  ;;  %v10314_v56 = vld [vmem:[%s12321_s4 + $0x20] sm:$0xf] (%p2137_p6) }
 0x3bf   : > { %v10317_v57 = vld [vmem:[%s12321_s4 + $0x24] sm:$0xf] (%p2137_p6)  ;;  %v10320_v58 = vld [vmem:[%s12321_s4 + $0x28] sm:$0xf] (%p2137_p6)  ;;  %v10323_v59 = vld [vmem:[%s12321_s4 + $0x2c] sm:$0xf] (%p2137_p6) }
 0x3c0   : > { %v10326_v60 = vld [vmem:[%s12321_s4 + $0x30] sm:$0xf] (%p2137_p6)  ;;  %v10329_v61 = vld [vmem:[%s12321_s4 + $0x34] sm:$0xf] (%p2137_p6)  ;;  %v10332_v62 = vld [vmem:[%s12321_s4 + $0x38] sm:$0xf] (%p2137_p6) }
 0x3c1   : > { %v10335_v63 = vld [vmem:[%s12321_s4 + $0x3c] sm:$0xf] (%p2137_p6)  ;;  %v10338_v0 = vld [vmem:[%s12321_s4 + $0x40] sm:$0xf] (%p2137_p6)  ;;  %v10341_v17 = vld [vmem:[%s12321_s4 + $0x44] sm:$0xf] (%p2137_p6) }
 0x3c2   : > { %v10344_v18 = vld [vmem:[%s12321_s4 + $0x48] sm:$0xf] (%p2137_p6)  ;;  %v10347_v19 = vld [vmem:[%s12321_s4 + $0x4c] sm:$0xf] (%p2137_p6) }
 0x3c3   : >> { %8040 = vmatmul.mubr.msk.bf16.vlgmr.msra.gmra.mxu0 %vm1541_vm2, %v7057_v3 }
 0x3c4   : >> { %8052 = vmatpush3.bf16.msra.mxu0 %v8951_v23  ;;  %8053 = vmatprep.mubr.msk.bf16.mxu0 %vm9565_vm8, %v9564_v22 }
 0x3cb   : >> { %8054 = vmatmul.mubr.msk.bf16.vlgmr.msra.gmra.mxu0 %vm1541_vm2, %v7062_v4 }
 0x47b   : >> { %v2197_v7 = vpop.f32.mrf.mxu0 }
 0x47d   : >> { %v8027_v8 = vpop.f32.mrf.mxu0 }
 0x47e   : > { %v10359_v8 = vld [vmem:[%s12321_s4 + $0x5c] sm:$0xf] (%p2137_p6) }
 0x47f   : >> { %v2200_v9 = vpop.f32.mrf.mxu0 }
 0x480   : >> { %v2204_v11 = vpack.c.bf16 %v2200_v9, %v2197_v7  ;;  %v10356_v7 = vld [vmem:[%s12321_s4 + $0x58] sm:$0xf] (%p2137_p6)  ;;  %v10362_v9 = vld [vmem:[%s12322_s15] ss:$0 sm:$0xff] (%p2137_p6) }
 0x481   : >> { %v8028_v12 = vpop.f32.mrf.mxu0 }
 0x482   : >> { %8034 = vmatmul.mubr.msk.bf16.vlgmr.msra.gmra.mxu1 %vm1905_vm6, %v2204_v11 }
 0x483   : >> { %v2306_v13 = vpop.f32.mrf.mxu0  ;;  %8044 = vmatpush3.bf16.msra.mxu1 %v7060_v10  ;;  %8047 = vmatprep.mubr.msk.bf16.mxu1 %vm9565_vm8, %v9564_v22 }
 0x484   : >> { %8045 = vmatprep.subr.bf16.mxu1 %v9564_v22 }
 0x485   : >> { %v8041_v15 = vpop.f32.mrf.mxu0 }
 0x487   : >> { %v2309_v16 = vpop.f32.mrf.mxu0  ;;  %8046 = vmatpush3.bf16.msra.mxu1 %v7059_v14 }
 0x488   : >> { %v2313_v25 = vpack.c.bf16 %v2309_v16, %v2306_v13  ;;  %8057 = vmatprep.subr.bf16.mxu1 %v9564_v22 }
 0x489   : >> { %v8042_v26 = vpop.f32.mrf.mxu0 }
 0x48a   : >> { %8048 = vmatmul.mubr.msk.bf16.vlgmr.msra.gmra.mxu1 %vm1905_vm6, %v2313_v25 }
 0x48b   : >> { %v2414_v27 = vpop.f32.mrf.mxu0  ;;  %8058 = vmatpush3.bf16.msra.mxu1 %v7065_v24  ;;  %8061 = vmatprep.mubr.msk.bf16.mxu1 %vm9565_vm8, %v9564_v22 }
 0x48c   : >> { %8059 = vmatprep.subr.bf16.mxu1 %v9564_v22 }
 0x48d   : >> { %v8055_v29 = vpop.f32.mrf.mxu0 }
 0x48f   : >> { %v2417_v30 = vpop.f32.mrf.mxu0  ;;  %8060 = vmatpush3.bf16.msra.mxu1 %v7064_v28 }
 0x490   : >> { %v2421_v31 = vpack.c.bf16 %v2417_v30, %v2414_v27 }
 0x491   : >> { %v8056_v32 = vpop.f32.mrf.mxu0 }
 0x492   : >> { %8062 = vmatmul.mubr.msk.bf16.vlgmr.msra.gmra.mxu1 %vm1905_vm6, %v2421_v31 }
 0x542   : >> { %v2255_v33 = vpop.f32.mrf.mxu1 }
 0x543   : >> { %v2262_v40 = vadd.f32 %v2255_v33, %v10230_v20  ;;  %v10350_v20 = vld [vmem:[%s12321_s4 + $0x50] sm:$0xf] (%p2137_p6) }
 0x544   : >> { %v8035_v34 = vpop.f32.mrf.mxu1 }
 0x546   : >> { %v2258_v35 = vpop.f32.mrf.mxu1 }
 0x547   : >> { %v2263_v44 = vadd.f32 %v2258_v35, %v10232_v21  ;;  %v10353_v21 = vld [vmem:[%s12321_s4 + $0x54] sm:$0xf] (%p2137_p6) }
 0x548   : >> { %v8036_v36 = vpop.f32.mrf.mxu1 }
 0x54a   : >> { %v2363_v37 = vpop.f32.mrf.mxu1 }
 0x54b   : >> { %v2370_v42 = vadd.f32 %v2363_v37, %v2262_v40 }
 0x54c   : >> { %v8049_v38 = vpop.f32.mrf.mxu1 }
 0x54e   : >> { %v2366_v39 = vpop.f32.mrf.mxu1 }
 0x54f   : >> { %v2371_v47 = vadd.f32 %v2366_v39, %v2263_v44 }
 0x550   : >> { %v8050_v41 = vpop.f32.mrf.mxu1 }
 0x552   : >> { %v2471_v43 = vpop.f32.mrf.mxu1 }
 0x553   : >> { %v2478_v45 = vadd.f32 %v2471_v43, %v2370_v42 }
 0x554   : >> { %v8063_v46 = vpop.f32.mrf.mxu1 }
 0x555   : >> { %v2482_v48 = vmax.f32 %v2478_v45, 0.0 }
 0x556   : >> { %v2474_v49 = vpop.f32.mrf.mxu1 }
 0x557   : >> { %v7608_v22 = vpack.c.bf16 %v2482_v48, %v2482_v48  ;;  %v2479_v23 = vadd.f32 %v2474_v49, %v2371_v47 }
 0x558   : >> { %v8064_v2 = vpop.f32.mrf.mxu1 }
 0x559   : >> { %2496 = vst.msk [vmem:[%s2495_s5] sm:$0xf] %vm2130_vm7, %v7608_v22  ;;  %v2483_v3 = vmax.f32 %v2479_v23, 0.0  ;;  %2139 = sbr.rel (!%p2137_p6) target bundleno = 945 (0x3b1), region = 510 }
 0x55b   : >> { %v7609_v4 = vpack.c.bf16 %v2483_v3, %v2483_v3 }
 0x55d   : >> { %2497 = vst.msk [vmem:[%s2495_s5 + $0x4] sm:$0xf] %vm2130_vm7, %v7609_v4 }
 0x55e LB: >> { %v7094_v10 = vcombine.low %v10308_v54, %v10311_v55  ;;  %v7101_v11 = vcombine.low %v10332_v62, %v10335_v63  ;;  %v9566_v12 = vmov 0.0   ;;  %v7093_v13 = vcombine.low %v10302_v52, %v10305_v53  ;;  %s7088_s17 = sshll.u32 %s9465_s26, 4  ;;  %s2536_s26 = sadd.s32 1, %s9465_s26   ;;  %s9465_s26 = sphi %s10364_s26, %s2536_s26  }
 0x55f   : >> { %8065 = vmatprep.subr.bf16.mxu0 %v9566_v12  ;;  %8077 = vmatprep.subr.bf16.mxu1 %v9566_v12  ;;  %v7100_v14 = vcombine.low %v10326_v60, %v10329_v61  ;;  %s2538_s10 = sshra.s32 %s7088_s17, 3  ;;  %s2620_s11 = sadd.s32 32, %s7088_s17  ;;  %vm9567_vm9 = vmmov 0   ;;  %v7092_v15 = vcombine.low %v10296_v50, %v10299_v51  ;;  %v7099_v16 = vcombine.low %v10320_v58, %v10323_v59 }
 0x560   : >> { %8066 = vmatpush3.bf16.msra.mxu0 %v7094_v10  ;;  %8078 = vmatpush3.bf16.msra.mxu1 %v7101_v11  ;;  %s10379_s7 = sshll.u32 %s2538_s10, 2  ;;  %s2621_s6 = sshra.s32 %s2620_s11, 3  ;;  %v7091_v24 = vcombine.low %v10290_v5, %v10293_v6  ;;  %v7098_v25 = vcombine.low %v10314_v56, %v10317_v57  ;;  %vm2573_vm10 = vcmask 523264   ;;  %v7108_v28 = vcombine.low %v10356_v7, %v10359_v8 }
 0x561   : >> { %8067 = vmatprep.subr.bf16.mxu0 %v9566_v12  ;;  %8079 = vmatprep.subr.bf16.mxu1 %v9566_v12  ;;  %s7096_s5 = sshll.u32 %s2621_s6, 2  ;;  %s2541_s15 = scalar_lea.vmem [#allocation3], %s10379_s7  ;;  %v7107_v29 = vcombine.low %v10350_v20, %v10353_v21  ;;  %v7106_v30 = vcombine.low %v10344_v18, %v10347_v19  ;;  %v7105_v31 = vcombine.low %v10338_v0, %v10341_v17 }
 0x562   : >> { %8073 = vmatprep.mubr.msk.bf16.mxu0 %vm9567_vm9, %v9566_v12  ;;  %8085 = vmatprep.mubr.msk.bf16.mxu1 %vm9567_vm9, %v9566_v12  ;;  %s2624_s4 = scalar_lea.vmem [#allocation3], %s7096_s5  ;;  %s2702_s12 = sadd.s32 64, %s7088_s17 }
 0x563   : >> { %s2703_s10 = sshra.s32 %s2702_s12, 3  ;;  %p2533_p10 = scmp.ge.s32.totalorder %s2536_s26, 28  }
 0x564   : >> { %8068 = vmatpush3.bf16.msra.mxu0 %v7093_v13  ;;  %8080 = vmatpush3.bf16.msra.mxu1 %v7100_v14  ;;  %s7103_s14 = sshll.u32 %s2703_s10, 2  ;;  %v8952_v26 = vld [vmem:[%s2541_s15] sm:$0xff]   ;;  %s12323_s12 = sld [smem:[#allocation45_spill]] (%p2533_p10) }
 0x565   : >> { %8069 = vmatprep.subr.bf16.mxu0 %v9566_v12  ;;  %8081 = vmatprep.subr.bf16.mxu1 %v9566_v12  ;;  %s2706_s11 = scalar_lea.vmem [#allocation3], %s7103_s14  ;;  %v8953_v27 = vld [vmem:[%s2624_s4] sm:$0xff]   ;;  %s2795_s14 = scalar_lea.vmem [#allocation2], %s10379_s7 }
 0x566   : >> { %v8954_v32 = vld [vmem:[%s2706_s11] sm:$0xff]   ;;  %s12324_s4 = sld [smem:[#allocation46_spill]] (%p2533_p10)  ;;  %s10513_s26 = smov (%p2533_p10), 0  }
 0x567   : > { %2834 = vst.msk [vmem:[#allocation3] sm:$0xf] (%p2533_p10), %vm2130_vm7, %v12237_v1  ;;  %2835 = vst.msk [vmem:[#allocation3 + $0x4] sm:$0xf] (%p2533_p10), %vm2130_vm7, %v12237_v1 }
 0x568   : >> { %8070 = vmatpush3.bf16.msra.mxu0 %v7092_v15  ;;  %8082 = vmatpush3.bf16.msra.mxu1 %v7099_v16  ;;  %2836 = vst.msk [vmem:[#allocation3 + $0xe8] sm:$0xf] (%p2533_p10), %vm2130_vm7, %v12237_v1  ;;  %2837 = vst.msk [vmem:[#allocation3 + $0xec] sm:$0xf] (%p2533_p10), %vm2130_vm7, %v12237_v1  ;;  %v10509_v15 = vld [vmem:[#allocation10] sm:$0xff] (%p2533_p10)  ;;  %v10511_v16 = vld [vmem:[#allocation10 + $0x8] sm:$0xff] (%p2533_p10) }
 0x569   : >> { %8071 = vmatprep.subr.bf16.mxu0 %v9566_v12  ;;  %8083 = vmatprep.subr.bf16.mxu1 %v9566_v12 }
 0x56a   : > { %v10412_v10 = vld [vmem:[%s12323_s12] sm:$0xf] (%p2533_p10)  ;;  %v10415_v11 = vld [vmem:[%s12323_s12 + $0x4] sm:$0xf] (%p2533_p10)  ;;  %v10429_v5 = vld [vmem:[%s12323_s12 + $0xc] sm:$0xf] (%p2533_p10) }
 0x56b   : > { %v10432_v6 = vld [vmem:[%s12323_s12 + $0x10] sm:$0xf] (%p2533_p10)  ;;  %v10435_v50 = vld [vmem:[%s12323_s12 + $0x14] sm:$0xf] (%p2533_p10) }
 0x56c   : >> { %8072 = vmatpush3.bf16.msra.mxu0 %v7091_v24  ;;  %8084 = vmatpush3.bf16.msra.mxu1 %v7098_v25  ;;  %v10438_v51 = vld [vmem:[%s12324_s4] sm:$0xf] (%p2533_p10)  ;;  %v10441_v52 = vld [vmem:[%s12324_s4 + $0x4] sm:$0xf] (%p2533_p10)  ;;  %v10444_v53 = vld [vmem:[%s12324_s4 + $0x8] sm:$0xf] (%p2533_p10) }
 0x56d   : >> { %8089 = vmatprep.subr.bf16.mxu0 %v9566_v12  ;;  %v10447_v54 = vld [vmem:[%s12324_s4 + $0xc] sm:$0xf] (%p2533_p10)  ;;  %v10450_v55 = vld [vmem:[%s12324_s4 + $0x10] sm:$0xf] (%p2533_p10)  ;;  %v10453_v56 = vld [vmem:[%s12324_s4 + $0x14] sm:$0xf] (%p2533_p10) }
 0x56e   : > { %v10456_v57 = vld [vmem:[%s12324_s4 + $0x18] sm:$0xf] (%p2533_p10)  ;;  %v10459_v58 = vld [vmem:[%s12324_s4 + $0x1c] sm:$0xf] (%p2533_p10)  ;;  %v10462_v59 = vld [vmem:[%s12324_s4 + $0x20] sm:$0xf] (%p2533_p10) }
 0x56f   : >> { %8074 = vmatmul.mubr.msk.bf16.vlgmr.msra.gmra.mxu0 %vm2573_vm10, %v8952_v26  ;;  %8086 = vmatmul.mubr.msk.bf16.vlgmr.msra.gmra.mxu1 %vm2573_vm10, %v8953_v27  ;;  %v10465_v60 = vld [vmem:[%s12324_s4 + $0x24] sm:$0xf] (%p2533_p10)  ;;  %v10468_v61 = vld [vmem:[%s12324_s4 + $0x28] sm:$0xf] (%p2533_p10)  ;;  %v10471_v62 = vld [vmem:[%s12324_s4 + $0x2c] sm:$0xf] (%p2533_p10) }
 0x570   : >> { %8090 = vmatpush3.bf16.msra.mxu0 %v7108_v28  ;;  %8097 = vmatprep.mubr.msk.bf16.mxu0 %vm9567_vm9, %v9566_v12  ;;  %v10474_v63 = vld [vmem:[%s12324_s4 + $0x30] sm:$0xf] (%p2533_p10)  ;;  %v10477_v0 = vld [vmem:[%s12324_s4 + $0x34] sm:$0xf] (%p2533_p10)  ;;  %v10480_v17 = vld [vmem:[%s12324_s4 + $0x38] sm:$0xf] (%p2533_p10) }
 0x571   : >> { %8091 = vmatprep.subr.bf16.mxu0 %v9566_v12  ;;  %v10483_v18 = vld [vmem:[%s12324_s4 + $0x3c] sm:$0xf] (%p2533_p10)  ;;  %v10486_v19 = vld [vmem:[%s12324_s4 + $0x40] sm:$0xf] (%p2533_p10)  ;;  %v10489_v20 = vld [vmem:[%s12324_s4 + $0x44] sm:$0xf] (%p2533_p10) }
 0x572   : > { %v10492_v21 = vld [vmem:[%s12324_s4 + $0x48] sm:$0xf] (%p2533_p10)  ;;  %v10495_v7 = vld [vmem:[%s12324_s4 + $0x4c] sm:$0xf] (%p2533_p10)  ;;  %v10498_v8 = vld [vmem:[%s12324_s4 + $0x50] sm:$0xf] (%p2533_p10) }
 0x573   : > { %v10504_v13 = vld [vmem:[%s12324_s4 + $0x58] sm:$0xf] (%p2533_p10)  ;;  %v10507_v14 = vld [vmem:[%s12324_s4 + $0x5c] sm:$0xf] (%p2533_p10) }
 0x574   : >> { %8092 = vmatpush3.bf16.msra.mxu0 %v7107_v29 }
 0x575   : >> { %8093 = vmatprep.subr.bf16.mxu0 %v9566_v12 }
 0x578   : >> { %8094 = vmatpush3.bf16.msra.mxu0 %v7106_v30 }
 0x579   : >> { %8095 = vmatprep.subr.bf16.mxu0 %v9566_v12  ;;  %v10418_v12 = vld [vmem:[%s12323_s12 + $0x8] sm:$0xf] (%p2533_p10) }
 0x57c   : >> { %8096 = vmatpush3.bf16.msra.mxu0 %v7105_v31 }
 0x57f   : >> { %8098 = vmatmul.mubr.msk.bf16.vlgmr.msra.gmra.mxu0 %vm2573_vm10, %v8954_v32 }
 0x62f   : >> { %v2611_v33 = vpop.f32.mrf.mxu0  ;;  %v2693_v34 = vpop.f32.mrf.mxu1 }
 0x630   : >> { %v2618_v41 = vadd.f32 %v10362_v9, %v2611_v33 }
 0x631   : >> { %v8075_v35 = vpop.f32.mrf.mxu0  ;;  %v8087_v36 = vpop.f32.mrf.mxu1 }
 0x632   : >> { %v2700_v42 = vadd.f32 %v2693_v34, %v2618_v41 }
 0x633   : >> { %v2614_v37 = vpop.f32.mrf.mxu0  ;;  %v2696_v38 = vpop.f32.mrf.mxu1 }
 0x634   : >> { %v2619_v43 = vadd.f32 %v10362_v9, %v2614_v37  ;;  %v10501_v9 = vld [vmem:[%s12324_s4 + $0x54] sm:$0xf] (%p2533_p10) }
 0x635   : >> { %v8076_v39 = vpop.f32.mrf.mxu0  ;;  %v8088_v40 = vpop.f32.mrf.mxu1 }
 0x636   : >> { %v2701_v47 = vadd.f32 %v2696_v38, %v2619_v43 }
 0x63f   : >> { %v2775_v44 = vpop.f32.mrf.mxu0 }
 0x640   : >> { %v2782_v45 = vadd.f32 %v2775_v44, %v2700_v42 }
 0x641   : >> { %v8099_v46 = vpop.f32.mrf.mxu0 }
 0x642   : >> { %v2784_v48 = vmax.f32 %v2782_v45, 0.0 }
 0x643   : >> { %v2778_v49 = vpop.f32.mrf.mxu0 }
 0x644   : >> { %v7610_v22 = vpack.c.bf16 %v2784_v48, %v2784_v48  ;;  %v2783_v23 = vadd.f32 %v2778_v49, %v2701_v47 }
 0x645   : >> { %v8100_v2 = vpop.f32.mrf.mxu0 }
 0x646   : >> { %2796 = vst.msk [vmem:[%s2795_s14] sm:$0xf] %vm2130_vm7, %v7610_v22  ;;  %v2785_v3 = vmax.f32 %v2783_v23, 0.0  ;;  %2535 = sbr.rel (!%p2533_p10) target bundleno = 1374 (0x55e), region = 521 }
 0x648   : >> { %v7611_v4 = vpack.c.bf16 %v2785_v3, %v2785_v3 }
 0x64a   : >> { %2797 = vst.msk [vmem:[%s2795_s14 + $0x4] sm:$0xf] %vm2130_vm7, %v7611_v4 }
 0x64b LB: >> { %v9568_v24 = vmov 0.0   ;;  %vm9569_vm11 = vmmov 0   ;;  %v7141_v25 = vcombine.low %v10456_v57, %v10459_v58  ;;  %s7133_s17 = sshll.u32 %s9469_s26, 4  ;;  %v7140_v26 = vcombine.low %v10450_v55, %v10453_v56  ;;  %s2843_s26 = sadd.s32 1, %s9469_s26   ;;  %s9469_s26 = sphi %s10513_s26, %s2843_s26  }
 0x64c   : >> { %8101 = vmatprep.subr.bf16.mxu0 %v9568_v24  ;;  %8103 = vmatprep.mubr.msk.bf16.mxu0 %vm9569_vm11, %v9568_v24  ;;  %s2845_s7 = sshra.s32 %s7133_s17, 3  ;;  %v7135_v28 = vcombine.low %v10412_v10, %v10415_v11  ;;  %v7143_v29 = vcombine.low %v10418_v12, %v10429_v5  ;;  %v7139_v30 = vcombine.low %v10444_v53, %v10447_v54  ;;  %s7613_s15 = sadd.s32 16, %s7133_s17 }
 0x64d   : >> { %8107 = vmatprep.subr.bf16.mxu1 %v9568_v24  ;;  %8115 = vmatprep.mubr.msk.bf16.mxu1 %vm9569_vm11, %v9568_v24  ;;  %s7134_s6 = sshll.u32 %s2845_s7, 2  ;;  %v7148_v31 = vcombine.low %v10480_v17, %v10483_v18  ;;  %v7138_v32 = vcombine.low %v10438_v51, %v10441_v52  ;;  %v7147_v33 = vcombine.low %v10474_v63, %v10477_v0  ;;  %s3231_s10 = sshra.s32 %s7613_s15, 3 }
 0x64e   : >> { %8108 = vmatpush3.bf16.msra.mxu1 %v7141_v25  ;;  %s2848_s5 = scalar_lea.vmem [#allocation2], %s7134_s6  ;;  %v7146_v34 = vcombine.low %v10468_v61, %v10471_v62  ;;  %v7145_v35 = vcombine.low %v10462_v59, %v10465_v60  ;;  %v7150_v46 = vcombine.low %v10432_v6, %v10435_v50  ;;  %v7155_v47 = vcombine.low %v10504_v13, %v10507_v14  ;;  %s7160_s11 = sshll.u32 %s3231_s10, 2 }
 0x64f   : >> { %8109 = vmatprep.subr.bf16.mxu1 %v9568_v24  ;;  %v7154_v48 = vcombine.low %v10498_v8, %v10501_v9  ;;  %v7153_v49 = vcombine.low %v10492_v21, %v10495_v7  ;;  %v7152_v22 = vcombine.low %v10486_v19, %v10489_v20  ;;  %s3234_s14 = scalar_lea.vmem [#allocation3], %s7160_s11  ;;  %p2840_p12 = scmp.ge.s32.totalorder %s2843_s26, 28  }
 0x650   : > { %s12325_s17 = sld [smem:[#allocation47_spill]] (%p2840_p12)  ;;  %v10665_v19 = vld [vmem:[#allocation11] ss:$0 sm:$0xff] (%p2840_p12)  ;;  %s10667_s26 = smov (%p2840_p12), 0  }
 0x651   : >> { %v8955_v27 = vld [vmem:[%s2848_s5] sm:$0xff]  }
 0x652   : >> { %8110 = vmatpush3.bf16.msra.mxu1 %v7140_v26  ;;  %8102 = vmatpush3.bf16.msra.mxu0 %v8955_v27 }
 0x653   : >> { %8111 = vmatprep.subr.bf16.mxu1 %v9568_v24  ;;  %8119 = vmatprep.subr.bf16.mxu0 %v9568_v24 }
 0x655   : >> { %8104 = vmatmul.mubr.msk.bf16.vlgmr.msra.gmra.mxu0 %vm1541_vm2, %v7135_v28 }
 0x656   : >> { %8120 = vmatpush3.bf16.msra.mxu0 %v8955_v27  ;;  %8121 = vmatprep.mubr.msk.bf16.mxu0 %vm9569_vm11, %v9568_v24  ;;  %v10600_v10 = vld [vmem:[%s12325_s17 + $0x8] sm:$0xf] (%p2840_p12)  ;;  %v10603_v11 = vld [vmem:[%s12325_s17 + $0xc] sm:$0xf] (%p2840_p12)  ;;  %v10606_v12 = vld [vmem:[%s12325_s17 + $0x10] sm:$0xf] (%p2840_p12) }
 0x657   : >> { %8125 = vmatprep.subr.bf16.mxu0 %v9568_v24  ;;  %8112 = vmatpush3.bf16.msra.mxu1 %v7139_v30  ;;  %v10609_v5 = vld [vmem:[%s12325_s17 + $0x14] sm:$0xf] (%p2840_p12)  ;;  %v10612_v6 = vld [vmem:[%s12325_s17 + $0x18] sm:$0xf] (%p2840_p12)  ;;  %v10615_v50 = vld [vmem:[%s12325_s17 + $0x1c] sm:$0xf] (%p2840_p12) }
 0x658   : >> { %8113 = vmatprep.subr.bf16.mxu1 %v9568_v24  ;;  %v10618_v51 = vld [vmem:[%s12325_s17 + $0x20] sm:$0xf] (%p2840_p12)  ;;  %v10621_v52 = vld [vmem:[%s12325_s17 + $0x24] sm:$0xf] (%p2840_p12)  ;;  %v10624_v53 = vld [vmem:[%s12325_s17 + $0x28] sm:$0xf] (%p2840_p12) }
 0x659   : > { %v10627_v54 = vld [vmem:[%s12325_s17 + $0x2c] sm:$0xf] (%p2840_p12)  ;;  %v10630_v55 = vld [vmem:[%s12325_s17 + $0x30] sm:$0xf] (%p2840_p12)  ;;  %v10633_v56 = vld [vmem:[%s12325_s17 + $0x34] sm:$0xf] (%p2840_p12) }
 0x65a   : > { %v10636_v57 = vld [vmem:[%s12325_s17 + $0x38] sm:$0xf] (%p2840_p12)  ;;  %v10639_v58 = vld [vmem:[%s12325_s17 + $0x3c] sm:$0xf] (%p2840_p12)  ;;  %v10642_v59 = vld [vmem:[%s12325_s17 + $0x40] sm:$0xf] (%p2840_p12) }
 0x65b   : >> { %8114 = vmatpush3.bf16.msra.mxu1 %v7138_v32  ;;  %v10645_v60 = vld [vmem:[%s12325_s17 + $0x44] sm:$0xf] (%p2840_p12)  ;;  %v10648_v61 = vld [vmem:[%s12325_s17 + $0x48] sm:$0xf] (%p2840_p12)  ;;  %v10651_v62 = vld [vmem:[%s12325_s17 + $0x4c] sm:$0xf] (%p2840_p12) }
 0x65c   : >> { %8143 = vmatprep.subr.bf16.mxu1 %v9568_v24  ;;  %v10654_v63 = vld [vmem:[%s12325_s17 + $0x50] sm:$0xf] (%p2840_p12)  ;;  %v10657_v0 = vld [vmem:[%s12325_s17 + $0x54] sm:$0xf] (%p2840_p12)  ;;  %v10660_v17 = vld [vmem:[%s12325_s17 + $0x58] sm:$0xf] (%p2840_p12) }
 0x65d   : >> { %8122 = vmatmul.mubr.msk.bf16.vlgmr.msra.gmra.mxu0 %vm1541_vm2, %v7143_v29  ;;  %v10663_v18 = vld [vmem:[%s12325_s17 + $0x5c] sm:$0xf] (%p2840_p12) }
 0x65e   : >> { %8133 = vmatprep.mubr.msk.bf16.mxu0 %vm9569_vm11, %v9568_v24  ;;  %8126 = vmatpush3.bf16.msra.mxu0 %v7148_v31 }
 0x65f   : >> { %8127 = vmatprep.subr.bf16.mxu0 %v9568_v24 }
 0x662   : >> { %8128 = vmatpush3.bf16.msra.mxu0 %v7147_v33 }
 0x663   : >> { %8129 = vmatprep.subr.bf16.mxu0 %v9568_v24 }
 0x666   : >> { %8130 = vmatpush3.bf16.msra.mxu0 %v7146_v34 }
 0x667   : >> { %8131 = vmatprep.subr.bf16.mxu0 %v9568_v24 }
 0x66a   : >> { %8132 = vmatpush3.bf16.msra.mxu0 %v7145_v35 }
 0x66b   : >> { %8137 = vmatprep.subr.bf16.mxu0 %v9568_v24 }
 0x715   : >> { %v2900_v36 = vpop.f32.mrf.mxu0 }
 0x717   : >> { %v8105_v37 = vpop.f32.mrf.mxu0 }
 0x719   : >> { %v2903_v38 = vpop.f32.mrf.mxu0 }
 0x71a   : >> { %v2907_v39 = vpack.c.bf16 %v2903_v38, %v2900_v36 }
 0x71b   : >> { %v8106_v40 = vpop.f32.mrf.mxu0 }
 0x71c   : >> { %8116 = vmatmul.mubr.msk.bf16.vlgmr.msra.gmra.mxu1 %vm2573_vm10, %v2907_v39 }
 0x71d   : >> { %v3021_v41 = vpop.f32.mrf.mxu0  ;;  %8151 = vmatprep.mubr.msk.bf16.mxu1 %vm9569_vm11, %v9568_v24  ;;  %8144 = vmatpush3.bf16.msra.mxu1 %v7155_v47  ;;  %v10594_v47 = vld [vmem:[%s12325_s17] sm:$0xf] (%p2840_p12) }
 0x71e   : >> { %8145 = vmatprep.subr.bf16.mxu1 %v9568_v24 }
 0x71f   : >> { %v8123_v42 = vpop.f32.mrf.mxu0 }
 0x721   : >> { %v3024_v43 = vpop.f32.mrf.mxu0  ;;  %8146 = vmatpush3.bf16.msra.mxu1 %v7154_v48  ;;  %v10597_v48 = vld [vmem:[%s12325_s17 + $0x4] sm:$0xf] (%p2840_p12) }
 0x722   : >> { %v3028_v44 = vpack.c.bf16 %v3024_v43, %v3021_v41  ;;  %8147 = vmatprep.subr.bf16.mxu1 %v9568_v24 }
 0x723   : >> { %v8124_v45 = vpop.f32.mrf.mxu0 }
 0x724   : >> { %8134 = vmatmul.mubr.msk.bf16.vlgmr.msra.gmra.mxu0 %vm2573_vm10, %v3028_v44 }
 0x725   : >> { %8138 = vmatpush3.bf16.msra.mxu0 %v8955_v27  ;;  %8139 = vmatprep.mubr.msk.bf16.mxu0 %vm9569_vm11, %v9568_v24 }
 0x726   : >> { %8148 = vmatpush3.bf16.msra.mxu1 %v7153_v49 }
 0x727   : >> { %8149 = vmatprep.subr.bf16.mxu1 %v9568_v24 }
 0x72a   : >> { %8150 = vmatpush3.bf16.msra.mxu1 %v7152_v22 }
 0x72c   : >> { %8140 = vmatmul.mubr.msk.bf16.vlgmr.msra.gmra.mxu0 %vm1541_vm2, %v7150_v46 }
 0x7dc   : >> { %v2970_v23 = vpop.f32.mrf.mxu1 }
 0x7dd   : >> { %v2977_v25 = vadd.f32 %v2970_v23, %v10509_v15 }
 0x7de   : >> { %v8117_v2 = vpop.f32.mrf.mxu1 }
 0x7e0   : >> { %v2973_v3 = vpop.f32.mrf.mxu1 }
 0x7e1   : >> { %v2978_v29 = vadd.f32 %v2973_v3, %v10511_v16 }
 0x7e2   : >> { %v8118_v4 = vpop.f32.mrf.mxu1 }
 0x7e4   : >> { %v3090_v26 = vpop.f32.mrf.mxu0 }
 0x7e5   : >> { %v3097_v27 = vadd.f32 %v3090_v26, %v2977_v25 }
 0x7e6   : >> { %v8135_v28 = vpop.f32.mrf.mxu0 }
 0x7e8   : >> { %v3093_v30 = vpop.f32.mrf.mxu0 }
 0x7e9   : >> { %v3098_v31 = vadd.f32 %v3093_v30, %v2978_v29 }
 0x7ea   : >> { %v8136_v32 = vpop.f32.mrf.mxu0 }
 0x7ec   : >> { %v3141_v24 = vpop.f32.mrf.mxu0 }
 0x7ee   : >> { %v8141_v33 = vpop.f32.mrf.mxu0 }
 0x7f0   : >> { %v3144_v34 = vpop.f32.mrf.mxu0 }
 0x7f1   : >> { %v3148_v35 = vpack.c.bf16 %v3144_v34, %v3141_v24 }
 0x7f2   : >> { %v8142_v36 = vpop.f32.mrf.mxu0 }
 0x7f3   : >> { %8152 = vmatmul.mubr.msk.bf16.vlgmr.msra.gmra.mxu1 %vm2573_vm10, %v3148_v35 }
 0x8b3   : >> { %v3210_v37 = vpop.f32.mrf.mxu1 }
 0x8b4   : >> { %v3217_v38 = vadd.f32 %v3210_v37, %v3097_v27 }
 0x8b5   : >> { %v8153_v39 = vpop.f32.mrf.mxu1 }
 0x8b6   : >> { %v3221_v40 = vmax.f32 %v3217_v38, 0.0 }
 0x8b7   : >> { %v3213_v41 = vpop.f32.mrf.mxu1 }
 0x8b8   : >> { %v7614_v42 = vpack.c.bf16 %v3221_v40, %v3221_v40  ;;  %v3218_v43 = vadd.f32 %v3213_v41, %v3098_v31 }
 0x8b9   : >> { %v8154_v44 = vpop.f32.mrf.mxu1 }
 0x8ba   : >> { %3235 = vst.msk [vmem:[%s3234_s14] sm:$0xf] %vm2130_vm7, %v7614_v42  ;;  %v3222_v45 = vmax.f32 %v3218_v43, 0.0  ;;  %2842 = sbr.rel (!%p2840_p12) target bundleno = 1611 (0x64b), region = 532 }
 0x8bc   : >> { %v7615_v46 = vpack.c.bf16 %v3222_v45, %v3222_v45 }
 0x8be   : >> { %3236 = vst.msk [vmem:[%s3234_s14 + $0x4] sm:$0xf] %vm2130_vm7, %v7615_v46 }
 0x8bf LB: >> { %v7184_v20 = vcombine.low %v10612_v6, %v10615_v50  ;;  %v7191_v21 = vcombine.low %v10636_v57, %v10639_v58  ;;  %v9570_v7 = vmov 0.0   ;;  %v7183_v8 = vcombine.low %v10606_v12, %v10609_v5  ;;  %s7178_s7 = sshll.u32 %s9473_s26, 4  ;;  %s3275_s26 = sadd.s32 1, %s9473_s26   ;;  %s9473_s26 = sphi %s10667_s26, %s3275_s26  }
 0x8c0   : >> { %8155 = vmatprep.subr.bf16.mxu0 %v9570_v7  ;;  %8167 = vmatprep.subr.bf16.mxu1 %v9570_v7  ;;  %v7190_v9 = vcombine.low %v10630_v55, %v10633_v56  ;;  %s3277_s6 = sshra.s32 %s7178_s7, 3  ;;  %s3359_s5 = sadd.s32 32, %s7178_s7  ;;  %vm9571_vm12 = vmmov 0   ;;  %v7182_v13 = vcombine.low %v10600_v10, %v10603_v11  ;;  %v7189_v14 = vcombine.low %v10624_v53, %v10627_v54 }
 0x8c1   : >> { %8156 = vmatpush3.bf16.msra.mxu0 %v7184_v20  ;;  %8168 = vmatpush3.bf16.msra.mxu1 %v7191_v21  ;;  %s10682_s15 = sshll.u32 %s3277_s6, 2  ;;  %s3360_s10 = sshra.s32 %s3359_s5, 3  ;;  %v7181_v15 = vcombine.low %v10594_v47, %v10597_v48  ;;  %v7188_v16 = vcombine.low %v10618_v51, %v10621_v52  ;;  %v7198_v23 = vcombine.low %v10660_v17, %v10663_v18 }
 0x8c2   : >> { %8157 = vmatprep.subr.bf16.mxu0 %v9570_v7  ;;  %8169 = vmatprep.subr.bf16.mxu1 %v9570_v7  ;;  %s7186_s11 = sshll.u32 %s3360_s10, 2  ;;  %s3280_s14 = scalar_lea.vmem [#allocation3], %s10682_s15  ;;  %v7197_v2 = vcombine.low %v10654_v63, %v10657_v0  ;;  %v7196_v3 = vcombine.low %v10648_v61, %v10651_v62  ;;  %v7195_v4 = vcombine.low %v10642_v59, %v10645_v60 }
 0x8c3   : >> { %8163 = vmatprep.mubr.msk.bf16.mxu0 %vm9571_vm12, %v9570_v7  ;;  %8175 = vmatprep.mubr.msk.bf16.mxu1 %vm9571_vm12, %v9570_v7  ;;  %s3363_s4 = scalar_lea.vmem [#allocation3], %s7186_s11  ;;  %s3441_s12 = sadd.s32 64, %s7178_s7 }
 0x8c4   : >> { %s3442_s6 = sshra.s32 %s3441_s12, 3  ;;  %p3272_p7 = scmp.ge.s32.totalorder %s3275_s26, 26  }
 0x8c5   : >> { %8158 = vmatpush3.bf16.msra.mxu0 %v7183_v8  ;;  %8170 = vmatpush3.bf16.msra.mxu1 %v7190_v9  ;;  %s7193_s16 = sshll.u32 %s3442_s6, 2  ;;  %v8956_v49 = vld [vmem:[%s3280_s14] sm:$0xff]   ;;  %s12326_s12 = sld [smem:[#allocation49_spill]] (%p3272_p7) }
 0x8c6   : >> { %8159 = vmatprep.subr.bf16.mxu0 %v9570_v7  ;;  %8171 = vmatprep.subr.bf16.mxu1 %v9570_v7  ;;  %s3445_s5 = scalar_lea.vmem [#allocation3], %s7193_s16  ;;  %v8957_v22 = vld [vmem:[%s3363_s4] sm:$0xff]   ;;  %s3534_s16 = scalar_lea.vmem [#allocation2], %s10682_s15 }
 0x8c7   : >> { %v8958_v25 = vld [vmem:[%s3445_s5] sm:$0xff]   ;;  %s12327_s4 = sld [smem:[#allocation50_spill]] (%p3272_p7)  ;;  %s10812_s26 = smov (%p3272_p7), 0  }
 0x8c8   : > { %3573 = vst [vmem:[#allocation3] sm:$0xf] (%p3272_p7), %v12237_v1  ;;  %3574 = vst [vmem:[#allocation3 + $0x4] sm:$0xf] (%p3272_p7), %v12237_v1 }
 0x8c9   : >> { %8160 = vmatpush3.bf16.msra.mxu0 %v7182_v13  ;;  %8172 = vmatpush3.bf16.msra.mxu1 %v7189_v14  ;;  %3575 = vst [vmem:[#allocation3 + $0xd8] sm:$0xf] (%p3272_p7), %v12237_v1  ;;  %3576 = vst [vmem:[#allocation3 + $0xdc] sm:$0xf] (%p3272_p7), %v12237_v1  ;;  %v10808_v13 = vld [vmem:[#allocation13] sm:$0xff] (%p3272_p7)  ;;  %v10810_v14 = vld [vmem:[#allocation13 + $0x8] sm:$0xff] (%p3272_p7) }
 0x8ca   : >> { %8161 = vmatprep.subr.bf16.mxu0 %v9570_v7  ;;  %8173 = vmatprep.subr.bf16.mxu1 %v9570_v7 }
 0x8cb   : > { %v10715_v20 = vld [vmem:[%s12326_s12] sm:$0xf] (%p3272_p7)  ;;  %v10718_v21 = vld [vmem:[%s12326_s12 + $0x4] sm:$0xf] (%p3272_p7)  ;;  %v10728_v47 = vld [vmem:[%s12326_s12 + $0xc] sm:$0xf] (%p3272_p7) }
 0x8cc   : > { %v10731_v48 = vld [vmem:[%s12326_s12 + $0x10] sm:$0xf] (%p3272_p7)  ;;  %v10734_v10 = vld [vmem:[%s12326_s12 + $0x14] sm:$0xf] (%p3272_p7) }
 0x8cd   : >> { %8162 = vmatpush3.bf16.msra.mxu0 %v7181_v15  ;;  %8174 = vmatpush3.bf16.msra.mxu1 %v7188_v16  ;;  %v10737_v11 = vld [vmem:[%s12327_s4] sm:$0xf] (%p3272_p7)  ;;  %v10740_v12 = vld [vmem:[%s12327_s4 + $0x4] sm:$0xf] (%p3272_p7)  ;;  %v10743_v5 = vld [vmem:[%s12327_s4 + $0x8] sm:$0xf] (%p3272_p7) }
 0x8ce   : >> { %8179 = vmatprep.subr.bf16.mxu0 %v9570_v7  ;;  %v10746_v6 = vld [vmem:[%s12327_s4 + $0xc] sm:$0xf] (%p3272_p7)  ;;  %v10749_v50 = vld [vmem:[%s12327_s4 + $0x10] sm:$0xf] (%p3272_p7)  ;;  %v10752_v51 = vld [vmem:[%s12327_s4 + $0x14] sm:$0xf] (%p3272_p7) }
 0x8cf   : > { %v10755_v52 = vld [vmem:[%s12327_s4 + $0x18] sm:$0xf] (%p3272_p7)  ;;  %v10758_v53 = vld [vmem:[%s12327_s4 + $0x1c] sm:$0xf] (%p3272_p7)  ;;  %v10761_v54 = vld [vmem:[%s12327_s4 + $0x20] sm:$0xf] (%p3272_p7) }
 0x8d0   : >> { %8164 = vmatmul.mubr.msk.bf16.vlgmr.msra.gmra.mxu0 %vm2573_vm10, %v8956_v49  ;;  %8176 = vmatmul.mubr.msk.bf16.vlgmr.msra.gmra.mxu1 %vm2573_vm10, %v8957_v22  ;;  %v10764_v55 = vld [vmem:[%s12327_s4 + $0x24] sm:$0xf] (%p3272_p7)  ;;  %v10767_v56 = vld [vmem:[%s12327_s4 + $0x28] sm:$0xf] (%p3272_p7)  ;;  %v10770_v57 = vld [vmem:[%s12327_s4 + $0x2c] sm:$0xf] (%p3272_p7) }
 0x8d1   : >> { %8180 = vmatpush3.bf16.msra.mxu0 %v7198_v23  ;;  %8187 = vmatprep.mubr.msk.bf16.mxu0 %vm9571_vm12, %v9570_v7  ;;  %v10773_v58 = vld [vmem:[%s12327_s4 + $0x30] sm:$0xf] (%p3272_p7)  ;;  %v10776_v59 = vld [vmem:[%s12327_s4 + $0x34] sm:$0xf] (%p3272_p7)  ;;  %v10779_v60 = vld [vmem:[%s12327_s4 + $0x38] sm:$0xf] (%p3272_p7) }
 0x8d2   : >> { %8181 = vmatprep.subr.bf16.mxu0 %v9570_v7  ;;  %v10782_v61 = vld [vmem:[%s12327_s4 + $0x3c] sm:$0xf] (%p3272_p7)  ;;  %v10785_v62 = vld [vmem:[%s12327_s4 + $0x40] sm:$0xf] (%p3272_p7)  ;;  %v10788_v63 = vld [vmem:[%s12327_s4 + $0x44] sm:$0xf] (%p3272_p7) }
 0x8d3   : > { %v10791_v0 = vld [vmem:[%s12327_s4 + $0x48] sm:$0xf] (%p3272_p7)  ;;  %v10794_v17 = vld [vmem:[%s12327_s4 + $0x4c] sm:$0xf] (%p3272_p7)  ;;  %v10797_v18 = vld [vmem:[%s12327_s4 + $0x50] sm:$0xf] (%p3272_p7) }
 0x8d4   : > { %v10803_v8 = vld [vmem:[%s12327_s4 + $0x58] sm:$0xf] (%p3272_p7)  ;;  %v10806_v9 = vld [vmem:[%s12327_s4 + $0x5c] sm:$0xf] (%p3272_p7) }
 0x8d5   : >> { %8182 = vmatpush3.bf16.msra.mxu0 %v7197_v2 }
 0x8d6   : >> { %8183 = vmatprep.subr.bf16.mxu0 %v9570_v7 }
 0x8d9   : >> { %8184 = vmatpush3.bf16.msra.mxu0 %v7196_v3 }
 0x8da   : >> { %8185 = vmatprep.subr.bf16.mxu0 %v9570_v7  ;;  %v10721_v7 = vld [vmem:[%s12326_s12 + $0x8] sm:$0xf] (%p3272_p7) }
 0x8dd   : >> { %8186 = vmatpush3.bf16.msra.mxu0 %v7195_v4 }
 0x8e0   : >> { %8188 = vmatmul.mubr.msk.bf16.vlgmr.msra.gmra.mxu0 %vm2573_vm10, %v8958_v25 }
 0x990   : >> { %v3350_v26 = vpop.f32.mrf.mxu0  ;;  %v3432_v27 = vpop.f32.mrf.mxu1 }
 0x991   : >> { %v3357_v33 = vadd.f32 %v10665_v19, %v3350_v26 }
 0x992   : >> { %v8165_v28 = vpop.f32.mrf.mxu0  ;;  %v8177_v29 = vpop.f32.mrf.mxu1 }
 0x993   : >> { %v3439_v34 = vadd.f32 %v3432_v27, %v3357_v33 }
 0x994   : >> { %v3353_v30 = vpop.f32.mrf.mxu0  ;;  %v3435_v31 = vpop.f32.mrf.mxu1 }
 0x995   : >> { %v3358_v35 = vadd.f32 %v10665_v19, %v3353_v30  ;;  %v10800_v19 = vld [vmem:[%s12327_s4 + $0x54] sm:$0xf] (%p3272_p7) }
 0x996   : >> { %v8166_v32 = vpop.f32.mrf.mxu0  ;;  %v8178_v24 = vpop.f32.mrf.mxu1 }
 0x997   : >> { %v3440_v39 = vadd.f32 %v3435_v31, %v3358_v35 }
 0x9a0   : >> { %v3514_v36 = vpop.f32.mrf.mxu0 }
 0x9a1   : >> { %v3521_v37 = vadd.f32 %v3514_v36, %v3439_v34 }
 0x9a2   : >> { %v8189_v38 = vpop.f32.mrf.mxu0 }
 0x9a3   : >> { %v3523_v40 = vmax.f32 %v3521_v37, 0.0 }
 0x9a4   : >> { %v3517_v41 = vpop.f32.mrf.mxu0 }
 0x9a5   : >> { %v7616_v42 = vpack.c.bf16 %v3523_v40, %v3523_v40  ;;  %v3522_v43 = vadd.f32 %v3517_v41, %v3440_v39 }
 0x9a6   : >> { %v8190_v44 = vpop.f32.mrf.mxu0 }
 0x9a7   : >> { %3535 = vst.msk [vmem:[%s3534_s16] sm:$0xf] %vm2130_vm7, %v7616_v42  ;;  %v3524_v45 = vmax.f32 %v3522_v43, 0.0  ;;  %3274 = sbr.rel (!%p3272_p7) target bundleno = 2239 (0x8bf), region = 543 }
 0x9a9   : >> { %v7617_v46 = vpack.c.bf16 %v3524_v45, %v3524_v45 }
 0x9ab   : >> { %3536 = vst.msk [vmem:[%s3534_s16 + $0x4] sm:$0xf] %vm2130_vm7, %v7617_v46 }
 0x9ac LB: >> { %v9572_v15 = vmov 0.0   ;;  %vm9573_vm13 = vmmov 0   ;;  %v7231_v16 = vcombine.low %v10755_v52, %v10758_v53  ;;  %s7223_s7 = sshll.u32 %s9477_s26, 4  ;;  %v7230_v49 = vcombine.low %v10749_v50, %v10752_v51  ;;  %s3582_s26 = sadd.s32 1, %s9477_s26   ;;  %s9477_s26 = sphi %s10812_s26, %s3582_s26  }
 0x9ad   : >> { %8191 = vmatprep.subr.bf16.mxu0 %v9572_v15  ;;  %8193 = vmatprep.mubr.msk.bf16.mxu0 %vm9573_vm13, %v9572_v15  ;;  %s3584_s15 = sshra.s32 %s7223_s7, 3  ;;  %v7225_v23 = vcombine.low %v10715_v20, %v10718_v21  ;;  %v7233_v2 = vcombine.low %v10721_v7, %v10728_v47  ;;  %v7229_v3 = vcombine.low %v10743_v5, %v10746_v6  ;;  %s7619_s14 = sadd.s32 16, %s7223_s7 }
 0x9ae   : >> { %8197 = vmatprep.subr.bf16.mxu1 %v9572_v15  ;;  %8205 = vmatprep.mubr.msk.bf16.mxu1 %vm9573_vm13, %v9572_v15  ;;  %s7224_s10 = sshll.u32 %s3584_s15, 2  ;;  %v7238_v4 = vcombine.low %v10779_v60, %v10782_v61  ;;  %v7228_v25 = vcombine.low %v10737_v11, %v10740_v12  ;;  %v7237_v26 = vcombine.low %v10773_v58, %v10776_v59  ;;  %s3970_s6 = sshra.s32 %s7619_s14, 3 }
 0x9af   : >> { %8198 = vmatpush3.bf16.msra.mxu1 %v7231_v16  ;;  %s3587_s11 = scalar_lea.vmem [#allocation2], %s7224_s10  ;;  %v7236_v27 = vcombine.low %v10767_v56, %v10770_v57  ;;  %v7235_v28 = vcombine.low %v10761_v54, %v10764_v55  ;;  %v7240_v38 = vcombine.low %v10731_v48, %v10734_v10  ;;  %v7245_v39 = vcombine.low %v10803_v8, %v10806_v9  ;;  %s7250_s5 = sshll.u32 %s3970_s6, 2 }
 0x9b0   : >> { %8199 = vmatprep.subr.bf16.mxu1 %v9572_v15  ;;  %v7244_v40 = vcombine.low %v10797_v18, %v10800_v19  ;;  %v7243_v41 = vcombine.low %v10791_v0, %v10794_v17  ;;  %v7242_v42 = vcombine.low %v10785_v62, %v10788_v63  ;;  %s3973_s16 = scalar_lea.vmem [#allocation3], %s7250_s5  ;;  %p3579_p8 = scmp.ge.s32.totalorder %s3582_s26, 26  }
 0x9b1   : > { %s12328_s7 = sld [smem:[#allocation51_spill]] (%p3579_p8)  ;;  %s11036_s26 = smov (%p3579_p8), 0  }
 0x9b2   : >> { %v8959_v22 = vld [vmem:[%s3587_s11] sm:$0xff]  }
 0x9b3   : >> { %8200 = vmatpush3.bf16.msra.mxu1 %v7230_v49  ;;  %8192 = vmatpush3.bf16.msra.mxu0 %v8959_v22 }
 0x9b4   : >> { %8201 = vmatprep.subr.bf16.mxu1 %v9572_v15  ;;  %8209 = vmatprep.subr.bf16.mxu0 %v9572_v15 }
 0x9b6   : >> { %8194 = vmatmul.mubr.msk.bf16.vlgmr.msra.gmra.mxu0 %vm1541_vm2, %v7225_v23 }
 0x9b7   : >> { %8210 = vmatpush3.bf16.msra.mxu0 %v8959_v22  ;;  %8211 = vmatprep.mubr.msk.bf16.mxu0 %vm9573_vm13, %v9572_v15  ;;  %v10897_v20 = vld [vmem:[%s12328_s7 + $0x8] sm:$0xf] (%p3579_p8)  ;;  %v10900_v21 = vld [vmem:[%s12328_s7 + $0xc] sm:$0xf] (%p3579_p8)  ;;  %v10903_v7 = vld [vmem:[%s12328_s7 + $0x10] sm:$0xf] (%p3579_p8) }
 0x9b8   : >> { %8215 = vmatprep.subr.bf16.mxu0 %v9572_v15  ;;  %8202 = vmatpush3.bf16.msra.mxu1 %v7229_v3  ;;  %v10906_v47 = vld [vmem:[%s12328_s7 + $0x14] sm:$0xf] (%p3579_p8)  ;;  %v10909_v48 = vld [vmem:[%s12328_s7 + $0x18] sm:$0xf] (%p3579_p8)  ;;  %v10912_v10 = vld [vmem:[%s12328_s7 + $0x1c] sm:$0xf] (%p3579_p8) }
 0x9b9   : >> { %8203 = vmatprep.subr.bf16.mxu1 %v9572_v15  ;;  %v10915_v11 = vld [vmem:[%s12328_s7 + $0x20] sm:$0xf] (%p3579_p8)  ;;  %v10918_v12 = vld [vmem:[%s12328_s7 + $0x24] sm:$0xf] (%p3579_p8)  ;;  %v10921_v5 = vld [vmem:[%s12328_s7 + $0x28] sm:$0xf] (%p3579_p8) }
 0x9ba   : > { %v10924_v6 = vld [vmem:[%s12328_s7 + $0x2c] sm:$0xf] (%p3579_p8)  ;;  %v10927_v50 = vld [vmem:[%s12328_s7 + $0x30] sm:$0xf] (%p3579_p8)  ;;  %v10930_v51 = vld [vmem:[%s12328_s7 + $0x34] sm:$0xf] (%p3579_p8) }
 0x9bb   : > { %v10933_v52 = vld [vmem:[%s12328_s7 + $0x38] sm:$0xf] (%p3579_p8)  ;;  %v10936_v53 = vld [vmem:[%s12328_s7 + $0x3c] sm:$0xf] (%p3579_p8)  ;;  %v10939_v54 = vld [vmem:[%s12328_s7 + $0x40] sm:$0xf] (%p3579_p8) }
 0x9bc   : >> { %8204 = vmatpush3.bf16.msra.mxu1 %v7228_v25  ;;  %v10942_v55 = vld [vmem:[%s12328_s7 + $0x44] sm:$0xf] (%p3579_p8)  ;;  %v10945_v56 = vld [vmem:[%s12328_s7 + $0x48] sm:$0xf] (%p3579_p8)  ;;  %v10948_v57 = vld [vmem:[%s12328_s7 + $0x4c] sm:$0xf] (%p3579_p8) }
 0x9bd   : >> { %8233 = vmatprep.subr.bf16.mxu1 %v9572_v15  ;;  %v10951_v58 = vld [vmem:[%s12328_s7 + $0x50] sm:$0xf] (%p3579_p8)  ;;  %v10954_v59 = vld [vmem:[%s12328_s7 + $0x54] sm:$0xf] (%p3579_p8)  ;;  %v10957_v60 = vld [vmem:[%s12328_s7 + $0x58] sm:$0xf] (%p3579_p8) }
 0x9be   : >> { %8212 = vmatmul.mubr.msk.bf16.vlgmr.msra.gmra.mxu0 %vm1541_vm2, %v7233_v2  ;;  %v10960_v61 = vld [vmem:[%s12328_s7 + $0x5c] sm:$0xf] (%p3579_p8)  ;;  %v10963_v62 = vld [vmem:[%s12328_s7 + $0x60] sm:$0xf] (%p3579_p8)  ;;  %v10966_v63 = vld [vmem:[%s12328_s7 + $0x64] sm:$0xf] (%p3579_p8) }
 0x9bf   : >> { %8223 = vmatprep.mubr.msk.bf16.mxu0 %vm9573_vm13, %v9572_v15  ;;  %8216 = vmatpush3.bf16.msra.mxu0 %v7238_v4  ;;  %v10969_v0 = vld [vmem:[%s12328_s7 + $0x68] sm:$0xf] (%p3579_p8)  ;;  %v10972_v17 = vld [vmem:[%s12328_s7 + $0x6c] sm:$0xf] (%p3579_p8)  ;;  %v10975_v18 = vld [vmem:[%s12328_s7 + $0x70] sm:$0xf] (%p3579_p8) }
 0x9c0   : >> { %8217 = vmatprep.subr.bf16.mxu0 %v9572_v15  ;;  %12329 = vst [vmem:[#allocation72_spill] sm:$0xff] (%p3579_p8), %v10969_v0  ;;  %v10978_v19 = vld [vmem:[%s12328_s7 + $0x74] sm:$0xf] (%p3579_p8)  ;;  %v10981_v8 = vld [vmem:[%s12328_s7 + $0x78] sm:$0xf] (%p3579_p8) }
 0x9c1   : > { %v10984_v9 = vld [vmem:[%s12328_s7 + $0x7c] sm:$0xf] (%p3579_p8) }
 0x9c3   : >> { %8218 = vmatpush3.bf16.msra.mxu0 %v7237_v26 }
 0x9c4   : >> { %8219 = vmatprep.subr.bf16.mxu0 %v9572_v15 }
 0x9c7   : >> { %8220 = vmatpush3.bf16.msra.mxu0 %v7236_v27 }
 0x9c8   : >> { %8221 = vmatprep.subr.bf16.mxu0 %v9572_v15 }
 0x9cb   : >> { %8222 = vmatpush3.bf16.msra.mxu0 %v7235_v28 }
 0x9cc   : >> { %8227 = vmatprep.subr.bf16.mxu0 %v9572_v15 }
 0xa76   : >> { %v3639_v29 = vpop.f32.mrf.mxu0 }
 0xa78   : >> { %v8195_v30 = vpop.f32.mrf.mxu0 }
 0xa7a   : >> { %v3642_v31 = vpop.f32.mrf.mxu0 }
 0xa7b   : >> { %v3646_v32 = vpack.c.bf16 %v3642_v31, %v3639_v29 }
 0xa7c   : >> { %v8196_v24 = vpop.f32.mrf.mxu0 }
 0xa7d   : >> { %8206 = vmatmul.mubr.msk.bf16.vlgmr.msra.gmra.mxu1 %vm2573_vm10, %v3646_v32 }
 0xa7e   : >> { %v3760_v33 = vpop.f32.mrf.mxu0  ;;  %8241 = vmatprep.mubr.msk.bf16.mxu1 %vm9573_vm13, %v9572_v15  ;;  %8234 = vmatpush3.bf16.msra.mxu1 %v7245_v39  ;;  %v10894_v39 = vld [vmem:[%s12328_s7 + $0x4] sm:$0xf] (%p3579_p8) }
 0xa7f   : >> { %8235 = vmatprep.subr.bf16.mxu1 %v9572_v15 }
 0xa80   : >> { %v8213_v34 = vpop.f32.mrf.mxu0 }
 0xa82   : >> { %v3763_v35 = vpop.f32.mrf.mxu0  ;;  %8236 = vmatpush3.bf16.msra.mxu1 %v7244_v40  ;;  %v10993_v40 = vld [vmem:[%s12328_s7 + $0x88] sm:$0xf] (%p3579_p8) }
 0xa83   : >> { %v3767_v36 = vpack.c.bf16 %v3763_v35, %v3760_v33  ;;  %8237 = vmatprep.subr.bf16.mxu1 %v9572_v15 }
 0xa84   : >> { %v8214_v37 = vpop.f32.mrf.mxu0 }
 0xa85   : >> { %8224 = vmatmul.mubr.msk.bf16.vlgmr.msra.gmra.mxu0 %vm2573_vm10, %v3767_v36 }
 0xa86   : >> { %8228 = vmatpush3.bf16.msra.mxu0 %v8959_v22  ;;  %8229 = vmatprep.mubr.msk.bf16.mxu0 %vm9573_vm13, %v9572_v15 }
 0xa87   : >> { %8238 = vmatpush3.bf16.msra.mxu1 %v7243_v41  ;;  %v10996_v41 = vld [vmem:[%s12328_s7 + $0x8c] sm:$0xf] (%p3579_p8) }
 0xa88   : >> { %8239 = vmatprep.subr.bf16.mxu1 %v9572_v15 }
 0xa8b   : >> { %8240 = vmatpush3.bf16.msra.mxu1 %v7242_v42  ;;  %v10999_v42 = vld [vmem:[%s12328_s7 + $0x90] sm:$0xf] (%p3579_p8) }
 0xa8d   : >> { %8230 = vmatmul.mubr.msk.bf16.vlgmr.msra.gmra.mxu0 %vm1541_vm2, %v7240_v38  ;;  %v10891_v38 = vld [vmem:[%s12328_s7] sm:$0xf] (%p3579_p8) }
 0xb3d   : >> { %v3709_v43 = vpop.f32.mrf.mxu1 }
 0xb3e   : >> { %v3716_v16 = vadd.f32 %v3709_v43, %v10808_v13  ;;  %v10987_v13 = vld [vmem:[%s12328_s7 + $0x80] sm:$0xf] (%p3579_p8)  ;;  %v11002_v43 = vld [vmem:[%s12328_s7 + $0x94] sm:$0xf] (%p3579_p8) }
 0xb3f   : >> { %v8207_v44 = vpop.f32.mrf.mxu1 }
 0xb40   : > { %v11005_v44 = vld [vmem:[%s12328_s7 + $0x98] sm:$0xf] (%p3579_p8) }
 0xb41   : >> { %v3712_v45 = vpop.f32.mrf.mxu1 }
 0xb42   : >> { %v3717_v2 = vadd.f32 %v3712_v45, %v10810_v14  ;;  %v10990_v14 = vld [vmem:[%s12328_s7 + $0x84] sm:$0xf] (%p3579_p8)  ;;  %v11008_v45 = vld [vmem:[%s12328_s7 + $0x9c] sm:$0xf] (%p3579_p8) }
 0xb43   : >> { %v8208_v46 = vpop.f32.mrf.mxu1 }
 0xb44   : > { %v11011_v46 = vld [vmem:[%s12328_s7 + $0xa0] sm:$0xf] (%p3579_p8) }
 0xb45   : >> { %v3829_v49 = vpop.f32.mrf.mxu0 }
 0xb46   : >> { %v3836_v22 = vadd.f32 %v3829_v49, %v3716_v16  ;;  %v11014_v16 = vld [vmem:[%s12328_s7 + $0xa4] sm:$0xf] (%p3579_p8)  ;;  %v11017_v49 = vld [vmem:[%s12328_s7 + $0xa8] sm:$0xf] (%p3579_p8) }
 0xb47   : >> { %v8225_v23 = vpop.f32.mrf.mxu0 }
 0xb48   : > { %v11023_v23 = vld [vmem:[%s12328_s7 + $0xb0] sm:$0xf] (%p3579_p8) }
 0xb49   : >> { %v3832_v3 = vpop.f32.mrf.mxu0 }
 0xb4a   : >> { %v3837_v4 = vadd.f32 %v3832_v3, %v3717_v2  ;;  %v11026_v2 = vld [vmem:[%s12328_s7 + $0xb4] sm:$0xf] (%p3579_p8)  ;;  %v11029_v3 = vld [vmem:[%s12328_s7 + $0xb8] sm:$0xf] (%p3579_p8) }
 0xb4b   : >> { %v8226_v25 = vpop.f32.mrf.mxu0  ;;  %12330 = vst [vmem:[#allocation73_spill] sm:$0xff] (%p3579_p8), %v11026_v2  ;;  %12331 = vst [vmem:[#allocation74_spill] sm:$0xff] (%p3579_p8), %v11029_v3 }
 0xb4c   : > { %v11034_v25 = vld [vmem:[#allocation14] ss:$0 sm:$0xff] (%p3579_p8) }
 0xb4d   : >> { %v3880_v15 = vpop.f32.mrf.mxu0 }
 0xb4f   : >> { %v8231_v26 = vpop.f32.mrf.mxu0 }
 0xb51   : >> { %v3883_v27 = vpop.f32.mrf.mxu0 }
 0xb52   : >> { %v3887_v28 = vpack.c.bf16 %v3883_v27, %v3880_v15 }
 0xb53   : >> { %v8232_v29 = vpop.f32.mrf.mxu0 }
 0xb54   : >> { %8242 = vmatmul.mubr.msk.bf16.vlgmr.msra.gmra.mxu1 %vm2573_vm10, %v3887_v28 }
 0xc14   : >> { %v3949_v30 = vpop.f32.mrf.mxu1 }
 0xc15   : >> { %v3956_v32 = vadd.f32 %v3949_v30, %v3836_v22  ;;  %v11020_v22 = vld [vmem:[%s12328_s7 + $0xac] sm:$0xf] (%p3579_p8) }
 0xc16   : >> { %v8243_v31 = vpop.f32.mrf.mxu1 }
 0xc17   : >> { %v3960_v35 = vmax.f32 %v3956_v32, 0.0 }
 0xc18   : >> { %v3952_v24 = vpop.f32.mrf.mxu1 }
 0xc19   : >> { %v3957_v33 = vadd.f32 %v3952_v24, %v3837_v4  ;;  %v11032_v4 = vld [vmem:[%s12328_s7 + $0xbc] sm:$0xf] (%p3579_p8) }
 0xc1a   : >> { %v8244_v34 = vpop.f32.mrf.mxu1  ;;  %12332 = vst [vmem:[#allocation75_spill] sm:$0xff] (%p3579_p8), %v11032_v4 }
 0xc1b   : >> { %v3961_v36 = vmax.f32 %v3957_v33, 0.0  ;;  %3581 = sbr.rel (!%p3579_p8) target bundleno = 2476 (0x9ac), region = 554 }
 0xc1d   : >> { %v7639_v37 = vpack.c.bf16 %v3961_v36, %v3960_v35 }
 0xc1f   : >> { %7640 = vst [vmem:[%s3973_s16] sm:$0xff] %v7639_v37  }
 0xc20 LB: >> { %v7294_v15 = vcombine.low %v10933_v52, %v10936_v53  ;;  %v7304_v26 = vcombine.low %v10981_v8, %v10984_v9  ;;  %v9574_v27 = vmov 0.0   ;;  %v7293_v28 = vcombine.low %v10927_v50, %v10930_v51  ;;  %s7284_s15 = sshll.u32 %s9481_s26, 5  ;;  %v12333_v0 = vld [vmem:[#allocation72_spill] sm:$0xff]  ;;  %v12335_v3 = vld [vmem:[#allocation74_spill] sm:$0xff]  ;;  %v12336_v2 = vld [vmem:[#allocation73_spill] sm:$0xff]  ;;  %s9481_s26 = sphi %s11036_s26, %s4038_s26  }
 0xc21   : >> { %8245 = vmatprep.subr.bf16.mxu0 %v9574_v27  ;;  %8265 = vmatprep.subr.bf16.mxu1 %v9574_v27  ;;  %v7303_v29 = vcombine.low %v10975_v18, %v10978_v19  ;;  %s4040_s10 = sshra.s32 %s7284_s15, 3  ;;  %s4143_s11 = sadd.s32 32, %s7284_s15  ;;  %vm9575_vm14 = vmmov 0   ;;  %v7292_v30 = vcombine.low %v10921_v5, %v10924_v6  ;;  %v7302_v31 = vcombine.low %v12333_v0, %v10972_v17  ;;  %v12334_v4 = vld [vmem:[#allocation75_spill] sm:$0xff] }
 0xc22   : >> { %8246 = vmatpush3.bf16.msra.mxu0 %v7294_v15  ;;  %8266 = vmatpush3.bf16.msra.mxu1 %v7304_v26  ;;  %s11056_s14 = sshll.u32 %s4040_s10, 2  ;;  %s4144_s6 = sshra.s32 %s4143_s11, 3  ;;  %v7291_v32 = vcombine.low %v10915_v11, %v10918_v12  ;;  %v7301_v24 = vcombine.low %v10963_v62, %v10966_v63  ;;  %v7290_v33 = vcombine.low %v10909_v48, %v10912_v10 }
 0xc23   : >> { %8247 = vmatprep.subr.bf16.mxu0 %v9574_v27  ;;  %8267 = vmatprep.subr.bf16.mxu1 %v9574_v27  ;;  %s7295_s5 = sshll.u32 %s4144_s6, 2  ;;  %s4043_s16 = scalar_lea.vmem [#allocation3], %s11056_s14  ;;  %v7300_v34 = vcombine.low %v10957_v60, %v10960_v61  ;;  %v7289_v35 = vcombine.low %v10903_v7, %v10906_v47  ;;  %v7299_v36 = vcombine.low %v10951_v58, %v10954_v59 }
 0xc24   : >> { %8261 = vmatprep.mubr.msk.bf16.mxu0 %vm9575_vm14, %v9574_v27  ;;  %8281 = vmatprep.mubr.msk.bf16.mxu1 %vm9575_vm14, %v9574_v27  ;;  %s11067_s10 = scalar_lea.vmem [#allocation3], %s7295_s5  ;;  %s4247_s11 = sadd.s32 64, %s7284_s15  ;;  %v7288_v37 = vcombine.low %v10897_v20, %v10900_v21  ;;  %v7298_v15 = vcombine.low %v10945_v56, %v10948_v57  ;;  %v7287_v26 = vcombine.low %v10891_v38, %v10894_v39 }
 0xc25   : >> { %s4248_s4 = sshra.s32 %s4247_s11, 3 }
 0xc26   : >> { %8248 = vmatpush3.bf16.msra.mxu0 %v7293_v28  ;;  %8268 = vmatpush3.bf16.msra.mxu1 %v7303_v29  ;;  %s7305_s7 = sshll.u32 %s4248_s4, 2  ;;  %v7297_v28 = vcombine.low %v10939_v54, %v10942_v55  ;;  %v8960_v29 = vld [vmem:[%s4043_s16] sm:$0xff]   ;;  %s7315_s4 = sshll.u32 %s9481_s26, 4 }
 0xc27   : >> { %8249 = vmatprep.subr.bf16.mxu0 %v9574_v27  ;;  %8269 = vmatprep.subr.bf16.mxu1 %v9574_v27  ;;  %s11075_s6 = scalar_lea.vmem [#allocation3], %s7305_s7  ;;  %s4362_s7 = sshra.s32 %s7315_s4, 3 }
 0xc28   : >> { %s7318_s15 = sshll.u32 %s4362_s7, 2  ;;  %s4038_s26 = sadd.s32 1, %s9481_s26  }
 0xc29   : >> { %s4365_s14 = scalar_lea.vmem [#allocation2], %s7318_s15  ;;  %p4035_p11 = scmp.ge.s32.totalorder %s4038_s26, 12  }
 0xc2a   : >> { %8250 = vmatpush3.bf16.msra.mxu0 %v7292_v30  ;;  %8270 = vmatpush3.bf16.msra.mxu1 %v7302_v31  ;;  %v8961_v30 = vld [vmem:[%s11067_s10] sm:$0xff]   ;;  %v7314_v31 = vcombine.low %v12335_v3, %v12334_v4  ;;  %s12337_s5 = sld [smem:[#allocation53_spill]] (%p4035_p11)  ;;  %v12342_v38 = vmov (%p4035_p11), 0   ;;  %s11307_s26 = smov (%p4035_p11), 0  }
 0xc2b   : >> { %8251 = vmatprep.subr.bf16.mxu0 %v9574_v27  ;;  %8271 = vmatprep.subr.bf16.mxu1 %v9574_v27  ;;  %s12338_s16 = sld [smem:[#allocation54_spill]] (%p4035_p11) }
 0xc2e   : >> { %8252 = vmatpush3.bf16.msra.mxu0 %v7291_v32  ;;  %8272 = vmatpush3.bf16.msra.mxu1 %v7301_v24  ;;  %v7313_v32 = vcombine.low %v11023_v23, %v12336_v2  ;;  %v7312_v24 = vcombine.low %v11017_v49, %v11020_v22 }
 0xc2f   : >> { %8253 = vmatprep.subr.bf16.mxu0 %v9574_v27  ;;  %8273 = vmatprep.subr.bf16.mxu1 %v9574_v27 }
 0xc30   : > { %v11151_v39 = vld [vmem:[%s12337_s5 + $0xc] sm:$0xf] (%p4035_p11)  ;;  %v11154_v20 = vld [vmem:[%s12337_s5 + $0x10] sm:$0xf] (%p4035_p11)  ;;  %v11157_v21 = vld [vmem:[%s12337_s5 + $0x14] sm:$0xf] (%p4035_p11) }
 0xc31   : > { %v11160_v7 = vld [vmem:[%s12338_s16] sm:$0xf] (%p4035_p11)  ;;  %v11163_v47 = vld [vmem:[%s12338_s16 + $0x4] sm:$0xf] (%p4035_p11)  ;;  %v11166_v48 = vld [vmem:[%s12338_s16 + $0x8] sm:$0xf] (%p4035_p11) }
 0xc32   : >> { %8254 = vmatpush3.bf16.msra.mxu0 %v7290_v33  ;;  %8274 = vmatpush3.bf16.msra.mxu1 %v7300_v34  ;;  %v7311_v33 = vcombine.low %v11011_v46, %v11014_v16  ;;  %v7310_v34 = vcombine.low %v11005_v44, %v11008_v45  ;;  %12343 = vst [vmem:[#allocation75_spill] sm:$0xff] (%p4035_p11), %v11160_v7  ;;  %v11169_v10 = vld [vmem:[%s12338_s16 + $0xc] sm:$0xf] (%p4035_p11)  ;;  %v11172_v11 = vld [vmem:[%s12338_s16 + $0x10] sm:$0xf] (%p4035_p11) }
 0xc33   : >> { %8255 = vmatprep.subr.bf16.mxu0 %v9574_v27  ;;  %8275 = vmatprep.subr.bf16.mxu1 %v9574_v27  ;;  %v11175_v12 = vld [vmem:[%s12338_s16 + $0x14] sm:$0xf] (%p4035_p11)  ;;  %v11178_v5 = vld [vmem:[%s12338_s16 + $0x18] sm:$0xf] (%p4035_p11)  ;;  %v11181_v6 = vld [vmem:[%s12338_s16 + $0x1c] sm:$0xf] (%p4035_p11) }
 0xc34   : > { %12344 = vst [vmem:[#allocation76_spill] sm:$0xff] (%p4035_p11), %v11178_v5  ;;  %12345 = vst [vmem:[#allocation77_spill] sm:$0xff] (%p4035_p11), %v11181_v6  ;;  %v11184_v50 = vld [vmem:[%s12338_s16 + $0x20] sm:$0xf] (%p4035_p11)  ;;  %v11187_v51 = vld [vmem:[%s12338_s16 + $0x24] sm:$0xf] (%p4035_p11) }
 0xc35   : > { %v11190_v52 = vld [vmem:[%s12338_s16 + $0x28] sm:$0xf] (%p4035_p11)  ;;  %v11193_v53 = vld [vmem:[%s12338_s16 + $0x2c] sm:$0xf] (%p4035_p11)  ;;  %v11196_v54 = vld [vmem:[%s12338_s16 + $0x30] sm:$0xf] (%p4035_p11) }
 0xc36   : >> { %8256 = vmatpush3.bf16.msra.mxu0 %v7289_v35  ;;  %8276 = vmatpush3.bf16.msra.mxu1 %v7299_v36  ;;  %v7309_v35 = vcombine.low %v10999_v42, %v11002_v43  ;;  %v7308_v36 = vcombine.low %v10993_v40, %v10996_v41  ;;  %v11199_v55 = vld [vmem:[%s12338_s16 + $0x34] sm:$0xf] (%p4035_p11)  ;;  %v11202_v56 = vld [vmem:[%s12338_s16 + $0x38] sm:$0xf] (%p4035_p11)  ;;  %v11205_v57 = vld [vmem:[%s12338_s16 + $0x3c] sm:$0xf] (%p4035_p11) }
 0xc37   : >> { %8257 = vmatprep.subr.bf16.mxu0 %v9574_v27  ;;  %8277 = vmatprep.subr.bf16.mxu1 %v9574_v27  ;;  %v11208_v58 = vld [vmem:[%s12338_s16 + $0x40] sm:$0xf] (%p4035_p11)  ;;  %v11211_v59 = vld [vmem:[%s12338_s16 + $0x44] sm:$0xf] (%p4035_p11)  ;;  %v11214_v60 = vld [vmem:[%s12338_s16 + $0x48] sm:$0xf] (%p4035_p11) }
 0xc38   : > { %v11217_v61 = vld [vmem:[%s12338_s16 + $0x4c] sm:$0xf] (%p4035_p11)  ;;  %v11220_v62 = vld [vmem:[%s12338_s16 + $0x50] sm:$0xf] (%p4035_p11)  ;;  %v11223_v63 = vld [vmem:[%s12338_s16 + $0x54] sm:$0xf] (%p4035_p11) }
 0xc39   : > { %v11226_v17 = vld [vmem:[%s12338_s16 + $0x58] sm:$0xf] (%p4035_p11)  ;;  %v11229_v18 = vld [vmem:[%s12338_s16 + $0x5c] sm:$0xf] (%p4035_p11)  ;;  %v11232_v19 = vld [vmem:[%s12338_s16 + $0x60] sm:$0xf] (%p4035_p11) }
 0xc3a   : >> { %8258 = vmatpush3.bf16.msra.mxu0 %v7288_v37  ;;  %8278 = vmatpush3.bf16.msra.mxu1 %v7298_v15  ;;  %v7307_v37 = vcombine.low %v10987_v13, %v10990_v14  ;;  %v8962_v15 = vld [vmem:[%s11075_s6] sm:$0xff]   ;;  %v11238_v9 = vld [vmem:[%s12338_s16 + $0x68] sm:$0xf] (%p4035_p11)  ;;  %v11241_v13 = vld [vmem:[%s12338_s16 + $0x6c] sm:$0xf] (%p4035_p11) }
 0xc3b   : >> { %8259 = vmatprep.subr.bf16.mxu0 %v9574_v27  ;;  %8279 = vmatprep.subr.bf16.mxu1 %v9574_v27  ;;  %4428 = vst [vmem:[#allocation3] sm:$0xf] (%p4035_p11), %v12342_v38  ;;  %4429 = vst [vmem:[#allocation3 + $0x4] sm:$0xf] (%p4035_p11), %v12342_v38  ;;  %v11235_v8 = vld [vmem:[%s12338_s16 + $0x64] sm:$0xf] (%p4035_p11) }
 0xc3c   : > { %4430 = vst [vmem:[#allocation3 + $0x68] sm:$0xf] (%p4035_p11), %v12342_v38  ;;  %4431 = vst [vmem:[#allocation3 + $0x6c] sm:$0xf] (%p4035_p11), %v12342_v38  ;;  %v11244_v14 = vld [vmem:[%s12338_s16 + $0x70] sm:$0xf] (%p4035_p11) }
 0xc3d   : > { %12346 = vst [vmem:[#allocation78_spill] sm:$0xff] (%p4035_p11), %v11235_v8  ;;  %12347 = vst [vmem:[#allocation79_spill] sm:$0xff] (%p4035_p11), %v11238_v9  ;;  %v11247_v40 = vld [vmem:[%s12338_s16 + $0x74] sm:$0xf] (%p4035_p11)  ;;  %v11250_v41 = vld [vmem:[%s12338_s16 + $0x78] sm:$0xf] (%p4035_p11) }
 0xc3e   : >> { %8260 = vmatpush3.bf16.msra.mxu0 %v7287_v26  ;;  %8280 = vmatpush3.bf16.msra.mxu1 %v7297_v28  ;;  %v11253_v42 = vld [vmem:[%s12338_s16 + $0x7c] sm:$0xf] (%p4035_p11)  ;;  %v11256_v43 = vld [vmem:[%s12338_s16 + $0x80] sm:$0xf] (%p4035_p11)  ;;  %v11259_v44 = vld [vmem:[%s12338_s16 + $0x84] sm:$0xf] (%p4035_p11) }
 0xc3f   : >> { %8285 = vmatprep.subr.bf16.mxu0 %v9574_v27  ;;  %v11262_v45 = vld [vmem:[%s12338_s16 + $0x88] sm:$0xf] (%p4035_p11)  ;;  %v11265_v46 = vld [vmem:[%s12338_s16 + $0x8c] sm:$0xf] (%p4035_p11)  ;;  %v11268_v16 = vld [vmem:[%s12338_s16 + $0x90] sm:$0xf] (%p4035_p11) }
 0xc40   : > { %v11271_v49 = vld [vmem:[%s12338_s16 + $0x94] sm:$0xf] (%p4035_p11)  ;;  %v11274_v22 = vld [vmem:[%s12338_s16 + $0x98] sm:$0xf] (%p4035_p11)  ;;  %v11277_v23 = vld [vmem:[%s12338_s16 + $0x9c] sm:$0xf] (%p4035_p11) }
 0xc41   : >> { %8262 = vmatmul.mubr.bf16.vlgmr.msra.gmra.mxu0 %v8960_v29  ;;  %8282 = vmatmul.mubr.bf16.vlgmr.msra.gmra.mxu1 %v8961_v30 }
 0xc42   : >> { %8286 = vmatpush3.bf16.msra.mxu0 %v7314_v31  ;;  %8301 = vmatprep.mubr.msk.bf16.mxu0 %vm9575_vm14, %v9574_v27 }
 0xc43   : >> { %8287 = vmatprep.subr.bf16.mxu0 %v9574_v27 }
 0xc46   : >> { %8288 = vmatpush3.bf16.msra.mxu0 %v7313_v32 }
 0xc47   : >> { %8289 = vmatprep.subr.bf16.mxu0 %v9574_v27 }
 0xc4a   : >> { %8290 = vmatpush3.bf16.msra.mxu0 %v7312_v24 }
 0xc4b   : >> { %8291 = vmatprep.subr.bf16.mxu0 %v9574_v27 }
 0xc4e   : >> { %8292 = vmatpush3.bf16.msra.mxu0 %v7311_v33 }
 0xc4f   : >> { %8293 = vmatprep.subr.bf16.mxu0 %v9574_v27 }
 0xc52   : >> { %8294 = vmatpush3.bf16.msra.mxu0 %v7310_v34 }
 0xc53   : >> { %8295 = vmatprep.subr.bf16.mxu0 %v9574_v27 }
 0xc56   : >> { %8296 = vmatpush3.bf16.msra.mxu0 %v7309_v35 }
 0xc57   : >> { %8297 = vmatprep.subr.bf16.mxu0 %v9574_v27 }
 0xc5a   : >> { %8298 = vmatpush3.bf16.msra.mxu0 %v7308_v36 }
 0xc5b   : >> { %8299 = vmatprep.subr.bf16.mxu0 %v9574_v27 }
 0xc5e   : >> { %8300 = vmatpush3.bf16.msra.mxu0 %v7307_v37 }
 0xc61   : >> { %8302 = vmatmul.mubr.bf16.vlgmr.msra.gmra.mxu0 %v8962_v15 }
 0xd01   : >> { %v4134_v26 = vpop.f32.mrf.mxu0  ;;  %v4238_v28 = vpop.f32.mrf.mxu1 }
 0xd02   : >> { %v4141_v34 = vadd.f32 %v11034_v25, %v4134_v26  ;;  %v11289_v26 = vld [vmem:[%s12338_s16 + $0xac] sm:$0xf] (%p4035_p11) }
 0xd03   : >> { %v8263_v29 = vpop.f32.mrf.mxu0  ;;  %v8283_v30 = vpop.f32.mrf.mxu1 }
 0xd04   : >> { %v4245_v1 = vadd.f32 %v4238_v28, %v4141_v34  ;;  %v11292_v28 = vld [vmem:[%s12338_s16 + $0xb0] sm:$0xf] (%p4035_p11) }
 0xd05   : >> { %v4137_v31 = vpop.f32.mrf.mxu0  ;;  %v4241_v32 = vpop.f32.mrf.mxu1  ;;  %v11305_v34 = vld [vmem:[#allocation16 + $0x8] sm:$0xff] (%p4035_p11) }
 0xd06   : >> { %v4142_v35 = vadd.f32 %v11034_v25, %v4137_v31  ;;  %v11286_v25 = vld [vmem:[%s12338_s16 + $0xa8] sm:$0xf] (%p4035_p11)  ;;  %v11295_v31 = vld [vmem:[%s12338_s16 + $0xb4] sm:$0xf] (%p4035_p11) }
 0xd07   : >> { %v8264_v24 = vpop.f32.mrf.mxu0  ;;  %v8284_v33 = vpop.f32.mrf.mxu1 }
 0xd08   : >> { %v4246_v27 = vadd.f32 %v4241_v32, %v4142_v35  ;;  %v11298_v32 = vld [vmem:[%s12338_s16 + $0xb8] sm:$0xf] (%p4035_p11)  ;;  %v11301_v24 = vld [vmem:[%s12338_s16 + $0xbc] sm:$0xf] (%p4035_p11)  ;;  %v11303_v33 = vld [vmem:[#allocation16] sm:$0xff] (%p4035_p11) }
 0xd21   : >> { %v4342_v36 = vpop.f32.mrf.mxu0 }
 0xd22   : >> { %v4349_v37 = vadd.f32 %v4342_v36, %v4245_v1  ;;  %v11138_v1 = vld [vmem:[%s12337_s5] sm:$0xf] (%p4035_p11) }
 0xd23   : >> { %v8303_v0 = vpop.f32.mrf.mxu0  ;;  %12339 = vst [vmem:[#allocation72_spill] sm:$0xff] (%p4035_p11), %v11138_v1 }
 0xd24   : >> { %v4352_v30 = vmax.f32 %v4349_v37, 0.0  ;;  %v11141_v0 = vld [vmem:[%s12337_s5 + $0x4] sm:$0xf] (%p4035_p11) }
 0xd25   : >> { %v4345_v15 = vpop.f32.mrf.mxu0  ;;  %12340 = vst [vmem:[#allocation73_spill] sm:$0xff] (%p4035_p11), %v11141_v0 }
 0xd26   : >> { %v4350_v2 = vadd.f32 %v4345_v15, %v4246_v27 }
 0xd27   : >> { %v8304_v29 = vpop.f32.mrf.mxu0 }
 0xd28   : >> { %v4353_v3 = vmax.f32 %v4350_v2, 0.0  ;;  %4037 = sbr.rel (!%p4035_p11) target bundleno = 3104 (0xc20), region = 565  ;;  %v11144_v2 = vld [vmem:[%s12337_s5 + $0x8] sm:$0xf] (%p4035_p11) }
 0xd29   : > { %12341 = vst [vmem:[#allocation74_spill] sm:$0xff] (%p4035_p11), %v11144_v2 }
 0xd2a   : >> { %v7644_v4 = vpack.c.bf16 %v4353_v3, %v4352_v30  ;;  %v11280_v3 = vld [vmem:[%s12338_s16 + $0xa0] sm:$0xf] (%p4035_p11) }
 0xd2b   : > { %12348 = vst [vmem:[#allocation80_spill] sm:$0xff] (%p4035_p11), %v11280_v3 }
 0xd2c   : >> { %7645 = vst [vmem:[%s4365_s14] sm:$0xff] %v7644_v4   ;;  %v11283_v4 = vld [vmem:[%s12338_s16 + $0xa4] sm:$0xf] (%p4035_p11) }
 0xd2d   : > { %12349 = vst [vmem:[#allocation81_spill] sm:$0xff] %v11283_v4 }
 0xd2e LB: >> { %v9576_v35 = vmov 0.0   ;;  %vm9577_vm15 = vmmov 0   ;;  %v7367_v36 = vcombine.low %v11202_v56, %v11205_v57  ;;  %s7355_s10 = sshll.u32 %s9485_s26, 4  ;;  %v7366_v27 = vcombine.low %v11196_v54, %v11199_v55  ;;  %v12350_v0 = vld [vmem:[#allocation73_spill] sm:$0xff]  ;;  %v12351_v1 = vld [vmem:[#allocation72_spill] sm:$0xff]  ;;  %v12355_v9 = vld [vmem:[#allocation79_spill] sm:$0xff]  ;;  %s9485_s26 = sphi %s11307_s26, %s4437_s26  }
 0xd2f   : >> { %8305 = vmatprep.subr.bf16.mxu0 %v9576_v35  ;;  %8307 = vmatprep.mubr.msk.bf16.mxu0 %vm9577_vm15, %v9576_v35  ;;  %s4439_s11 = sshra.s32 %s7355_s10, 3  ;;  %v7357_v15 = vcombine.low %v12351_v1, %v12350_v0  ;;  %v7365_v29 = vcombine.low %v11190_v52, %v11193_v53  ;;  %v7364_v30 = vcombine.low %v11184_v50, %v11187_v51  ;;  %v12353_v6 = vld [vmem:[#allocation77_spill] sm:$0xff]  ;;  %v12354_v5 = vld [vmem:[#allocation76_spill] sm:$0xff]  ;;  %v12356_v8 = vld [vmem:[#allocation78_spill] sm:$0xff]  ;;  %s7625_s7 = sadd.s32 16, %s7355_s10 }
 0xd30   : >> { %8311 = vmatprep.subr.bf16.mxu1 %v9576_v35  ;;  %8327 = vmatprep.mubr.msk.bf16.mxu1 %vm9577_vm15, %v9576_v35  ;;  %s7356_s6 = sshll.u32 %s4439_s11, 2  ;;  %v12352_v2 = vld [vmem:[#allocation74_spill] sm:$0xff]  ;;  %v12357_v7 = vld [vmem:[#allocation75_spill] sm:$0xff]  ;;  %s4887_s15 = sshra.s32 %s7625_s7, 3 }
 0xd31   : >> { %8312 = vmatpush3.bf16.msra.mxu1 %v7367_v36  ;;  %s4442_s4 = scalar_lea.vmem [#allocation2], %s7356_s6  ;;  %v7368_v38 = vcombine.low %v12352_v2, %v11151_v39  ;;  %v7363_v36 = vcombine.low %v12354_v5, %v12353_v6  ;;  %s7391_s14 = sshll.u32 %s4887_s15, 2 }
 0xd32   : >> { %8313 = vmatprep.subr.bf16.mxu1 %v9576_v35  ;;  %v12359_v3 = vld [vmem:[#allocation80_spill] sm:$0xff]  ;;  %s4890_s11 = scalar_lea.vmem [#allocation3], %s7391_s14  ;;  %s4437_s26 = sadd.s32 1, %s9485_s26  }
 0xd33   : >> { %v11326_v37 = vld [vmem:[%s4442_s4] sm:$0xff]   ;;  %p4434_p0 = scmp.ge.s32.totalorder %s4437_s26, 12  }
 0xd34   : >> { %8306 = vmatpush3.bf16.msra.mxu0 %v11326_v37  ;;  %v12358_v4 = vld [vmem:[#allocation81_spill] sm:$0xff]  ;;  %s12360_s10 = sld [smem:[#allocation55_spill]] (%p4434_p0)  ;;  %s11569_s26 = smov (%p4434_p0), 0  }
 0xd35   : >> { %8314 = vmatpush3.bf16.msra.mxu1 %v7366_v27  ;;  %8331 = vmatprep.subr.bf16.mxu0 %v9576_v35  ;;  %v7377_v27 = vcombine.low %v11250_v41, %v11253_v42 }
 0xd36   : >> { %8315 = vmatprep.subr.bf16.mxu1 %v9576_v35 }
 0xd37   : >> { %8308 = vmatmul.mubr.msk.bf16.vlgmr.msra.gmra.mxu0 %vm1541_vm2, %v7357_v15  ;;  %v7362_v15 = vcombine.low %v11172_v11, %v11175_v12 }
 0xd38   : >> { %8332 = vmatpush3.bf16.msra.mxu0 %v11326_v37  ;;  %8333 = vmatprep.mubr.msk.bf16.mxu0 %vm9577_vm15, %v9576_v35 }
 0xd39   : >> { %8316 = vmatpush3.bf16.msra.mxu1 %v7365_v29  ;;  %8337 = vmatprep.subr.bf16.mxu0 %v9576_v35  ;;  %v7376_v29 = vcombine.low %v11244_v14, %v11247_v40 }
 0xd3a   : >> { %8317 = vmatprep.subr.bf16.mxu1 %v9576_v35  ;;  %s12361_s6 = smov (%p4434_p0), %s12360_s10 }
 0xd3b   : > { %v11430_v39 = vld [vmem:[%s12361_s6 + $0x8] sm:$0xf] (%p4434_p0)  ;;  %v11448_v11 = vld [vmem:[%s12361_s6 + $0x20] sm:$0xf] (%p4434_p0)  ;;  %v11451_v12 = vld [vmem:[%s12361_s6 + $0x24] sm:$0xf] (%p4434_p0) }
 0xd3c   : > { %v11454_v50 = vld [vmem:[%s12361_s6 + $0x28] sm:$0xf] (%p4434_p0)  ;;  %v11457_v51 = vld [vmem:[%s12361_s6 + $0x2c] sm:$0xf] (%p4434_p0)  ;;  %v11460_v52 = vld [vmem:[%s12361_s6 + $0x30] sm:$0xf] (%p4434_p0) }
 0xd3d   : >> { %8318 = vmatpush3.bf16.msra.mxu1 %v7364_v30  ;;  %v7375_v30 = vcombine.low %v12355_v9, %v11241_v13  ;;  %v11463_v53 = vld [vmem:[%s12361_s6 + $0x34] sm:$0xf] (%p4434_p0)  ;;  %v11466_v54 = vld [vmem:[%s12361_s6 + $0x38] sm:$0xf] (%p4434_p0)  ;;  %v11469_v55 = vld [vmem:[%s12361_s6 + $0x3c] sm:$0xf] (%p4434_p0) }
 0xd3e   : >> { %8319 = vmatprep.subr.bf16.mxu1 %v9576_v35  ;;  %v11472_v56 = vld [vmem:[%s12361_s6 + $0x40] sm:$0xf] (%p4434_p0)  ;;  %v11475_v57 = vld [vmem:[%s12361_s6 + $0x44] sm:$0xf] (%p4434_p0)  ;;  %v11508_v13 = vld [vmem:[%s12361_s6 + $0x70] sm:$0xf] (%p4434_p0) }
 0xd3f   : >> { %8334 = vmatmul.mubr.msk.bf16.vlgmr.msra.gmra.mxu0 %vm1541_vm2, %v7368_v38  ;;  %v7374_v38 = vcombine.low %v11232_v19, %v12356_v8  ;;  %v11502_v19 = vld [vmem:[%s12361_s6 + $0x68] sm:$0xf] (%p4434_p0)  ;;  %v11511_v14 = vld [vmem:[%s12361_s6 + $0x74] sm:$0xf] (%p4434_p0)  ;;  %v11514_v40 = vld [vmem:[%s12361_s6 + $0x78] sm:$0xf] (%p4434_p0) }
 0xd40   : >> { %8338 = vmatpush3.bf16.msra.mxu0 %v7377_v27  ;;  %8353 = vmatprep.mubr.msk.bf16.mxu0 %vm9577_vm15, %v9576_v35  ;;  %v7373_v27 = vcombine.low %v11226_v17, %v11229_v18  ;;  %v11496_v17 = vld [vmem:[%s12361_s6 + $0x60] sm:$0xf] (%p4434_p0)  ;;  %v11499_v18 = vld [vmem:[%s12361_s6 + $0x64] sm:$0xf] (%p4434_p0)  ;;  %v11517_v41 = vld [vmem:[%s12361_s6 + $0x7c] sm:$0xf] (%p4434_p0) }
 0xd41   : >> { %8320 = vmatpush3.bf16.msra.mxu1 %v7363_v36  ;;  %8339 = vmatprep.subr.bf16.mxu0 %v9576_v35  ;;  %v7361_v36 = vcombine.low %v11166_v48, %v11169_v10  ;;  %v11442_v48 = vld [vmem:[%s12361_s6 + $0x18] sm:$0xf] (%p4434_p0)  ;;  %v11445_v10 = vld [vmem:[%s12361_s6 + $0x1c] sm:$0xf] (%p4434_p0)  ;;  %v11520_v42 = vld [vmem:[%s12361_s6 + $0x80] sm:$0xf] (%p4434_p0) }
 0xd42   : >> { %8321 = vmatprep.subr.bf16.mxu1 %v9576_v35 }
 0xd44   : >> { %8340 = vmatpush3.bf16.msra.mxu0 %v7376_v29  ;;  %v7372_v29 = vcombine.low %v11220_v62, %v11223_v63  ;;  %v11490_v62 = vld [vmem:[%s12361_s6 + $0x58] sm:$0xf] (%p4434_p0)  ;;  %v11493_v63 = vld [vmem:[%s12361_s6 + $0x5c] sm:$0xf] (%p4434_p0) }
 0xd45   : >> { %8322 = vmatpush3.bf16.msra.mxu1 %v7362_v15  ;;  %8341 = vmatprep.subr.bf16.mxu0 %v9576_v35  ;;  %v7360_v15 = vcombine.low %v12357_v7, %v11163_v47  ;;  %v11439_v47 = vld [vmem:[%s12361_s6 + $0x14] sm:$0xf] (%p4434_p0) }
 0xd46   : >> { %8323 = vmatprep.subr.bf16.mxu1 %v9576_v35 }
 0xd48   : >> { %8342 = vmatpush3.bf16.msra.mxu0 %v7375_v30  ;;  %v7371_v30 = vcombine.low %v11214_v60, %v11217_v61  ;;  %v11484_v60 = vld [vmem:[%s12361_s6 + $0x50] sm:$0xf] (%p4434_p0)  ;;  %v11487_v61 = vld [vmem:[%s12361_s6 + $0x54] sm:$0xf] (%p4434_p0) }
 0xd49   : >> { %8343 = vmatprep.subr.bf16.mxu0 %v9576_v35  ;;  %8324 = vmatpush3.bf16.msra.mxu1 %v7361_v36 }
 0xd4a   : >> { %8325 = vmatprep.subr.bf16.mxu1 %v9576_v35 }
 0xd4c   : >> { %8344 = vmatpush3.bf16.msra.mxu0 %v7374_v38  ;;  %v7370_v38 = vcombine.low %v11208_v58, %v11211_v59  ;;  %v11478_v58 = vld [vmem:[%s12361_s6 + $0x48] sm:$0xf] (%p4434_p0)  ;;  %v11481_v59 = vld [vmem:[%s12361_s6 + $0x4c] sm:$0xf] (%p4434_p0) }
 0xd4d   : >> { %8345 = vmatprep.subr.bf16.mxu0 %v9576_v35  ;;  %8326 = vmatpush3.bf16.msra.mxu1 %v7360_v15 }
 0xd4e   : >> { %8363 = vmatprep.subr.bf16.mxu1 %v9576_v35 }
 0xd50   : >> { %8346 = vmatpush3.bf16.msra.mxu0 %v7373_v27 }
 0xd51   : >> { %8347 = vmatprep.subr.bf16.mxu0 %v9576_v35 }
 0xd54   : >> { %8348 = vmatpush3.bf16.msra.mxu0 %v7372_v29  ;;  %v7387_v29 = vcombine.low %v11298_v32, %v11301_v24  ;;  %v11565_v32 = vld [vmem:[%s12361_s6 + $0xbc] sm:$0xf] (%p4434_p0)  ;;  %v11567_v24 = vld [vmem:[#allocation17] ss:$0 sm:$0xff] (%p4434_p0) }
 0xd55   : >> { %8349 = vmatprep.subr.bf16.mxu0 %v9576_v35 }
 0xd58   : >> { %8350 = vmatpush3.bf16.msra.mxu0 %v7371_v30  ;;  %v7386_v30 = vcombine.low %v11292_v28, %v11295_v31  ;;  %v11559_v28 = vld [vmem:[%s12361_s6 + $0xb4] sm:$0xf] (%p4434_p0)  ;;  %v11562_v31 = vld [vmem:[%s12361_s6 + $0xb8] sm:$0xf] (%p4434_p0) }
 0xd59   : >> { %8351 = vmatprep.subr.bf16.mxu0 %v9576_v35 }
 0xd5c   : >> { %8352 = vmatpush3.bf16.msra.mxu0 %v7370_v38 }
 0xd5d   : >> { %8357 = vmatprep.subr.bf16.mxu0 %v9576_v35 }
 0xdf7   : >> { %v4494_v36 = vpop.f32.mrf.mxu0 }
 0xdf9   : >> { %v8309_v27 = vpop.f32.mrf.mxu0 }
 0xdfb   : >> { %v4497_v15 = vpop.f32.mrf.mxu0 }
 0xdfc   : >> { %v4501_v0 = vpack.c.bf16 %v4497_v15, %v4494_v36  ;;  %v7380_v36 = vcombine.low %v11256_v43, %v11259_v44  ;;  %v11523_v43 = vld [vmem:[%s12361_s6 + $0x84] sm:$0xf] (%p4434_p0)  ;;  %v11526_v44 = vld [vmem:[%s12361_s6 + $0x88] sm:$0xf] (%p4434_p0) }
 0xdfd   : >> { %v8310_v1 = vpop.f32.mrf.mxu0 }
 0xdfe   : >> { %8328 = vmatmul.mubr.bf16.vlgmr.msra.gmra.mxu1 %v4501_v0  ;;  %v7378_v1 = vcombine.low %v11154_v20, %v11157_v21  ;;  %v7385_v0 = vcombine.low %v11286_v25, %v11289_v26  ;;  %v11433_v20 = vld [vmem:[%s12361_s6 + $0xc] sm:$0xf] (%p4434_p0)  ;;  %v11436_v21 = vld [vmem:[%s12361_s6 + $0x10] sm:$0xf] (%p4434_p0) }
 0xdff   : >> { %v4635_v2 = vpop.f32.mrf.mxu0  ;;  %8364 = vmatpush3.bf16.msra.mxu1 %v7387_v29  ;;  %8379 = vmatprep.mubr.msk.bf16.mxu1 %vm9577_vm15, %v9576_v35  ;;  %v11553_v25 = vld [vmem:[%s12361_s6 + $0xac] sm:$0xf] (%p4434_p0)  ;;  %v11556_v26 = vld [vmem:[%s12361_s6 + $0xb0] sm:$0xf] (%p4434_p0) }
 0xe00   : >> { %8365 = vmatprep.subr.bf16.mxu1 %v9576_v35 }
 0xe01   : >> { %v8335_v38 = vpop.f32.mrf.mxu0 }
 0xe03   : >> { %v4638_v5 = vpop.f32.mrf.mxu0  ;;  %8366 = vmatpush3.bf16.msra.mxu1 %v7386_v30 }
 0xe04   : >> { %v4642_v27 = vpack.c.bf16 %v4638_v5, %v4635_v2  ;;  %8367 = vmatprep.subr.bf16.mxu1 %v9576_v35  ;;  %v7384_v2 = vcombine.low %v12359_v3, %v12358_v4  ;;  %v7383_v5 = vcombine.low %v11274_v22, %v11277_v23  ;;  %v11541_v22 = vld [vmem:[%s12361_s6 + $0x9c] sm:$0xf] (%p4434_p0)  ;;  %v11544_v23 = vld [vmem:[%s12361_s6 + $0xa0] sm:$0xf] (%p4434_p0) }
 0xe05   : >> { %v8336_v6 = vpop.f32.mrf.mxu0 }
 0xe06   : >> { %8354 = vmatmul.mubr.bf16.vlgmr.msra.gmra.mxu0 %v4642_v27  ;;  %v7382_v6 = vcombine.low %v11268_v16, %v11271_v49  ;;  %v11535_v16 = vld [vmem:[%s12361_s6 + $0x94] sm:$0xf] (%p4434_p0)  ;;  %v11538_v49 = vld [vmem:[%s12361_s6 + $0x98] sm:$0xf] (%p4434_p0) }
 0xe07   : >> { %8358 = vmatpush3.bf16.msra.mxu0 %v11326_v37  ;;  %8359 = vmatprep.mubr.msk.bf16.mxu0 %vm9577_vm15, %v9576_v35  ;;  %v7381_v37 = vcombine.low %v11262_v45, %v11265_v46  ;;  %v11529_v45 = vld [vmem:[%s12361_s6 + $0x8c] sm:$0xf] (%p4434_p0)  ;;  %v11532_v46 = vld [vmem:[%s12361_s6 + $0x90] sm:$0xf] (%p4434_p0) }
 0xe08   : >> { %8368 = vmatpush3.bf16.msra.mxu1 %v7385_v0 }
 0xe09   : >> { %8369 = vmatprep.subr.bf16.mxu1 %v9576_v35 }
 0xe0c   : >> { %8370 = vmatpush3.bf16.msra.mxu1 %v7384_v2 }
 0xe0d   : >> { %8371 = vmatprep.subr.bf16.mxu1 %v9576_v35 }
 0xe0e   : >> { %8360 = vmatmul.mubr.msk.bf16.vlgmr.msra.gmra.mxu0 %vm1541_vm2, %v7378_v1 }
 0xe10   : >> { %8372 = vmatpush3.bf16.msra.mxu1 %v7383_v5 }
 0xe11   : >> { %8373 = vmatprep.subr.bf16.mxu1 %v9576_v35 }
 0xe14   : >> { %8374 = vmatpush3.bf16.msra.mxu1 %v7382_v6 }
 0xe15   : >> { %8375 = vmatprep.subr.bf16.mxu1 %v9576_v35 }
 0xe18   : >> { %8376 = vmatpush3.bf16.msra.mxu1 %v7381_v37 }
 0xe19   : >> { %8377 = vmatprep.subr.bf16.mxu1 %v9576_v35 }
 0xe1c   : >> { %8378 = vmatpush3.bf16.msra.mxu1 %v7380_v36 }
 0xebe   : >> { %v4584_v15 = vpop.f32.mrf.mxu1 }
 0xebf   : >> { %v4591_v27 = vadd.f32 %v4584_v15, %v11303_v33 }
 0xec0   : >> { %v8329_v29 = vpop.f32.mrf.mxu1 }
 0xec2   : >> { %v4587_v30 = vpop.f32.mrf.mxu1 }
 0xec3   : >> { %v4592_v5 = vadd.f32 %v4587_v30, %v11305_v34 }
 0xec4   : >> { %v8330_v38 = vpop.f32.mrf.mxu1 }
 0xec6   : >> { %v4725_v1 = vpop.f32.mrf.mxu0 }
 0xec7   : >> { %v4732_v0 = vadd.f32 %v4725_v1, %v4591_v27 }
 0xec8   : >> { %v8355_v2 = vpop.f32.mrf.mxu0 }
 0xeca   : >> { %v4728_v6 = vpop.f32.mrf.mxu0 }
 0xecb   : >> { %v4733_v37 = vadd.f32 %v4728_v6, %v4592_v5 }
 0xecc   : >> { %v8356_v3 = vpop.f32.mrf.mxu0 }
 0xecd   : > { %v11547_v3 = vld [vmem:[%s12361_s6 + $0xa4] sm:$0xf] (%p4434_p0) }
 0xece   : >> { %v4776_v35 = vpop.f32.mrf.mxu0  ;;  %12364 = vst [vmem:[#allocation74_spill] sm:$0xff] (%p4434_p0), %v11547_v3 }
 0xed0   : >> { %v8361_v4 = vpop.f32.mrf.mxu0 }
 0xed1   : > { %v11550_v4 = vld [vmem:[%s12361_s6 + $0xa8] sm:$0xf] (%p4434_p0) }
 0xed2   : >> { %v4779_v7 = vpop.f32.mrf.mxu0  ;;  %12365 = vst [vmem:[#allocation75_spill] sm:$0xff] (%p4434_p0), %v11550_v4 }
 0xed3   : >> { %v4783_v8 = vpack.c.bf16 %v4779_v7, %v4776_v35  ;;  %v11424_v7 = vld [vmem:[%s12360_s10] sm:$0xf] (%p4434_p0) }
 0xed4   : >> { %v8362_v36 = vpop.f32.mrf.mxu0  ;;  %12362 = vst [vmem:[#allocation72_spill] sm:$0xff] (%p4434_p0), %v11424_v7 }
 0xed5   : >> { %8380 = vmatmul.mubr.bf16.vlgmr.msra.gmra.mxu1 %v4783_v8  ;;  %v11427_v8 = vld [vmem:[%s12361_s6 + $0x4] sm:$0xf] (%p4434_p0) }
 0xed6   : > { %12363 = vst [vmem:[#allocation73_spill] sm:$0xff] (%p4434_p0), %v11427_v8 }
 0xf95   : >> { %v4866_v29 = vpop.f32.mrf.mxu1 }
 0xf96   : >> { %v4873_v15 = vadd.f32 %v4866_v29, %v4732_v0 }
 0xf97   : >> { %v8381_v38 = vpop.f32.mrf.mxu1 }
 0xf98   : >> { %v4877_v30 = vmax.f32 %v4873_v15, 0.0 }
 0xf99   : >> { %v4869_v9 = vpop.f32.mrf.mxu1 }
 0xf9a   : >> { %v4874_v27 = vadd.f32 %v4869_v9, %v4733_v37  ;;  %v11505_v9 = vld [vmem:[%s12361_s6 + $0x6c] sm:$0xf] (%p4434_p0) }
 0xf9b   : >> { %v8382_v1 = vpop.f32.mrf.mxu1 }
 0xf9c   : >> { %v4878_v2 = vmax.f32 %v4874_v27, 0.0  ;;  %4436 = sbr.rel (!%p4434_p0) target bundleno = 3374 (0xd2e), region = 576 }
 0xf9e   : >> { %v7649_v5 = vpack.c.bf16 %v4878_v2, %v4877_v30 }
 0xfa0   : >> { %7650 = vst [vmem:[%s4890_s11] sm:$0xff] %v7649_v5  }
 0xfa1 LB: >> { %v7435_v33 = vcombine.low %v11466_v54, %v11469_v55  ;;  %v7445_v34 = vcombine.low %v11514_v40, %v11517_v41  ;;  %v9578_v0 = vmov 0.0   ;;  %v7434_v6 = vcombine.low %v11460_v52, %v11463_v53  ;;  %s7425_s4 = sshll.u32 %s9489_s26, 4  ;;  %v12366_v8 = vld [vmem:[#allocation73_spill] sm:$0xff]  ;;  %v12367_v7 = vld [vmem:[#allocation72_spill] sm:$0xff]  ;;  %v12368_v4 = vld [vmem:[#allocation75_spill] sm:$0xff]  ;;  %s4955_s26 = sadd.s32 1, %s9489_s26   ;;  %s9489_s26 = sphi %s11569_s26, %s4955_s26  }
 0xfa2   : >> { %8383 = vmatprep.subr.bf16.mxu0 %v9578_v0  ;;  %8403 = vmatprep.subr.bf16.mxu1 %v9578_v0  ;;  %v7444_v37 = vcombine.low %v11508_v13, %v11511_v14  ;;  %s4957_s7 = sshra.s32 %s7425_s4, 3  ;;  %s5060_s15 = sadd.s32 32, %s7425_s4  ;;  %vm9579_vm0 = vmmov 0   ;;  %v7433_v35 = vcombine.low %v11454_v50, %v11457_v51  ;;  %v7443_v36 = vcombine.low %v11502_v19, %v11505_v9  ;;  %v12369_v3 = vld [vmem:[#allocation74_spill] sm:$0xff] }
 0xfa3   : >> { %8384 = vmatpush3.bf16.msra.mxu0 %v7435_v33  ;;  %8404 = vmatpush3.bf16.msra.mxu1 %v7445_v34  ;;  %s11589_s14 = sshll.u32 %s4957_s7, 2  ;;  %s5061_s11 = sshra.s32 %s5060_s15, 3  ;;  %v7432_v29 = vcombine.low %v11448_v11, %v11451_v12  ;;  %v7442_v38 = vcombine.low %v11496_v17, %v11499_v18  ;;  %v7431_v15 = vcombine.low %v11442_v48, %v11445_v10 }
 0xfa4   : >> { %8385 = vmatprep.subr.bf16.mxu0 %v9578_v0  ;;  %8405 = vmatprep.subr.bf16.mxu1 %v9578_v0  ;;  %s7436_s10 = sshll.u32 %s5061_s11, 2  ;;  %s4960_s5 = scalar_lea.vmem [#allocation3], %s11589_s14  ;;  %v7441_v27 = vcombine.low %v11490_v62, %v11493_v63  ;;  %v7430_v1 = vcombine.low %v11436_v21, %v11439_v47  ;;  %v7440_v30 = vcombine.low %v11484_v60, %v11487_v61 }
 0xfa5   : >> { %8399 = vmatprep.mubr.msk.bf16.mxu0 %vm9579_vm0, %v9578_v0  ;;  %8419 = vmatprep.mubr.msk.bf16.mxu1 %vm9579_vm0, %v9578_v0  ;;  %s11600_s7 = scalar_lea.vmem [#allocation3], %s7436_s10  ;;  %s5164_s15 = sadd.s32 64, %s7425_s4  ;;  %v7429_v2 = vcombine.low %v11430_v39, %v11433_v20  ;;  %v7439_v5 = vcombine.low %v11478_v58, %v11481_v59  ;;  %v7428_v33 = vcombine.low %v12367_v7, %v12366_v8 }
 0xfa6   : >> { %s5165_s6 = sshra.s32 %s5164_s15, 3  ;;  %v7438_v34 = vcombine.low %v11472_v56, %v11475_v57  ;;  %p4952_p9 = scmp.ge.s32.totalorder %s4955_s26, 10  }
 0xfa7   : >> { %8386 = vmatpush3.bf16.msra.mxu0 %v7434_v6  ;;  %8406 = vmatpush3.bf16.msra.mxu1 %v7444_v37  ;;  %s7446_s12 = sshll.u32 %s5165_s6, 2  ;;  %v8964_v6 = vld [vmem:[%s4960_s5] sm:$0xff]   ;;  %s12371_s5 = sld [smem:[#allocation57_spill]] (%p4952_p9)  ;;  %v11688_v21 = vld [vmem:[#allocation19 + $0x14] sm:$0xf] (%p4952_p9) }
 0xfa8   : >> { %8387 = vmatprep.subr.bf16.mxu0 %v9578_v0  ;;  %8407 = vmatprep.subr.bf16.mxu1 %v9578_v0  ;;  %s11608_s11 = scalar_lea.vmem [#allocation3], %s7446_s12  ;;  %v8965_v37 = vld [vmem:[%s11600_s7] sm:$0xff]   ;;  %s5279_s12 = scalar_lea.vmem [#allocation2], %s11589_s14 }
 0xfa9   : > { %v11684_v39 = vld [vmem:[#allocation19 + $0xc] sm:$0xf] (%p4952_p9)  ;;  %v11686_v20 = vld [vmem:[#allocation19 + $0x10] sm:$0xf] (%p4952_p9)  ;;  %s11838_s6 = smov (%p4952_p9), 0  }
 0xfab   : >> { %8388 = vmatpush3.bf16.msra.mxu0 %v7433_v35  ;;  %8408 = vmatpush3.bf16.msra.mxu1 %v7443_v36  ;;  %v7455_v35 = vcombine.low %v11562_v31, %v11565_v32  ;;  %v7454_v36 = vcombine.low %v11556_v26, %v11559_v28 }
 0xfac   : >> { %8389 = vmatprep.subr.bf16.mxu0 %v9578_v0  ;;  %8409 = vmatprep.subr.bf16.mxu1 %v9578_v0 }
 0xfad   : > { %v11691_v47 = vld [vmem:[%s12371_s5] sm:$0xf] (%p4952_p9)  ;;  %v11694_v48 = vld [vmem:[%s12371_s5 + $0x4] sm:$0xf] (%p4952_p9)  ;;  %v11697_v10 = vld [vmem:[%s12371_s5 + $0x8] sm:$0xf] (%p4952_p9) }
 0xfae   : > { %12375 = vst [vmem:[#allocation79_spill] sm:$0xff] (%p4952_p9), %v11697_v10  ;;  %v11700_v11 = vld [vmem:[%s12371_s5 + $0xc] sm:$0xf] (%p4952_p9)  ;;  %v11703_v12 = vld [vmem:[%s12371_s5 + $0x10] sm:$0xf] (%p4952_p9) }
 0xfaf   : >> { %8390 = vmatpush3.bf16.msra.mxu0 %v7432_v29  ;;  %8410 = vmatpush3.bf16.msra.mxu1 %v7442_v38  ;;  %v7453_v29 = vcombine.low %v12368_v4, %v11553_v25  ;;  %v7452_v38 = vcombine.low %v11544_v23, %v12369_v3  ;;  %12376 = vst [vmem:[#allocation80_spill] sm:$0xff] (%p4952_p9), %v11700_v11  ;;  %12377 = vst [vmem:[#allocation81_spill] sm:$0xff] (%p4952_p9), %v11703_v12  ;;  %v11706_v50 = vld [vmem:[%s12371_s5 + $0x14] sm:$0xf] (%p4952_p9)  ;;  %v11709_v51 = vld [vmem:[%s12371_s5 + $0x18] sm:$0xf] (%p4952_p9) }
 0xfb0   : >> { %8391 = vmatprep.subr.bf16.mxu0 %v9578_v0  ;;  %8411 = vmatprep.subr.bf16.mxu1 %v9578_v0  ;;  %v11712_v52 = vld [vmem:[%s12371_s5 + $0x1c] sm:$0xf] (%p4952_p9)  ;;  %v11715_v53 = vld [vmem:[%s12371_s5 + $0x20] sm:$0xf] (%p4952_p9)  ;;  %v11718_v54 = vld [vmem:[%s12371_s5 + $0x24] sm:$0xf] (%p4952_p9) }
 0xfb1   : > { %v11721_v55 = vld [vmem:[%s12371_s5 + $0x28] sm:$0xf] (%p4952_p9)  ;;  %v11724_v56 = vld [vmem:[%s12371_s5 + $0x2c] sm:$0xf] (%p4952_p9)  ;;  %v11727_v57 = vld [vmem:[%s12371_s5 + $0x30] sm:$0xf] (%p4952_p9) }
 0xfb2   : > { %v11730_v58 = vld [vmem:[%s12371_s5 + $0x34] sm:$0xf] (%p4952_p9)  ;;  %v11733_v59 = vld [vmem:[%s12371_s5 + $0x38] sm:$0xf] (%p4952_p9)  ;;  %v11736_v60 = vld [vmem:[%s12371_s5 + $0x3c] sm:$0xf] (%p4952_p9) }
 0xfb3   : >> { %8392 = vmatpush3.bf16.msra.mxu0 %v7431_v15  ;;  %8412 = vmatpush3.bf16.msra.mxu1 %v7441_v27  ;;  %v7451_v15 = vcombine.low %v11538_v49, %v11541_v22  ;;  %v7450_v27 = vcombine.low %v11532_v46, %v11535_v16  ;;  %v11739_v61 = vld [vmem:[%s12371_s5 + $0x40] sm:$0xf] (%p4952_p9)  ;;  %v11742_v62 = vld [vmem:[%s12371_s5 + $0x44] sm:$0xf] (%p4952_p9)  ;;  %v11745_v63 = vld [vmem:[%s12371_s5 + $0x48] sm:$0xf] (%p4952_p9) }
 0xfb4   : >> { %8393 = vmatprep.subr.bf16.mxu0 %v9578_v0  ;;  %8413 = vmatprep.subr.bf16.mxu1 %v9578_v0  ;;  %v11748_v17 = vld [vmem:[%s12371_s5 + $0x4c] sm:$0xf] (%p4952_p9)  ;;  %v11751_v18 = vld [vmem:[%s12371_s5 + $0x50] sm:$0xf] (%p4952_p9)  ;;  %v11754_v19 = vld [vmem:[%s12371_s5 + $0x54] sm:$0xf] (%p4952_p9) }
 0xfb5   : > { %v11757_v9 = vld [vmem:[%s12371_s5 + $0x58] sm:$0xf] (%p4952_p9)  ;;  %v11760_v13 = vld [vmem:[%s12371_s5 + $0x5c] sm:$0xf] (%p4952_p9)  ;;  %v11763_v14 = vld [vmem:[%s12371_s5 + $0x60] sm:$0xf] (%p4952_p9) }
 0xfb6   : > { %12378 = vst [vmem:[#allocation72_spill] sm:$0xff] (%p4952_p9), %v11757_v9  ;;  %12379 = vst [vmem:[#allocation73_spill] sm:$0xff] (%p4952_p9), %v11760_v13  ;;  %v11766_v40 = vld [vmem:[%s12371_s5 + $0x64] sm:$0xf] (%p4952_p9)  ;;  %v11769_v41 = vld [vmem:[%s12371_s5 + $0x68] sm:$0xf] (%p4952_p9) }
 0xfb7   : >> { %8394 = vmatpush3.bf16.msra.mxu0 %v7430_v1  ;;  %8414 = vmatpush3.bf16.msra.mxu1 %v7440_v30  ;;  %v7449_v1 = vcombine.low %v11526_v44, %v11529_v45  ;;  %v7448_v30 = vcombine.low %v11520_v42, %v11523_v43  ;;  %12380 = vst [vmem:[#allocation74_spill] sm:$0xff] (%p4952_p9), %v11763_v14  ;;  %v11772_v42 = vld [vmem:[%s12371_s5 + $0x6c] sm:$0xf] (%p4952_p9)  ;;  %v11775_v43 = vld [vmem:[%s12371_s5 + $0x70] sm:$0xf] (%p4952_p9) }
 0xfb8   : >> { %8395 = vmatprep.subr.bf16.mxu0 %v9578_v0  ;;  %8415 = vmatprep.subr.bf16.mxu1 %v9578_v0  ;;  %v11778_v44 = vld [vmem:[%s12371_s5 + $0x74] sm:$0xf] (%p4952_p9)  ;;  %v11781_v45 = vld [vmem:[%s12371_s5 + $0x78] sm:$0xf] (%p4952_p9)  ;;  %v11784_v46 = vld [vmem:[%s12371_s5 + $0x7c] sm:$0xf] (%p4952_p9) }
 0xfb9   : > { %v11787_v16 = vld [vmem:[%s12371_s5 + $0x80] sm:$0xf] (%p4952_p9)  ;;  %v11790_v49 = vld [vmem:[%s12371_s5 + $0x84] sm:$0xf] (%p4952_p9)  ;;  %v11793_v22 = vld [vmem:[%s12371_s5 + $0x88] sm:$0xf] (%p4952_p9) }
 0xfba   : > { %v11796_v23 = vld [vmem:[%s12371_s5 + $0x8c] sm:$0xf] (%p4952_p9)  ;;  %v11802_v25 = vld [vmem:[%s12371_s5 + $0x94] sm:$0xf] (%p4952_p9)  ;;  %v11805_v26 = vld [vmem:[%s12371_s5 + $0x98] sm:$0xf] (%p4952_p9) }
 0xfbb   : >> { %8396 = vmatpush3.bf16.msra.mxu0 %v7429_v2  ;;  %8416 = vmatpush3.bf16.msra.mxu1 %v7439_v5  ;;  %v8966_v2 = vld [vmem:[%s11608_s11] sm:$0xff]   ;;  %v11808_v28 = vld [vmem:[%s12371_s5 + $0x9c] sm:$0xf] (%p4952_p9) }
 0xfbc   : >> { %8397 = vmatprep.subr.bf16.mxu0 %v9578_v0  ;;  %8417 = vmatprep.subr.bf16.mxu1 %v9578_v0  ;;  %v11811_v31 = vld [vmem:[%s12371_s5 + $0xa0] sm:$0xf] (%p4952_p9)  ;;  %v11814_v32 = vld [vmem:[%s12371_s5 + $0xa4] sm:$0xf] (%p4952_p9) }
 0xfbf   : >> { %8398 = vmatpush3.bf16.msra.mxu0 %v7428_v33  ;;  %8418 = vmatpush3.bf16.msra.mxu1 %v7438_v34 }
 0xfc0   : >> { %8423 = vmatprep.subr.bf16.mxu0 %v9578_v0 }
 0xfc2   : >> { %8400 = vmatmul.mubr.bf16.vlgmr.msra.gmra.mxu0 %v8964_v6  ;;  %8420 = vmatmul.mubr.bf16.vlgmr.msra.gmra.mxu1 %v8965_v37 }
 0xfc3   : >> { %8424 = vmatpush3.bf16.msra.mxu0 %v7455_v35  ;;  %8439 = vmatprep.mubr.msk.bf16.mxu0 %vm9579_vm0, %v9578_v0 }
 0xfc4   : >> { %8425 = vmatprep.subr.bf16.mxu0 %v9578_v0 }
 0xfc7   : >> { %8426 = vmatpush3.bf16.msra.mxu0 %v7454_v36 }
 0xfc8   : >> { %8427 = vmatprep.subr.bf16.mxu0 %v9578_v0 }
 0xfcb   : >> { %8428 = vmatpush3.bf16.msra.mxu0 %v7453_v29 }
 0xfcc   : >> { %8429 = vmatprep.subr.bf16.mxu0 %v9578_v0 }
 0xfcf   : >> { %8430 = vmatpush3.bf16.msra.mxu0 %v7452_v38 }
 0xfd0   : >> { %8431 = vmatprep.subr.bf16.mxu0 %v9578_v0 }
 0xfd3   : >> { %8432 = vmatpush3.bf16.msra.mxu0 %v7451_v15 }
 0xfd4   : >> { %8433 = vmatprep.subr.bf16.mxu0 %v9578_v0 }
 0xfd7   : >> { %8434 = vmatpush3.bf16.msra.mxu0 %v7450_v27 }
 0xfd8   : >> { %8435 = vmatprep.subr.bf16.mxu0 %v9578_v0 }
 0xfdb   : >> { %8436 = vmatpush3.bf16.msra.mxu0 %v7449_v1 }
 0xfdc   : >> { %8437 = vmatprep.subr.bf16.mxu0 %v9578_v0 }
 0xfdf   : >> { %8438 = vmatpush3.bf16.msra.mxu0 %v7448_v30 }
 0xfe2   : >> { %8440 = vmatmul.mubr.bf16.vlgmr.msra.gmra.mxu0 %v8966_v2 }
0x1082   : >> { %v5051_v5 = vpop.f32.mrf.mxu0  ;;  %v5155_v33 = vpop.f32.mrf.mxu1 }
0x1083   : >> { %v5058_v38 = vadd.f32 %v11567_v24, %v5051_v5  ;;  %v11670_v5 = vld [vmem:[#allocation19] sm:$0xf] (%p4952_p9) }
0x1084   : >> { %v8401_v34 = vpop.f32.mrf.mxu0  ;;  %v8421_v6 = vpop.f32.mrf.mxu1  ;;  %12370 = vst [vmem:[#allocation76_spill] sm:$0xff] (%p4952_p9), %v11670_v5 }
0x1085   : >> { %v5162_v1 = vadd.f32 %v5155_v33, %v5058_v38  ;;  %v11820_v33 = vld [vmem:[%s12371_s5 + $0xac] sm:$0xf] (%p4952_p9) }
0x1086   : >> { %v5054_v37 = vpop.f32.mrf.mxu0  ;;  %v5158_v35 = vpop.f32.mrf.mxu1  ;;  %v11834_v38 = vld [vmem:[#allocation20] sm:$0xff] (%p4952_p9) }
0x1087   : >> { %v5059_v15 = vadd.f32 %v11567_v24, %v5054_v37  ;;  %v11817_v24 = vld [vmem:[%s12371_s5 + $0xa8] sm:$0xf] (%p4952_p9)  ;;  %v11823_v37 = vld [vmem:[%s12371_s5 + $0xb0] sm:$0xf] (%p4952_p9) }
0x1088   : >> { %v8402_v36 = vpop.f32.mrf.mxu0  ;;  %v8422_v29 = vpop.f32.mrf.mxu1 }
0x1089   : >> { %v5163_v0 = vadd.f32 %v5158_v35, %v5059_v15  ;;  %v11826_v35 = vld [vmem:[%s12371_s5 + $0xb4] sm:$0xf] (%p4952_p9)  ;;  %v11829_v36 = vld [vmem:[%s12371_s5 + $0xb8] sm:$0xf] (%p4952_p9)  ;;  %v11832_v29 = vld [vmem:[%s12371_s5 + $0xbc] sm:$0xf] (%p4952_p9) }
0x108a   : > { %v11836_v15 = vld [vmem:[#allocation20 + $0x8] sm:$0xff] (%p4952_p9) }
0x10a2   : >> { %v5259_v27 = vpop.f32.mrf.mxu0 }
0x10a3   : >> { %v5266_v4 = vadd.f32 %v5259_v27, %v5162_v1 }
0x10a4   : >> { %v8441_v3 = vpop.f32.mrf.mxu0 }
0x10a5   : >> { %v5268_v8 = vmax.f32 %v5266_v4, 0.0  ;;  %v12374_v3 = vmov (%p4952_p9), 0   ;;  %v11799_v4 = vld [vmem:[%s12371_s5 + $0x90] sm:$0xf] (%p4952_p9) }
0x10a6   : >> { %v5262_v30 = vpop.f32.mrf.mxu0  ;;  %5342 = vst.msk [vmem:[#allocation3] sm:$0xf] (%p4952_p9), %vm2130_vm7, %v12374_v3  ;;  %5343 = vst.msk [vmem:[#allocation3 + $0x4] sm:$0xf] (%p4952_p9), %vm2130_vm7, %v12374_v3 }
0x10a7   : >> { %v5267_v2 = vadd.f32 %v5262_v30, %v5163_v0  ;;  %5344 = vst.msk [vmem:[#allocation3 + $0x58] sm:$0xf] (%p4952_p9), %vm2130_vm7, %v12374_v3  ;;  %5345 = vst.msk [vmem:[#allocation3 + $0x5c] sm:$0xf] (%p4952_p9), %vm2130_vm7, %v12374_v3 }
0x10a8   : >> { %v8442_v7 = vpop.f32.mrf.mxu0  ;;  %12381 = vst [vmem:[#allocation75_spill] sm:$0xff] (%p4952_p9), %v11799_v4 }
0x10a9   : >> { %v5269_v34 = vmax.f32 %v5267_v2, 0.0  ;;  %4954 = sbr.rel (!%p4952_p9) target bundleno = 4001 (0xfa1), region = 587  ;;  %v11672_v7 = vld [vmem:[#allocation19 + $0x4] sm:$0xf] (%p4952_p9) }
0x10aa   : > { %12372 = vst [vmem:[#allocation77_spill] sm:$0xff] (%p4952_p9), %v11672_v7 }
0x10ab   : >> { %v7654_v6 = vpack.c.bf16 %v5269_v34, %v5268_v8  ;;  %v11674_v8 = vld [vmem:[#allocation19 + $0x8] sm:$0xf] (%p4952_p9) }
0x10ac   : > { %12373 = vst [vmem:[#allocation78_spill] sm:$0xff] (%p4952_p9), %v11674_v8 }
0x10ad   : >> { %7655 = vst [vmem:[%s5279_s12] sm:$0xff] %v7654_v6  }
0x10ae LB: >> { %v9580_v27 = vmov 0.0   ;;  %vm9581_vm1 = vmmov 0   ;;  %v7503_v1 = vcombine.low %v11733_v59, %v11736_v60  ;;  %s7491_s26 = sshll.u32 %s9493_s6, 4  ;;  %v7502_v0 = vcombine.low %v11727_v57, %v11730_v58  ;;  %v12383_v5 = vld [vmem:[#allocation76_spill] sm:$0xff]  ;;  %v12385_v12 = vld [vmem:[#allocation81_spill] sm:$0xff]  ;;  %v12386_v14 = vld [vmem:[#allocation74_spill] sm:$0xff]  ;;  %s9493_s6 = sphi %s11838_s6, %s5351_s6  }
0x10af   : >> { %8443 = vmatprep.subr.bf16.mxu0 %v9580_v27  ;;  %8445 = vmatprep.mubr.msk.bf16.mxu0 %vm9581_vm1, %v9580_v27  ;;  %s5353_s4 = sshra.s32 %s7491_s26, 3  ;;  %v7501_v34 = vcombine.low %v11721_v55, %v11724_v56  ;;  %v7500_v6 = vcombine.low %v11715_v53, %v11718_v54  ;;  %v12387_v11 = vld [vmem:[#allocation80_spill] sm:$0xff]  ;;  %v12388_v10 = vld [vmem:[#allocation79_spill] sm:$0xff]  ;;  %v12389_v13 = vld [vmem:[#allocation73_spill] sm:$0xff]  ;;  %s7631_s7 = sadd.s32 16, %s7491_s26 }
0x10b0   : >> { %8449 = vmatprep.subr.bf16.mxu1 %v9580_v27  ;;  %8465 = vmatprep.mubr.msk.bf16.mxu1 %vm9581_vm1, %v9580_v27  ;;  %s7492_s14 = sshll.u32 %s5353_s4, 2  ;;  %v12390_v9 = vld [vmem:[#allocation72_spill] sm:$0xff]  ;;  %v12391_v4 = vld [vmem:[#allocation75_spill] sm:$0xff]  ;;  %s5801_s15 = sshra.s32 %s7631_s7, 3 }
0x10b1   : >> { %8450 = vmatpush3.bf16.msra.mxu1 %v7503_v1  ;;  %s5356_s10 = scalar_lea.vmem [#allocation2], %s7492_s14  ;;  %v12382_v7 = vld [vmem:[#allocation77_spill] sm:$0xff]  ;;  %v7499_v1 = vcombine.low %v11709_v51, %v11712_v52  ;;  %s7527_s11 = sshll.u32 %s5801_s15, 2 }
0x10b2   : >> { %8451 = vmatprep.subr.bf16.mxu1 %v9580_v27  ;;  %v7493_v2 = vcombine.low %v12383_v5, %v12382_v7  ;;  %s5804_s12 = scalar_lea.vmem [#allocation3], %s7527_s11  ;;  %s5351_s6 = sadd.s32 1, %s9493_s6  }
0x10b3   : >> { %v12384_v8 = vld [vmem:[#allocation78_spill] sm:$0xff]  ;;  %p5348_p1 = scmp.ge.s32.totalorder %s5351_s6, 10  }
0x10b4   : >> { %v11857_v30 = vld [vmem:[%s5356_s10] sm:$0xff]   ;;  %v7504_v3 = vcombine.low %v12384_v8, %v11684_v39  ;;  %s12392_s26 = sld [smem:[#allocation59_spill]] (%p5348_p1)  ;;  %s12030_s6 = smov (%p5348_p1), 0  }
0x10b5   : >> { %8452 = vmatpush3.bf16.msra.mxu1 %v7502_v0  ;;  %8444 = vmatpush3.bf16.msra.mxu0 %v11857_v30  ;;  %v7513_v0 = vcombine.low %v11781_v45, %v11784_v46 }
0x10b6   : >> { %8453 = vmatprep.subr.bf16.mxu1 %v9580_v27  ;;  %8469 = vmatprep.subr.bf16.mxu0 %v9580_v27 }
0x10b8   : >> { %8446 = vmatmul.mubr.msk.bf16.vlgmr.msra.gmra.mxu0 %vm1541_vm2, %v7493_v2  ;;  %v7498_v2 = vcombine.low %v12385_v12, %v11706_v50 }
0x10b9   : >> { %8454 = vmatpush3.bf16.msra.mxu1 %v7501_v34  ;;  %8470 = vmatpush3.bf16.msra.mxu0 %v11857_v30  ;;  %v7512_v34 = vcombine.low %v11775_v43, %v11778_v44 }
0x10ba   : >> { %8471 = vmatprep.mubr.msk.bf16.mxu0 %vm9581_vm1, %v9580_v27  ;;  %8475 = vmatprep.subr.bf16.mxu0 %v9580_v27  ;;  %v11963_v39 = vld [vmem:[%s12392_s26 + $0x8] sm:$0xf] (%p5348_p1)  ;;  %v11978_v50 = vld [vmem:[%s12392_s26 + $0x1c] sm:$0xf] (%p5348_p1)  ;;  %v11981_v51 = vld [vmem:[%s12392_s26 + $0x20] sm:$0xf] (%p5348_p1) }
0x10bb   : >> { %8455 = vmatprep.subr.bf16.mxu1 %v9580_v27  ;;  %v11984_v52 = vld [vmem:[%s12392_s26 + $0x24] sm:$0xf] (%p5348_p1)  ;;  %v11987_v53 = vld [vmem:[%s12392_s26 + $0x28] sm:$0xf] (%p5348_p1)  ;;  %v11990_v54 = vld [vmem:[%s12392_s26 + $0x2c] sm:$0xf] (%p5348_p1) }
0x10bc   : > { %v11993_v55 = vld [vmem:[%s12392_s26 + $0x30] sm:$0xf] (%p5348_p1)  ;;  %v11996_v56 = vld [vmem:[%s12392_s26 + $0x34] sm:$0xf] (%p5348_p1)  ;;  %v11999_v57 = vld [vmem:[%s12392_s26 + $0x38] sm:$0xf] (%p5348_p1) }
0x10bd   : >> { %8456 = vmatpush3.bf16.msra.mxu1 %v7500_v6  ;;  %v7511_v6 = vcombine.low %v11769_v41, %v11772_v42  ;;  %v12002_v58 = vld [vmem:[%s12392_s26 + $0x3c] sm:$0xf] (%p5348_p1)  ;;  %v12005_v59 = vld [vmem:[%s12392_s26 + $0x40] sm:$0xf] (%p5348_p1)  ;;  %v12008_v60 = vld [vmem:[%s12392_s26 + $0x44] sm:$0xf] (%p5348_p1) }
0x10be   : >> { %8457 = vmatprep.subr.bf16.mxu1 %v9580_v27 }
0x10c0   : >> { %8472 = vmatmul.mubr.msk.bf16.vlgmr.msra.gmra.mxu0 %vm1541_vm2, %v7504_v3  ;;  %v7510_v3 = vcombine.low %v12386_v14, %v11766_v40 }
0x10c1   : >> { %8458 = vmatpush3.bf16.msra.mxu1 %v7499_v1  ;;  %8476 = vmatpush3.bf16.msra.mxu0 %v7513_v0  ;;  %v7497_v1 = vcombine.low %v12388_v10, %v12387_v11  ;;  %v7509_v0 = vcombine.low %v12390_v9, %v12389_v13 }
0x10c2   : >> { %8459 = vmatprep.subr.bf16.mxu1 %v9580_v27  ;;  %8477 = vmatprep.subr.bf16.mxu0 %v9580_v27 }
0x10c3   : >> { %8491 = vmatprep.mubr.msk.bf16.mxu0 %vm9581_vm1, %v9580_v27 }
0x10c5   : >> { %8460 = vmatpush3.bf16.msra.mxu1 %v7498_v2  ;;  %8478 = vmatpush3.bf16.msra.mxu0 %v7512_v34  ;;  %v7496_v2 = vcombine.low %v11691_v47, %v11694_v48  ;;  %v7508_v34 = vcombine.low %v11751_v18, %v11754_v19  ;;  %v11972_v47 = vld [vmem:[%s12392_s26 + $0x14] sm:$0xf] (%p5348_p1)  ;;  %v11975_v48 = vld [vmem:[%s12392_s26 + $0x18] sm:$0xf] (%p5348_p1)  ;;  %v12026_v19 = vld [vmem:[%s12392_s26 + $0x5c] sm:$0xf] (%p5348_p1) }
0x10c6   : >> { %8461 = vmatprep.subr.bf16.mxu1 %v9580_v27  ;;  %8479 = vmatprep.subr.bf16.mxu0 %v9580_v27  ;;  %v12023_v18 = vld [vmem:[%s12392_s26 + $0x58] sm:$0xf] (%p5348_p1) }
0x10c9   : >> { %8480 = vmatpush3.bf16.msra.mxu0 %v7511_v6  ;;  %8462 = vmatpush3.bf16.msra.mxu1 %v7497_v1  ;;  %v7507_v6 = vcombine.low %v11745_v63, %v11748_v17  ;;  %v12017_v63 = vld [vmem:[%s12392_s26 + $0x50] sm:$0xf] (%p5348_p1)  ;;  %v12020_v17 = vld [vmem:[%s12392_s26 + $0x54] sm:$0xf] (%p5348_p1) }
0x10ca   : >> { %8481 = vmatprep.subr.bf16.mxu0 %v9580_v27  ;;  %8463 = vmatprep.subr.bf16.mxu1 %v9580_v27 }
0x10cd   : >> { %8482 = vmatpush3.bf16.msra.mxu0 %v7510_v3  ;;  %8464 = vmatpush3.bf16.msra.mxu1 %v7496_v2  ;;  %v7506_v3 = vcombine.low %v11739_v61, %v11742_v62  ;;  %v12011_v61 = vld [vmem:[%s12392_s26 + $0x48] sm:$0xf] (%p5348_p1)  ;;  %v12014_v62 = vld [vmem:[%s12392_s26 + $0x4c] sm:$0xf] (%p5348_p1) }
0x10ce   : >> { %8483 = vmatprep.subr.bf16.mxu0 %v9580_v27  ;;  %8501 = vmatprep.subr.bf16.mxu1 %v9580_v27 }
0x10d1   : >> { %8484 = vmatpush3.bf16.msra.mxu0 %v7509_v0 }
0x10d2   : >> { %8485 = vmatprep.subr.bf16.mxu0 %v9580_v27 }
0x10d5   : >> { %8486 = vmatpush3.bf16.msra.mxu0 %v7508_v34  ;;  %v7523_v34 = vcombine.low %v11829_v36, %v11832_v29 }
0x10d6   : >> { %8487 = vmatprep.subr.bf16.mxu0 %v9580_v27 }
0x10d9   : >> { %8488 = vmatpush3.bf16.msra.mxu0 %v7507_v6  ;;  %v7522_v6 = vcombine.low %v11823_v37, %v11826_v35 }
0x10da   : >> { %8489 = vmatprep.subr.bf16.mxu0 %v9580_v27 }
0x10dd   : >> { %8490 = vmatpush3.bf16.msra.mxu0 %v7506_v3 }
0x10de   : >> { %8495 = vmatprep.subr.bf16.mxu0 %v9580_v27 }
0x1178   : >> { %v5408_v1 = vpop.f32.mrf.mxu0 }
0x117a   : >> { %v8447_v0 = vpop.f32.mrf.mxu0 }
0x117c   : >> { %v5411_v2 = vpop.f32.mrf.mxu0 }
0x117d   : >> { %v5415_v5 = vpack.c.bf16 %v5411_v2, %v5408_v1  ;;  %v7516_v1 = vcombine.low %v11787_v16, %v11790_v49 }
0x117e   : >> { %v8448_v7 = vpop.f32.mrf.mxu0 }
0x117f   : >> { %8466 = vmatmul.mubr.bf16.vlgmr.msra.gmra.mxu1 %v5415_v5  ;;  %v7514_v5 = vcombine.low %v11686_v20, %v11688_v21  ;;  %v7521_v7 = vcombine.low %v11817_v24, %v11820_v33  ;;  %v11966_v20 = vld [vmem:[%s12392_s26 + $0xc] sm:$0xf] (%p5348_p1)  ;;  %v11969_v21 = vld [vmem:[%s12392_s26 + $0x10] sm:$0xf] (%p5348_p1) }
0x1180   : >> { %v5549_v8 = vpop.f32.mrf.mxu0  ;;  %8502 = vmatpush3.bf16.msra.mxu1 %v7523_v34  ;;  %8517 = vmatprep.mubr.msk.bf16.mxu1 %vm9581_vm1, %v9580_v27 }
0x1181   : >> { %8503 = vmatprep.subr.bf16.mxu1 %v9580_v27 }
0x1182   : >> { %v8473_v3 = vpop.f32.mrf.mxu0 }
0x1184   : >> { %v5552_v9 = vpop.f32.mrf.mxu0  ;;  %8504 = vmatpush3.bf16.msra.mxu1 %v7522_v6 }
0x1185   : >> { %v5556_v0 = vpack.c.bf16 %v5552_v9, %v5549_v8  ;;  %8505 = vmatprep.subr.bf16.mxu1 %v9580_v27  ;;  %v7520_v8 = vcombine.low %v11811_v31, %v11814_v32  ;;  %v7518_v9 = vcombine.low %v12391_v4, %v11802_v25 }
0x1186   : >> { %v8474_v10 = vpop.f32.mrf.mxu0 }
0x1187   : >> { %8492 = vmatmul.mubr.bf16.vlgmr.msra.gmra.mxu0 %v5556_v0  ;;  %v7519_v10 = vcombine.low %v11805_v26, %v11808_v28 }
0x1188   : >> { %8496 = vmatpush3.bf16.msra.mxu0 %v11857_v30  ;;  %8497 = vmatprep.mubr.msk.bf16.mxu0 %vm9581_vm1, %v9580_v27  ;;  %v7517_v30 = vcombine.low %v11793_v22, %v11796_v23 }
0x1189   : >> { %8506 = vmatpush3.bf16.msra.mxu1 %v7521_v7 }
0x118a   : >> { %8507 = vmatprep.subr.bf16.mxu1 %v9580_v27 }
0x118d   : >> { %8508 = vmatpush3.bf16.msra.mxu1 %v7520_v8 }
0x118e   : >> { %8509 = vmatprep.subr.bf16.mxu1 %v9580_v27 }
0x118f   : >> { %8498 = vmatmul.mubr.msk.bf16.vlgmr.msra.gmra.mxu0 %vm1541_vm2, %v7514_v5 }
0x1191   : >> { %8510 = vmatpush3.bf16.msra.mxu1 %v7519_v10 }
0x1192   : >> { %8511 = vmatprep.subr.bf16.mxu1 %v9580_v27 }
0x1195   : >> { %8512 = vmatpush3.bf16.msra.mxu1 %v7518_v9 }
0x1196   : >> { %8513 = vmatprep.subr.bf16.mxu1 %v9580_v27 }
0x1199   : >> { %8514 = vmatpush3.bf16.msra.mxu1 %v7517_v30 }
0x119a   : >> { %8515 = vmatprep.subr.bf16.mxu1 %v9580_v27 }
0x119d   : >> { %8516 = vmatpush3.bf16.msra.mxu1 %v7516_v1 }
0x123f   : >> { %v5498_v2 = vpop.f32.mrf.mxu1 }
0x1240   : >> { %v5505_v0 = vadd.f32 %v5498_v2, %v11834_v38 }
0x1241   : >> { %v8467_v34 = vpop.f32.mrf.mxu1 }
0x1243   : >> { %v5501_v6 = vpop.f32.mrf.mxu1 }
0x1244   : >> { %v5506_v10 = vadd.f32 %v5501_v6, %v11836_v15 }
0x1245   : >> { %v8468_v3 = vpop.f32.mrf.mxu1 }
0x1247   : >> { %v5639_v5 = vpop.f32.mrf.mxu0 }
0x1248   : >> { %v5646_v7 = vadd.f32 %v5639_v5, %v5505_v0 }
0x1249   : >> { %v8493_v8 = vpop.f32.mrf.mxu0 }
0x124b   : >> { %v5642_v9 = vpop.f32.mrf.mxu0 }
0x124c   : >> { %v5647_v30 = vadd.f32 %v5642_v9, %v5506_v10 }
0x124d   : >> { %v8494_v4 = vpop.f32.mrf.mxu0 }
0x124f   : >> { %v5690_v27 = vpop.f32.mrf.mxu0 }
0x1251   : >> { %v8499_v11 = vpop.f32.mrf.mxu0 }
0x1253   : >> { %v5693_v12 = vpop.f32.mrf.mxu0 }
0x1254   : >> { %v5697_v13 = vpack.c.bf16 %v5693_v12, %v5690_v27  ;;  %v11957_v12 = vld [vmem:[%s12392_s26] sm:$0xf] (%p5348_p1) }
0x1255   : >> { %v8500_v1 = vpop.f32.mrf.mxu0 }
0x1256   : >> { %8518 = vmatmul.mubr.bf16.vlgmr.msra.gmra.mxu1 %v5697_v13  ;;  %v11960_v13 = vld [vmem:[%s12392_s26 + $0x4] sm:$0xf] (%p5348_p1) }
0x1316   : >> { %v5780_v34 = vpop.f32.mrf.mxu1 }
0x1317   : >> { %v5787_v3 = vadd.f32 %v5780_v34, %v5646_v7 }
0x1318   : >> { %v8519_v2 = vpop.f32.mrf.mxu1 }
0x1319   : >> { %v5791_v0 = vmax.f32 %v5787_v3, 0.0 }
0x131a   : >> { %v5783_v5 = vpop.f32.mrf.mxu1 }
0x131b   : >> { %v7632_v8 = vpack.c.bf16 %v5791_v0, %v5791_v0  ;;  %v5788_v6 = vadd.f32 %v5783_v5, %v5647_v30 }
0x131c   : >> { %v8520_v14 = vpop.f32.mrf.mxu1 }
0x131d   : >> { %5805 = vst.msk [vmem:[%s5804_s12] sm:$0xf] %vm2130_vm7, %v7632_v8  ;;  %v5792_v11 = vmax.f32 %v5788_v6, 0.0  ;;  %5350 = sbr.rel (!%p5348_p1) target bundleno = 4270 (0x10ae), region = 598  ;;  %v12028_v14 = vld [vmem:[#allocation22] ss:$0 sm:$0xff] (%p5348_p1) }
0x131f   : >> { %v7633_v4 = vpack.c.bf16 %v5792_v11, %v5792_v11 }
0x1321   : >> { %5806 = vst.msk [vmem:[%s5804_s12 + $0x4] sm:$0xf] %vm2130_vm7, %v7633_v4 }
0x1322 LB: >> { %v7551_v40 = vcombine.low %v11975_v48, %v11978_v50  ;;  %v7558_v41 = vcombine.low %v11999_v57, %v12002_v58  ;;  %v9582_v42 = vmov 0.0   ;;  %v7550_v43 = vcombine.low %v11969_v21, %v11972_v47  ;;  %s7545_s4 = sshll.u32 %s9497_s6, 4  ;;  %s5845_s6 = sadd.s32 1, %s9497_s6   ;;  %s9497_s6 = sphi %s12030_s6, %s5845_s6  }
0x1323   : >> { %8521 = vmatprep.subr.bf16.mxu0 %v9582_v42  ;;  %8533 = vmatprep.subr.bf16.mxu1 %v9582_v42  ;;  %v7557_v44 = vcombine.low %v11993_v55, %v11996_v56  ;;  %s5847_s14 = sshra.s32 %s7545_s4, 3  ;;  %s5929_s10 = sadd.s32 32, %s7545_s4  ;;  %vm9583_vm2 = vmmov 0   ;;  %v7549_v45 = vcombine.low %v11963_v39, %v11966_v20  ;;  %v7556_v46 = vcombine.low %v11987_v53, %v11990_v54 }
0x1324   : >> { %8522 = vmatpush3.bf16.msra.mxu0 %v7551_v40  ;;  %8534 = vmatpush3.bf16.msra.mxu1 %v7558_v41  ;;  %s12045_s7 = sshll.u32 %s5847_s14, 2  ;;  %s5930_s15 = sshra.s32 %s5929_s10, 3  ;;  %v7548_v16 = vcombine.low %v11957_v12, %v11960_v13  ;;  %v7555_v49 = vcombine.low %v11981_v51, %v11984_v52  ;;  %v7565_v25 = vcombine.low %v12023_v18, %v12026_v19 }
0x1325   : >> { %8523 = vmatprep.subr.bf16.mxu0 %v9582_v42  ;;  %8535 = vmatprep.subr.bf16.mxu1 %v9582_v42  ;;  %s7553_s11 = sshll.u32 %s5930_s15, 2  ;;  %s5850_s12 = scalar_lea.vmem [#allocation3], %s12045_s7  ;;  %v7564_v26 = vcombine.low %v12017_v63, %v12020_v17  ;;  %v7563_v28 = vcombine.low %v12011_v61, %v12014_v62  ;;  %v7562_v31 = vcombine.low %v12005_v59, %v12008_v60 }
0x1326   : >> { %8529 = vmatprep.mubr.msk.bf16.mxu0 %vm9583_vm2, %v9582_v42  ;;  %8541 = vmatprep.mubr.msk.bf16.mxu1 %vm9583_vm2, %v9582_v42  ;;  %s5933_s5 = scalar_lea.vmem [#allocation3], %s7553_s11  ;;  %s6011_s16 = sadd.s32 64, %s7545_s4 }
0x1327   : >> { %s6012_s14 = sshra.s32 %s6011_s16, 3  ;;  %p5842_p3 = scmp.ge.s32.totalorder %s5845_s6, 8  }
0x1328   : >> { %8524 = vmatpush3.bf16.msra.mxu0 %v7550_v43  ;;  %8536 = vmatpush3.bf16.msra.mxu1 %v7557_v44  ;;  %s7560_s17 = sshll.u32 %s6012_s14, 2  ;;  %v8968_v22 = vld [vmem:[%s5850_s12] sm:$0xff]   ;;  %s12393_s16 = sld [smem:[#allocation60_spill]] (%p5842_p3)  ;;  %v9584_v40 = vmov (%p5842_p3), 0.0   ;;  %vm9585_vm3 = vmmov (%p5842_p3), 0   ;;  %vm6571_vm4 = vcmask (%p5842_p3), 40960  }
0x1329   : >> { %8525 = vmatprep.subr.bf16.mxu0 %v9582_v42  ;;  %8537 = vmatprep.subr.bf16.mxu1 %v9582_v42  ;;  %s6015_s10 = scalar_lea.vmem [#allocation3], %s7560_s17  ;;  %v8969_v23 = vld [vmem:[%s5933_s5] sm:$0xff]   ;;  %s6104_s17 = scalar_lea.vmem [#allocation2], %s12045_s7 }
0x132a   : >> { %v8970_v32 = vld [vmem:[%s6015_s10] sm:$0xff]   ;;  %s12394_s5 = sld [smem:[#allocation61_spill]] (%p5842_p3)  ;;  %s7596_s11 = sshll.u32 (%p5842_p3), %s9836_s0, 4 }
0x132b   : > { %s12395_s6 = sld [smem:[#allocation63_spill]] (%p5842_p3)  ;;  %s6592_s12 = sshll.u32 (%p5842_p3), %s10054_s1, 4  ;;  %s6593_s12 = int_to_ptr.vmem [resolvable:$true] %s6592_s12 }
0x132c   : >> { %8526 = vmatpush3.bf16.msra.mxu0 %v7549_v45  ;;  %8538 = vmatpush3.bf16.msra.mxu1 %v7556_v46  ;;  %s12396_s4 = sld [smem:[#allocation62_spill]] (%p5842_p3)  ;;  %s6590_s14 = scalar_lea.hbm (%p5842_p3), %s9813_s9, %s7596_s11 }
0x132d   : >> { %8527 = vmatprep.subr.bf16.mxu0 %v9582_v42  ;;  %8539 = vmatprep.subr.bf16.mxu1 %v9582_v42  ;;  %s12397_s7 = sld [smem:[#allocation65_spill]] (%p5842_p3)  ;;  %s12399_s10 = sand.u32 (%p5842_p3), 1, %s9441_s28  }
0x132e   : > { %v8971_v4 = vld [vmem:[%s12393_s16 + $0x18] sm:$0xff] (%p5842_p3)   ;;  %v8972_v41 = vld [vmem:[%s12393_s16 + $0x10] sm:$0xff] (%p5842_p3)   ;;  %v8973_v50 = vld [vmem:[%s12393_s16 + $0x8] sm:$0xff] (%p5842_p3)   ;;  %s12398_s15 = sld [smem:[#allocation64_spill]] (%p5842_p3)  ;;  %p12400_p4 = scmp.ne.s32.totalorder (%p5842_p3), %s12285_s18, 0 }
0x132f   : > { %v8974_v59 = vld [vmem:[%s12393_s16] sm:$0xff] (%p5842_p3)  }
0x1330   : >> { %8528 = vmatpush3.bf16.msra.mxu0 %v7548_v16  ;;  %8540 = vmatpush3.bf16.msra.mxu1 %v7555_v49 }
0x1331   : >> { %8545 = vmatprep.subr.bf16.mxu0 %v9582_v42  ;;  %8569 = vmatprep.subr.bf16.mxu1 (%p5842_p3), %v9584_v40 }
0x1333   : >> { %8530 = vmatmul.mubr.msk.bf16.vlgmr.msra.gmra.mxu0 %vm2573_vm10, %v8968_v22  ;;  %8542 = vmatmul.mubr.msk.bf16.vlgmr.msra.gmra.mxu1 %vm2573_vm10, %v8969_v23 }
0x1334   : >> { %8546 = vmatpush3.bf16.msra.mxu0 %v7565_v25  ;;  %8553 = vmatprep.mubr.msk.bf16.mxu0 %vm9583_vm2, %v9582_v42 }
0x1335   : >> { %8547 = vmatprep.subr.bf16.mxu0 %v9582_v42  ;;  %8577 = vmatprep.mubr.msk.bf16.mxu1 (%p5842_p3), %vm9585_vm3, %v9584_v40 }
0x1338   : >> { %8548 = vmatpush3.bf16.msra.mxu0 %v7564_v26 }
0x1339   : >> { %8549 = vmatprep.subr.bf16.mxu0 %v9582_v42 }
0x133c   : >> { %8550 = vmatpush3.bf16.msra.mxu0 %v7563_v28 }
0x133d   : >> { %8551 = vmatprep.subr.bf16.mxu0 %v9582_v42 }
0x1340   : >> { %8552 = vmatpush3.bf16.msra.mxu0 %v7562_v31 }
0x1341   : > { %8557 = vmatprep.subr.bf16.mxu0 (%p5842_p3), %v9584_v40 }
0x1343   : >> { %8554 = vmatmul.mubr.msk.bf16.vlgmr.msra.gmra.mxu0 %vm2573_vm10, %v8970_v32 }
0x1344   : > { %8558 = vmatpush3.bf16.msra.mxu0 (%p5842_p3), %v8971_v4  ;;  %8565 = vmatprep.mubr.msk.bf16.mxu0 (%p5842_p3), %vm9585_vm3, %v9584_v40 }
0x1345   : > { %8559 = vmatprep.subr.bf16.mxu0 (%p5842_p3), %v9584_v40 }
0x1348   : > { %8560 = vmatpush3.bf16.msra.mxu0 (%p5842_p3), %v8972_v41 }
0x1349   : > { %8561 = vmatprep.subr.bf16.mxu0 (%p5842_p3), %v9584_v40 }
0x134c   : > { %8562 = vmatpush3.bf16.msra.mxu0 (%p5842_p3), %v8973_v50 }
0x134d   : > { %8563 = vmatprep.subr.bf16.mxu0 (%p5842_p3), %v9584_v40 }
0x1350   : > { %8564 = vmatpush3.bf16.msra.mxu0 (%p5842_p3), %v8974_v59  ;;  %v8981_v59 = vld [vmem:[%s12395_s6 + $0x8] sm:$0xff] (%p5842_p3)  }
0x1351   : > { %8581 = vmatprep.subr.bf16.mxu0 (%p5842_p3), %v9584_v40 }
0x13f3   : >> { %v5920_v24 = vpop.f32.mrf.mxu0  ;;  %v6002_v33 = vpop.f32.mrf.mxu1 }
0x13f4   : >> { %v5927_v7 = vadd.f32 %v12028_v14, %v5920_v24 }
0x13f5   : >> { %v8531_v37 = vpop.f32.mrf.mxu0  ;;  %v8543_v35 = vpop.f32.mrf.mxu1 }
0x13f6   : >> { %v6009_v10 = vadd.f32 %v6002_v33, %v5927_v7 }
0x13f7   : >> { %v5923_v36 = vpop.f32.mrf.mxu0  ;;  %v6005_v29 = vpop.f32.mrf.mxu1 }
0x13f8   : >> { %v5928_v9 = vadd.f32 %v12028_v14, %v5923_v36 }
0x13f9   : >> { %v8532_v38 = vpop.f32.mrf.mxu0  ;;  %v8544_v15 = vpop.f32.mrf.mxu1 }
0x13fa   : >> { %v6010_v34 = vadd.f32 %v6005_v29, %v5928_v9 }
0x1403   : >> { %v6084_v30 = vpop.f32.mrf.mxu0 }
0x1404   : >> { %v6091_v27 = vadd.f32 %v6084_v30, %v6009_v10 }
0x1405   : >> { %v8555_v1 = vpop.f32.mrf.mxu0 }
0x1406   : >> { %v6093_v3 = vmax.f32 %v6091_v27, 0.0 }
0x1407   : >> { %v6087_v2 = vpop.f32.mrf.mxu0 }
0x1408   : >> { %v7634_v0 = vpack.c.bf16 %v6093_v3, %v6093_v3  ;;  %v6092_v5 = vadd.f32 %v6087_v2, %v6010_v34 }
0x1409   : >> { %v8556_v8 = vpop.f32.mrf.mxu0 }
0x140a   : >> { %6105 = vst.msk [vmem:[%s6104_s17] sm:$0xf] %vm2130_vm7, %v7634_v0  ;;  %v6094_v6 = vmax.f32 %v6092_v5, 0.0  ;;  %5844 = sbr.rel (!%p5842_p3) target bundleno = 4898 (0x1322), region = 609 }
0x140c   : >> { %v7635_v11 = vpack.c.bf16 %v6094_v6, %v6094_v6 }
0x140e   : >> { %6106 = vst.msk [vmem:[%s6104_s17 + $0x4] sm:$0xf] %vm2130_vm7, %v7635_v11  ;;  %s6577_s17 = scalar_lea.sflag (%p5842_p3), [#allocation7], %s12399_s10 }
0x1415   : > { %v7657_v12 = vld [vmem:[#allocation2] sm:$0xff]   ;;  %v7688_v13 = vld [vmem:[#allocation2 + $0x8] sm:$0xff]   ;;  %v7689_v47 = vld [vmem:[#allocation2 + $0x10] sm:$0xff]  }
0x1416   : > { %v7658_v39 = vunpack.c.l.bf16 %v7657_v12  ;;  %v7659_v20 = vunpack.c.h.bf16 %v7657_v12  ;;  %v7662_v21 = vunpack.c.l.bf16 %v7688_v13  ;;  %v7690_v48 = vld [vmem:[#allocation2 + $0x18] sm:$0xff]   ;;  %v7663_v51 = vunpack.c.h.bf16 %v7688_v13  ;;  %v7691_v62 = vld [vmem:[#allocation2 + $0x20] sm:$0xff]   ;;  %v7692_v43 = vld [vmem:[#allocation2 + $0x28] sm:$0xff]  }
0x1417   : > { %v7666_v52 = vunpack.c.l.bf16 %v7689_v47  ;;  %v7667_v53 = vunpack.c.h.bf16 %v7689_v47  ;;  %v7670_v54 = vunpack.c.l.bf16 %v7690_v48  ;;  %v7671_v55 = vunpack.c.h.bf16 %v7690_v48  ;;  %v7693_v25 = vld [vmem:[#allocation2 + $0x30] sm:$0xff]   ;;  %v7694_v37 = vld [vmem:[#allocation2 + $0x38] sm:$0xff]   ;;  %v8978_v47 = vld [vmem:[%s12394_s5] sm:$0xff]  }
0x1418   : > { %v6140_v56 = vsel %vm2573_vm10, %v7658_v39, 0.0  ;;  %v6141_v57 = vsel %vm2573_vm10, %v7659_v20, 0.0  ;;  %v6143_v58 = vsel %vm2573_vm10, %v7662_v21, 0.0  ;;  %v6145_v61 = vsel %vm2573_vm10, %v7663_v51, 0.0  ;;  %v8975_v39 = vld [vmem:[%s12394_s5 + $0x18] sm:$0xff]   ;;  %v8976_v20 = vld [vmem:[%s12394_s5 + $0x10] sm:$0xff]  }
0x1419   : > { %v6142_v60 = vadd.f32 %v6141_v57, %v6140_v56  ;;  %v6147_v17 = vsel %vm2573_vm10, %v7666_v52, 0.0  ;;  %v6149_v18 = vsel %vm2573_vm10, %v7667_v53, 0.0  ;;  %v6151_v19 = vsel %vm2573_vm10, %v7670_v54, 0.0  ;;  %8570 = vmatpush3.bf16.msra.mxu1 %v8975_v39  ;;  %v8977_v21 = vld [vmem:[%s12394_s5 + $0x8] sm:$0xff]   ;;  %v6188_v48 = vld [vmem:[#allocation23] sm:$0x1] }
0x141a   : > { %v6153_v14 = vsel %vm2573_vm10, %v7671_v55, 0.0  ;;  %v7674_v45 = vunpack.c.l.bf16 %v7691_v62  ;;  %v7675_v16 = vunpack.c.h.bf16 %v7691_v62  ;;  %v7678_v22 = vunpack.c.l.bf16 %v7692_v43  ;;  %8571 = vmatprep.subr.bf16.mxu1 %v9584_v40  ;;  %v8979_v57 = vld [vmem:[%s12395_s6 + $0x18] sm:$0xff]  }
0x141b   : > { %v6144_v63 = vadd.f32 %v6143_v58, %v6142_v60  ;;  %v7679_v28 = vunpack.c.h.bf16 %v7692_v43  ;;  %v7682_v24 = vunpack.c.l.bf16 %v7693_v25  ;;  %v7683_v36 = vunpack.c.h.bf16 %v7693_v25  ;;  %v8980_v58 = vld [vmem:[%s12395_s6 + $0x10] sm:$0xff]   ;;  %v8982_v60 = vld [vmem:[%s12395_s6] sm:$0xff]   ;;  %v8983_v43 = vld [vmem:[%s12397_s7 + $0x18] sm:$0xff]  }
0x141c   : > { %v6155_v23 = vsel %vm2573_vm10, %v7674_v45, 0.0  ;;  %v6157_v31 = vsel %vm2573_vm10, %v7675_v16, 0.0  ;;  %v6159_v33 = vsel %vm2573_vm10, %v7678_v22, 0.0  ;;  %v7686_v15 = vunpack.c.l.bf16 %v7694_v37  ;;  %v8985_v45 = vld [vmem:[%s12397_s7 + $0x8] sm:$0xff]   ;;  %v8987_v16 = vld [vmem:[%s9798_s8 + $0x18] sm:$0xff]  }
0x141d   : > { %v6146_v42 = vadd.f32 %v6145_v61, %v6144_v63  ;;  %v6161_v29 = vsel %vm2573_vm10, %v7679_v28, 0.0  ;;  %v6163_v7 = vsel %vm2573_vm10, %v7682_v24, 0.0  ;;  %v7687_v9 = vunpack.c.h.bf16 %v7694_v37  ;;  %8572 = vmatpush3.bf16.msra.mxu1 %v8976_v20  ;;  %v6266_v61 = vld [vmem:[%s12396_s4] sm:$0x1]  ;;  %v8989_v22 = vld [vmem:[%s9798_s8 + $0x8] sm:$0xff]   ;;  %s9313_s4 = scalar_lea.vmem %s6593_s12, 16 }
0x141e   : > { %v6165_v30 = vsel %vm2573_vm10, %v7683_v36, 0.0  ;;  %v6167_v1 = vsel %vm2573_vm10, %v7686_v15, 0.0  ;;  %8573 = vmatprep.subr.bf16.mxu1 %v9584_v40  ;;  %v6344_v25 = vld [vmem:[%s12398_s15] sm:$0x1]  ;;  %p9314_p2 = scmp.ne.s32.totalorder %s6593_s12, %s9313_s4  ;;  %s9586_s15 = smov [#allocation25]  }
0x141f   : > { %v6148_v44 = vadd.f32 %v6147_v17, %v6146_v42  ;;  %v6169_v3 = vsel %vm2573_vm10, %v7687_v9, 0.0  ;;  %s9317_s5 = sshll.u32 %s9586_s15, 4  ;;  %s9318_s5 = int_to_ptr.vmem [resolvable:$false] %s9317_s5 }
0x1420   : > { %p9315_p5 = pnand %p9314_p2, %p12400_p4  ;;  %s9319_s6 = scalar_lea.vmem %s9318_s5, 32 }
0x1421   : > { %v6150_v46 = vadd.f32 %v6149_v18, %v6148_v44  ;;  %8574 = vmatpush3.bf16.msra.mxu1 %v8977_v21  ;;  %v8984_v44 = vld [vmem:[%s12397_s7 + $0x10] sm:$0xff]   ;;  %p9320_p6 = scmp.lt.s32.totalorder %s6593_s12, %s9318_s5  ;;  %p9321_p10 = scmp.lt.s32.totalorder %s9319_s6, %s9313_s4 }
0x1422   : > { %8575 = vmatprep.subr.bf16.mxu1 %v9584_v40  ;;  %p9316_p13 = pneg %p9315_p5 }
0x1423   : > { %v6152_v49 = vadd.f32 %v6151_v19, %v6150_v46  ;;  %v8986_v46 = vld [vmem:[%s12397_s7] sm:$0xff]   ;;  %p9322_p12 = por %p9321_p10, %p9320_p6 }
0x1425   : > { %v6154_v26 = vadd.f32 %v6153_v14, %v6152_v49  ;;  %8576 = vmatpush3.bf16.msra.mxu1 %v8978_v47  ;;  %v8988_v49 = vld [vmem:[%s9798_s8 + $0x10] sm:$0xff]   ;;  %p9323_p7 = pnand %p9322_p12, %p9316_p13 }
0x1426   : > { %8593 = vmatprep.subr.bf16.mxu1 %v9584_v40 }
0x1427   : > { %v6156_v32 = vadd.f32 %v6155_v23, %v6154_v26  ;;  %v8990_v23 = vld [vmem:[%s9798_s8] sm:$0xff]  }
0x1429   : > { %v6158_v35 = vadd.f32 %v6157_v31, %v6156_v32 }
0x142b   : > { %v6160_v38 = vadd.f32 %v6159_v33, %v6158_v35 }
0x142d   : > { %v6162_v10 = vadd.f32 %v6161_v29, %v6160_v38  ;;  %v6506_v29 = vld [vmem:[%s9803_s13] sm:$0x1] }
0x142f   : > { %v6164_v27 = vadd.f32 %v6163_v7, %v6162_v10 }
0x1431   : > { %v6166_v34 = vadd.f32 %v6165_v30, %v6164_v27 }
0x1433   : > { %v6168_v2 = vadd.f32 %v6167_v1, %v6166_v34 }
0x1435   : > { %v6170_v0 = vadd.f32 %v6169_v3, %v6168_v2 }
0x1437   : > { %v6171_v5 = vrot.slane %v6170_v0, 4 }
0x1439   : > { %v6172_v8 = vadd.f32 %v6171_v5, %v6170_v0 }
0x143b   : > { %v6173_v6 = vrot.slane %v6172_v8, 2 }
0x143d   : > { %v6174_v11 = vadd.f32 %v6173_v6, %v6172_v8 }
0x143f   : > { %v6175_v4 = vrot.slane %v6174_v11, 1 }
0x1441   : > { %v6176_v41 = vadd.f32 %v6175_v4, %v6174_v11 }
0x1443   : > { %v6178_v12 = vmul.f32 0.0078125, %v6176_v41 }
0x1445   : > { %v12107_v13 = vpack.c.bf16 %v6178_v12, %v6178_v12 }
0x1447   : > { %8566 = vmatmul.mubr.msk.bf16.vlgmr.msra.gmra.mxu0 %vm2573_vm10, %v12107_v13 }
0x1448   : > { %8589 = vmatprep.mubr.msk.bf16.mxu0 %vm9585_vm3, %v9584_v40  ;;  %8582 = vmatpush3.bf16.msra.mxu0 %v8979_v57 }
0x1449   : > { %8583 = vmatprep.subr.bf16.mxu0 %v9584_v40 }
0x144c   : > { %8584 = vmatpush3.bf16.msra.mxu0 %v8980_v58 }
0x144d   : > { %8585 = vmatprep.subr.bf16.mxu0 %v9584_v40 }
0x1450   : > { %8586 = vmatpush3.bf16.msra.mxu0 %v8981_v59 }
0x1451   : > { %8587 = vmatprep.subr.bf16.mxu0 %v9584_v40 }
0x1454   : > { %8588 = vmatpush3.bf16.msra.mxu0 %v8982_v60 }
0x1455   : > { %8605 = vmatprep.subr.bf16.mxu0 %v9584_v40 }
0x1507   : > { %v6250_v50 = vpop.f32.mrf.mxu0 }
0x1508   : > { %v6251_v51 = vadd.f32 %v6250_v50, %v6188_v48 }
0x1509   : > { %v8567_v52 = vpop.f32.mrf.mxu0 }
0x150a   : > { %8991 = vtanh.f32 %v6251_v51 }
0x150b   : > { %v6253_v53 = vpop.f32.mrf.mxu0 }
0x150d   : > { %v8568_v54 = vpop.f32.mrf.mxu0 }
0x1517   : > { %v8992_v55 = vpop.eup %8991 }
0x1518   : > { %v6257_v56 = vpack.c.bf16 %v8992_v55, %v8992_v55 }
0x151a   : > { %8578 = vmatmul.mubr.msk.bf16.vlgmr.msra.gmra.mxu1 %vm2573_vm10, %v6257_v56 }
0x151b   : > { %8601 = vmatprep.mubr.msk.bf16.mxu1 %vm9585_vm3, %v9584_v40  ;;  %8594 = vmatpush3.bf16.msra.mxu1 %v8983_v43 }
0x151c   : > { %8595 = vmatprep.subr.bf16.mxu1 %v9584_v40 }
0x151f   : > { %8596 = vmatpush3.bf16.msra.mxu1 %v8984_v44 }
0x1520   : > { %8597 = vmatprep.subr.bf16.mxu1 %v9584_v40 }
0x1523   : > { %8598 = vmatpush3.bf16.msra.mxu1 %v8985_v45 }
0x1524   : > { %8599 = vmatprep.subr.bf16.mxu1 %v9584_v40 }
0x1527   : > { %8600 = vmatpush3.bf16.msra.mxu1 %v8986_v46 }
0x15da   : > { %v6328_v62 = vpop.f32.mrf.mxu1 }
0x15db   : > { %v6329_v63 = vadd.f32 %v6328_v62, %v6266_v61 }
0x15dc   : > { %v8579_v17 = vpop.f32.mrf.mxu1 }
0x15dd   : > { %8993 = vtanh.f32 %v6329_v63 }
0x15de   : > { %v6331_v18 = vpop.f32.mrf.mxu1 }
0x15e0   : > { %v8580_v19 = vpop.f32.mrf.mxu1 }
0x15ea   : > { %v8994_v14 = vpop.eup %8993 }
0x15eb   : > { %v6335_v42 = vpack.c.bf16 %v8994_v14, %v8994_v14 }
0x15ed   : > { %8590 = vmatmul.mubr.msk.bf16.vlgmr.msra.gmra.mxu0 %vm2573_vm10, %v6335_v42 }
0x15ee   : > { %8613 = vmatprep.mubr.msk.bf16.mxu0 %vm9585_vm3, %v9584_v40  ;;  %8606 = vmatpush3.bf16.msra.mxu0 %v8987_v16 }
0x15ef   : > { %8607 = vmatprep.subr.bf16.mxu0 %v9584_v40 }
0x15f2   : > { %8608 = vmatpush3.bf16.msra.mxu0 %v8988_v49 }
0x15f3   : > { %8609 = vmatprep.subr.bf16.mxu0 %v9584_v40 }
0x15f6   : > { %8610 = vmatpush3.bf16.msra.mxu0 %v8989_v22 }
0x15f7   : > { %8611 = vmatprep.subr.bf16.mxu0 %v9584_v40 }
0x15fa   : > { %8612 = vmatpush3.bf16.msra.mxu0 %v8990_v23 }
0x15fd   : > { %8614 = vmatmul.mubr.msk.bf16.vlgmr.msra.gmra.mxu0 %vm2573_vm10, %v12107_v13 }
0x16ad   : > { %v6406_v26 = vpop.f32.mrf.mxu0 }
0x16ae   : > { %v6407_v28 = vadd.f32 %v6406_v26, %v6344_v25 }
0x16af   : > { %v8591_v31 = vpop.f32.mrf.mxu0 }
0x16b0   : > { %8995 = vtanh.f32 %v6407_v28 }
0x16b1   : > { %v6409_v32 = vpop.f32.mrf.mxu0 }
0x16b3   : > { %v8592_v24 = vpop.f32.mrf.mxu0 }
0x16bd   : > { %v8996_v33 = vpop.eup %8995  ;;  %v6565_v40 = vpop.f32.mrf.mxu0 }
0x16be   : > { %v6413_v37 = vpack.c.bf16 %v8996_v33, %v8996_v33  ;;  %v6566_v15 = vadd.f32 %v6565_v40, %v6506_v29 }
0x16bf   : > { %v8615_v35 = vpop.f32.mrf.mxu0 }
0x16c0   : > { %8602 = vmatmul.mubr.msk.bf16.vlgmr.msra.gmra.mxu1 %vm2573_vm10, %v6413_v37  ;;  %6572 = vst.msk [vmem:[%s10054_s1] sm:$0x1] %vm6571_vm4, %v6566_v15 }
0x16c1   : > { %v6568_v36 = vpop.f32.mrf.mxu0 }
0x16c3   : > { %v8616_v38 = vpop.f32.mrf.mxu0 }
0x16c4   : > { %9326 = shalt.err (!%p9323_p7)
}
0x16c5   : > { %s9327_s0 = scalar_lea.hbm %s6590_s14, 16  ;;  %s9331_s1 = scalar_lea.hbm %s9813_s9, 32 }
0x16c6   : > { %p9328_p8 = scmp.ne.s32.totalorder %s6590_s14, %s9327_s0  ;;  %p9332_p9 = scmp.lt.s32.totalorder %s6590_s14, %s9813_s9 }
0x16c7   : > { %p9333_p1 = scmp.lt.s32.totalorder %s9331_s1, %s9327_s0 }
0x16c8   : > { %p9329_p11 = pnand %p9328_p8, %p12400_p4 }
0x16c9   : > { %p9334_p3 = por %p9333_p1, %p9332_p9 }
0x16ca   : > { %p9330_p0 = pneg %p9329_p11 }
0x16cc   : > { %p9335_p2 = pnand %p9334_p3, %p9330_p0 }
0x16ce   : > { %9338 = shalt.err (!%p9335_p2)
}
0x16cf   : > { %8665 = dma.vmem_to_hbm [thread:$0]  (%p12400_p4), %s6593_s12, 16, %s6590_s14, %s6577_s17   ;;  %v6422_v7 = vld [vmem:[#allocation4] sm:$0x1]  ;;  %vm6496_vm5 = vcmask 0  }
0x16d0   : > { %s12401_s5 = scalar_lea.vmem %s9808_s3, %s10001_s2 }
0x1780   : > { %v6484_v10 = vpop.f32.mrf.mxu1 }
0x1781   : > { %v6485_v9 = vadd.f32 %v6484_v10, %v6422_v7 }
0x1782   : > { %v8603_v30 = vpop.f32.mrf.mxu1 }
0x1783   : > { %v7590_v27 = vmul.f32 -1.442695, %v6485_v9 }
0x1784   : > { %v6487_v1 = vpop.f32.mrf.mxu1 }
0x1785   : > { %8997 = vpow2.f32 %v7590_v27 }
0x1786   : > { %v8604_v34 = vpop.f32.mrf.mxu1 }
0x1792   : > { %v8998_v3 = vpop.eup %8997 }
0x1793   : > { %v6493_v2 = vadd.f32 1.0, %v8998_v3 }
0x1795   : > { %8999 = vrcp.f32 %v6493_v2 }
0x17a2   : > { %v9000_v0 = vpop.eup %8999 }
0x17a3   : > { %6497 = vst.msk [vmem:[%s12401_s5] sm:$0x1] %vm6496_vm5, %v9000_v0 }
0x17a4 PF: > { %s12402_s18 = sld [smem:[#allocation68_spill]] }
0x17a5   : > { %s12403_s6 = sld [smem:[#allocation66_spill]] }
0x17a6   : > { %s12404_s11 = sld [smem:[#allocation71_spill]] }
0x17aa   : > { %p8732_p4 = scmp.ge.s32.totalorder %s12402_s18, 2 }
0x17ab   : > { %s6610_s12 = sand.u32 1, %s12403_s6  }
0x17ac   : > { %p12405_p5 = scmp.ne.s32.totalorder %s12404_s11, 0  ;;  %s6611_s14 = scalar_lea.sflag [#allocation7], %s6610_s12 }
0x17ae   : > { %p8705_p13 = pnand %p8732_p4, %p12405_p5 }
0x17b0   : > { %p8706_p6 = pneg %p8705_p13 }
0x17b2   : > { %9432 = dma.done.wait (%p8706_p6), %s6611_s14, 16  }
0x17b3   : > { %9434 = vsyncadd (%p8706_p6), %s6611_s14, 4294967280  ;;  %s12406_s10 = sld [smem:[#allocation69_spill]]  ;;  %s12409_s1 = smov %s9441_s28 }
0x17b4   : > { %s12407_s17 = sld [smem:[#allocation67_spill]] }
0x17b5   : > { %s12408_s2 = sld [smem:[#allocation70_spill]] }
0x17b9   : > { %p109_p10 = scmp.ge.s32.totalorder %s12406_s10, 4  }
0x17ba   : > { %s12410_s28 = smov %s12407_s17 }
0x17bb   :  { %111 = sbr.rel (!%p109_p10) target bundleno = 91 (0x5b), region = 620 }
0x17c0   :  { %6615 = vsyncpa [#allocation6], 1 }
0x17c1   :  { %6617 = vsyncpa [#allocation6 + $0x1], 1 }
0x17c2   :  { %6618 = vsyncpa [#allocation9], 1 }
0x17c3   :  { %6619 = vsyncpa [#allocation12], 1 }
0x17c4   :  { %6620 = vsyncpa [#allocation15], 1 }
0x17c5   :  { %6621 = vsyncpa [#allocation18], 1 }
0x17c6   :  { %6622 = vsyncpa [#allocation21], 1 }
0x17c7   :  { %6623 = vsyncpa [#allocation24], 1 }
0x17c8   :  { %6624 = vsyncpa [#allocation7], 1 }
0x17c9   :  { %6626 = vsyncpa [#allocation7 + $0x1], 1 }

</bundles_post_ra>
